<compile_context>
chip_gen: v7x
topology: tpu7x:2x2x1
jax: 0.10.0
libtpu: 0.0.40
codegen_flags: <defaults>
</compile_context>

<pallas_src>
import functools
import math

import jax
import jax.numpy as jnp
from jax import lax
from jax.experimental import pallas as pl
from jax.experimental.pallas import tpu as pltpu


_INV_SQRT2 = 0.7071067811865475


def _gelu_exact(x):
    # matches torch.nn.GELU() default (erf formulation)
    return 0.5 * x * (1.0 + lax.erf(x * _INV_SQRT2))


# ----------------------------------------------------------------------------
# Kernel
# ----------------------------------------------------------------------------
def _dpo_kernel(H, L,
                x_ref, wp_ref, bp_ref,
                wih0_ref, wihr_ref, whh_ref, gb_ref, bn_ref,
                wa1_ref, ba1_ref, wa2_ref, ba2_ref,
                wo1_ref, bo1_ref, wo2_ref, bo2_ref,
                out_ref):
    """Full forward pass for one batch tile."""
    f32 = jnp.float32
    Bt, S, Din = x_ref.shape
    H2, H3, H4, H5, H6 = 2 * H, 3 * H, 4 * H, 5 * H, 6 * H

    # ---------------- input projection (one batched matmul) ----------------
    x2 = x_ref[...].reshape(Bt * S, Din)                      # rows in (b, t) order
    inp = jnp.dot(x2, wp_ref[...], preferred_element_type=f32) + bp_ref[...]   # [Bt*S, H]

    # ---------------- stacked bidirectional GRU ----------------
    for layer in range(L):
        w_ih = wih0_ref[...] if layer == 0 else wihr_ref[layer - 1]   # [in, 6H]
        w_hh = whh_ref[layer]                     # [2H, 6H] block-diag, gate-major cols
        gb = gb_ref[layer]                        # [1, 6H]  b_ih (+ b_hh for r/z) folded
        bn = bn_ref[layer]                        # [1, 2H]  b_hh for the n gate

        # Hoisted input-to-hidden matmul: all timesteps, both directions at once.
        gi = jnp.dot(inp, w_ih, preferred_element_type=f32) + gb      # [Bt*S, 6H]
        gi = gi.reshape(Bt, S, H6)

        # Per-step gate inputs, pairing fwd time t with bwd time S-1-t.
        # Off the serial dependency chain (depends only on gi); the unrolled
        # scheduler can hoist/overlap these with the recurrence matmuls.
        gi_r = [jnp.concatenate([gi[:, t, 0:H],   gi[:, S - 1 - t, H:H2]],  axis=-1)
                for t in range(S)]
        gi_z = [jnp.concatenate([gi[:, t, H2:H3], gi[:, S - 1 - t, H3:H4]], axis=-1)
                for t in range(S)]
        gi_n = [jnp.concatenate([gi[:, t, H4:H5], gi[:, S - 1 - t, H5:H6]], axis=-1)
                for t in range(S)]

        # Fused fwd+bwd recurrence: S serial steps, fully unrolled,
        # exactly one MXU op (h @ W_hh) on the dependency chain per step.
        h = jnp.zeros((Bt, H2), f32)              # [h_fwd | h_bwd]
        h_f = [None] * S
        h_b = [None] * S
        for t in range(S):
            gh = jnp.dot(h, w_hh, preferred_element_type=f32)          # [Bt, 6H]
            r = jax.nn.sigmoid(gi_r[t] + gh[:, 0:H2])
            z = jax.nn.sigmoid(gi_z[t] + gh[:, H2:H4])
            n = jnp.tanh(gi_n[t] + r * (gh[:, H4:H6] + bn))
            h = (1.0 - z) * n + z * h
            h_f[t] = h[:, 0:H]                    # fwd hidden at time t
            h_b[S - 1 - t] = h[:, H:H2]           # bwd hidden at time S-1-t

        # Bidirectional output per timestep, batch-major; feeds the next layer.
        out3 = jnp.stack([jnp.concatenate([h_f[t], h_b[t]], axis=-1)
                          for t in range(S)], axis=1)                  # [Bt, S, 2H]
        inp = out3.reshape(Bt * S, H2)

    gru = inp                                                          # [Bt*S, 2H]

    # ---------------- attention pooling over the sequence ----------------
    a1 = jnp.tanh(jnp.dot(gru, wa1_ref[...], preferred_element_type=f32) + ba1_ref[...])
    sc = jnp.dot(a1, wa2_ref[...], preferred_element_type=f32) + ba2_ref[...]   # [Bt*S, 1]
    sc = sc.reshape(Bt, S, 1)
    m = jnp.max(sc, axis=1, keepdims=True)
    e = jnp.exp(sc - m)
    w = e * pl.reciprocal(jnp.sum(e, axis=1, keepdims=True), approx=True)       # [Bt, S, 1]
    g3 = gru.reshape(Bt, S, H2)
    agg = jnp.sum(g3 * w, axis=1)                                               # [Bt, 2H]

    # ---------------- output head ----------------
    h1 = jnp.dot(agg, wo1_ref[...], preferred_element_type=f32) + bo1_ref[...]
    h1 = _gelu_exact(h1)
    out = jnp.dot(h1, wo2_ref[...], preferred_element_type=f32) + bo2_ref[...]  # [Bt, 1]
    out_ref[...] = out.astype(out_ref.dtype)


# ----------------------------------------------------------------------------
# Parameter packing (fused, gate-major layouts for the kernel)
# ----------------------------------------------------------------------------
def pack_params(p, hidden_dim, n_layers):
    """Build the fused kernel weight layout from natural per-layer params.

    Gate-major column order for all 6H-wide objects:
      [r_fwd | r_bwd | z_fwd | z_bwd | n_fwd | n_bwd], each block H wide.
    """
    H, L = hidden_dim, n_layers
    H2 = 2 * H

    def gate_major_cols(w_f, w_b):                          # [in,3H] x2 -> [in,6H]
        cols = []
        for g in range(3):
            cols.append(w_f[:, g * H:(g + 1) * H])
            cols.append(w_b[:, g * H:(g + 1) * H])
        return jnp.concatenate(cols, axis=1)

    def blockdiag_hh(w_f, w_b):                             # [H,3H] x2 -> [2H,6H]
        z = jnp.zeros((H, H), jnp.float32)
        blocks = []
        for g in range(3):
            top = jnp.concatenate([w_f[:, g * H:(g + 1) * H], z], axis=1)
            bot = jnp.concatenate([z, w_b[:, g * H:(g + 1) * H]], axis=1)
            blocks.append(jnp.concatenate([top, bot], axis=0))
        return jnp.concatenate(blocks, axis=1)

    def gate_bias(bih_f, bih_b, bhh_f, bhh_b):              # -> [1, 6H]
        cols = []
        for g in range(3):
            f = bih_f[:, g * H:(g + 1) * H]
            b = bih_b[:, g * H:(g + 1) * H]
            if g < 2:   # fold b_hh for the r/z gates off the serial path
                f = f + bhh_f[:, g * H:(g + 1) * H]
                b = b + bhh_b[:, g * H:(g + 1) * H]
            cols.append(f)
            cols.append(b)
        return jnp.concatenate(cols, axis=1)

    kp = {k: p[k] for k in ('wp', 'bp', 'wa1', 'ba1', 'wa2', 'ba2',
                            'wo1', 'bo1', 'wo2', 'bo2')}
    kp['wih0'] = gate_major_cols(p['wih'][0][0], p['wih'][0][1])          # [H, 6H]
    if L > 1:
        kp['wihr'] = jnp.stack([gate_major_cols(p['wih'][l][0], p['wih'][l][1])
                                for l in range(1, L)])                    # [L-1, 2H, 6H]
    else:
        kp['wihr'] = jnp.zeros((1, H2, 6 * H), jnp.float32)               # dummy, unused
    kp['whh'] = jnp.stack([blockdiag_hh(p['whh'][l][0], p['whh'][l][1])
                           for l in range(L)])                            # [L, 2H, 6H]
    kp['gb'] = jnp.stack([gate_bias(p['bih'][l][0], p['bih'][l][1],
                                    p['bhh'][l][0], p['bhh'][l][1])
                          for l in range(L)])                             # [L, 1, 6H]
    kp['bn'] = jnp.stack([jnp.concatenate([p['bhh'][l][0][:, 2 * H:],
                                           p['bhh'][l][1][:, 2 * H:]], axis=1)
                          for l in range(L)])                             # [L, 1, 2H]
    return kp


# ----------------------------------------------------------------------------
# Wrapper
# ----------------------------------------------------------------------------
def _full_spec(w):
    zeros = (0,) * w.ndim
    return pl.BlockSpec(w.shape, lambda b, _z=zeros: _z)


def lightweight_dpo_forward(x, packed, hidden_dim, n_layers, batch_tile=None):
    """x: [B, S, input_dim] or [B, input_dim]; returns [B, 1] f32."""
    if x.ndim == 2:
        x = x[:, None, :]
    x = x.astype(jnp.float32)
    B, S, Din = x.shape
    H, L = hidden_dim, n_layers

    bt = batch_tile if batch_tile is not None else min(B, 8)
    bt = max(1, min(bt, B))
    while B % bt:
        bt -= 1
    nb = B // bt

    xb = x.reshape(nb, bt, S, Din)          # free row-major reshape, no transpose

    weight_args = [packed['wp'], packed['bp'],
                   packed['wih0'], packed['wihr'], packed['whh'],
                   packed['gb'], packed['bn'],
                   packed['wa1'], packed['ba1'], packed['wa2'], packed['ba2'],
                   packed['wo1'], packed['bo1'], packed['wo2'], packed['bo2']]
    w_specs = [_full_spec(w) for w in weight_args]

    kernel = functools.partial(_dpo_kernel, H, L)

    out = pl.pallas_call(
        kernel,
        out_shape=jax.ShapeDtypeStruct((nb, bt, 1), jnp.float32),
        grid=(nb,),
        in_specs=[pl.BlockSpec((None, bt, S, Din), lambda b: (b, 0, 0, 0))] + w_specs,
        out_specs=pl.BlockSpec((None, bt, 1), lambda b: (b, 0, 0)),
        compiler_params=pltpu.CompilerParams(
            dimension_semantics=("parallel",),          # megacore sharding on v7x
            vmem_limit_bytes=48 * 1024 * 1024),         # above v5e's 16 MiB default
    )(xb, *weight_args)
    return out.reshape(B, 1)


# ----------------------------------------------------------------------------
# Parameter init (natural, unpadded shapes) and pure-JAX reference
# ----------------------------------------------------------------------------
def init_params(key, input_dim, hidden_dim, n_layers):
    H = hidden_dim
    keys = iter(jax.random.split(key, 2 + n_layers * 8 + 8 + 4))

    def rn(shape, scale):
        return jax.random.normal(next(keys), shape, jnp.float32) * scale

    p = {}
    p['wp'] = rn((input_dim, H), 1.0 / math.sqrt(input_dim))
    p['bp'] = rn((1, H), 0.01)

    p['wih'], p['whh'], p['bih'], p['bhh'] = [], [], [], []
    for layer in range(n_layers):
        in_dim = H if layer == 0 else 2 * H
        wih_d, whh_d, bih_d, bhh_d = [], [], [], []
        for _d in range(2):
            wih_d.append(rn((in_dim, 3 * H), 1.0 / math.sqrt(in_dim)))
            whh_d.append(rn((H, 3 * H), 1.0 / math.sqrt(H)))
            bih_d.append(rn((1, 3 * H), 0.01))
            bhh_d.append(rn((1, 3 * H), 0.01))
        p['wih'].append(wih_d)
        p['whh'].append(whh_d)
        p['bih'].append(bih_d)
        p['bhh'].append(bhh_d)

    p['wa1'] = rn((2 * H, H), 1.0 / math.sqrt(2 * H))
    p['ba1'] = rn((1, H), 0.01)
    p['wa2'] = rn((H, 1), 1.0 / math.sqrt(H))
    p['ba2'] = rn((1, 1), 0.01)
    p['wo1'] = rn((2 * H, H), 1.0 / math.sqrt(2 * H))
    p['bo1'] = rn((1, H), 0.01)
    p['wo2'] = rn((H, 1), 1.0 / math.sqrt(H))
    p['bo2'] = rn((1, 1), 0.01)
    return p


def reference_forward(x, p, hidden_dim, n_layers):
    """Pure-JAX reference (mirrors the PyTorch module in eval mode)."""
    if x.ndim == 2:
        x = x[:, None, :]
    x = x.astype(jnp.float32)
    B, S, _ = x.shape
    H = hidden_dim
    inp = x @ p['wp'] + p['bp']                                # [B, S, H]
    for layer in range(n_layers):
        outs = []
        for d in range(2):
            w_ih = p['wih'][layer][d]
            w_hh = p['whh'][layer][d]
            b_ih = p['bih'][layer][d]
            b_hh = p['bhh'][layer][d]

            def cell(hprev, x_t):
                gi = x_t @ w_ih + b_ih
                gh = hprev @ w_hh + b_hh
                r = jax.nn.sigmoid(gi[:, :H] + gh[:, :H])
                z = jax.nn.sigmoid(gi[:, H:2 * H] + gh[:, H:2 * H])
                n = jnp.tanh(gi[:, 2 * H:] + r * gh[:, 2 * H:])
                hn = (1.0 - z) * n + z * hprev
                return hn, hn

            xs = jnp.transpose(inp, (1, 0, 2))                 # [S, B, in]
            if d == 1:
                xs = xs[::-1]
            _, ys = lax.scan(cell, jnp.zeros((B, H), jnp.float32), xs)
            if d == 1:
                ys = ys[::-1]
            outs.append(jnp.transpose(ys, (1, 0, 2)))
        inp = jnp.concatenate(outs, axis=-1)                   # [B, S, 2H]
    gru = inp
    a1 = jnp.tanh(gru @ p['wa1'] + p['ba1'])
    sc = a1 @ p['wa2'] + p['ba2']                              # [B, S, 1]
    w = jax.nn.softmax(sc, axis=1)
    agg = jnp.sum(gru * w, axis=1)                             # [B, 2H]
    h1 = _gelu_exact(agg @ p['wo1'] + p['bo1'])
    return h1 @ p['wo2'] + p['bo2']                            # [B, 1]


# ----------------------------------------------------------------------------
# Self-check
# ----------------------------------------------------------------------------
if __name__ == "__main__":
    B, S, Din, H, L = 2, 8, 16, 32, 3
    key = jax.random.PRNGKey(0)
    kx, kp = jax.random.split(key)
    x = jax.random.normal(kx, (B, S, Din), jnp.float32)
    params = init_params(kp, Din, H, L)
    packed = pack_params(params, H, L)

    fwd = jax.jit(functools.partial(lightweight_dpo_forward,
                                    hidden_dim=H, n_layers=L, batch_tile=1))
    out = jax.block_until_ready(fwd(x, packed))

    ref = jax.block_until_ready(reference_forward(x, params, H, L))

    assert out.shape == (B, 1), out.shape
    assert bool(jnp.all(jnp.isfinite(out)))
    max_diff = float(jnp.max(jnp.abs(out - ref)))
    assert max_diff < 2e-2, f"mismatch vs reference: {max_diff}"
    print("KERNEL_OK")
</pallas_src>

<mosaic_0001>
module attributes {stable_mosaic.version = 11 : i64} {
  func.func @_dpo_kernel(%arg0: i32, %arg1: memref<1x1x8x16xf32, #tpu.memory_space<vmem>>, %arg2: memref<16x32xf32, #tpu.memory_space<vmem>>, %arg3: memref<1x32xf32, #tpu.memory_space<vmem>>, %arg4: memref<32x192xf32, #tpu.memory_space<vmem>>, %arg5: memref<2x64x192xf32, #tpu.memory_space<vmem>>, %arg6: memref<3x64x192xf32, #tpu.memory_space<vmem>>, %arg7: memref<3x1x192xf32, #tpu.memory_space<vmem>>, %arg8: memref<3x1x64xf32, #tpu.memory_space<vmem>>, %arg9: memref<64x32xf32, #tpu.memory_space<vmem>>, %arg10: memref<1x32xf32, #tpu.memory_space<vmem>>, %arg11: memref<32x1xf32, #tpu.memory_space<vmem>>, %arg12: memref<1x1xf32, #tpu.memory_space<vmem>>, %arg13: memref<64x32xf32, #tpu.memory_space<vmem>>, %arg14: memref<1x32xf32, #tpu.memory_space<vmem>>, %arg15: memref<32x1xf32, #tpu.memory_space<vmem>>, %arg16: memref<1x1xf32, #tpu.memory_space<vmem>>, %arg17: memref<1x1x1xf32, #tpu.memory_space<vmem>>) attributes {dimension_semantics = [#tpu.dimension_semantics<parallel>], iteration_bounds = array<i64: 2>, scalar_prefetch = 0 : i64, scratch_operands = 0 : i64, tpu.core_type = #tpu.core_type<tc>, window_params = [{transform_indices = @transform_0, window_bounds = array<i64: 1, 1, 8, 16>}, {pipeline_mode = #tpu.pipeline_mode<synchronous>, transform_indices = @transform_1, window_bounds = array<i64: 16, 32>}, {pipeline_mode = #tpu.pipeline_mode<synchronous>, transform_indices = @transform_2, window_bounds = array<i64: 1, 32>}, {pipeline_mode = #tpu.pipeline_mode<synchronous>, transform_indices = @transform_3, window_bounds = array<i64: 32, 192>}, {pipeline_mode = #tpu.pipeline_mode<synchronous>, transform_indices = @transform_4, window_bounds = array<i64: 2, 64, 192>}, {pipeline_mode = #tpu.pipeline_mode<synchronous>, transform_indices = @transform_5, window_bounds = array<i64: 3, 64, 192>}, {pipeline_mode = #tpu.pipeline_mode<synchronous>, transform_indices = @transform_6, window_bounds = array<i64: 3, 1, 192>}, {pipeline_mode = #tpu.pipeline_mode<synchronous>, transform_indices = @transform_7, window_bounds = array<i64: 3, 1, 64>}, {pipeline_mode = #tpu.pipeline_mode<synchronous>, transform_indices = @transform_8, window_bounds = array<i64: 64, 32>}, {pipeline_mode = #tpu.pipeline_mode<synchronous>, transform_indices = @transform_9, window_bounds = array<i64: 1, 32>}, {pipeline_mode = #tpu.pipeline_mode<synchronous>, transform_indices = @transform_10, window_bounds = array<i64: 32, 1>}, {pipeline_mode = #tpu.pipeline_mode<synchronous>, transform_indices = @transform_11, window_bounds = array<i64: 1, 1>}, {pipeline_mode = #tpu.pipeline_mode<synchronous>, transform_indices = @transform_12, window_bounds = array<i64: 64, 32>}, {pipeline_mode = #tpu.pipeline_mode<synchronous>, transform_indices = @transform_13, window_bounds = array<i64: 1, 32>}, {pipeline_mode = #tpu.pipeline_mode<synchronous>, transform_indices = @transform_14, window_bounds = array<i64: 32, 1>}, {pipeline_mode = #tpu.pipeline_mode<synchronous>, transform_indices = @transform_15, window_bounds = array<i64: 1, 1>}, {transform_indices = @transform_16, window_bounds = array<i64: 1, 1, 1>}]} {
    %c0 = arith.constant 0 : index
    %c0_0 = arith.constant 0 : index
    %c0_1 = arith.constant 0 : index
    %c0_2 = arith.constant 0 : index
    %0 = vector.load %arg1[%c0, %c0_0, %c0_1, %c0_2] : memref<1x1x8x16xf32, #tpu.memory_space<vmem>>, vector<1x1x8x16xf32>
    %1 = vector.shape_cast %0 : vector<1x1x8x16xf32> to vector<1x8x16xf32>
    %2 = vector.shape_cast %1 : vector<1x8x16xf32> to vector<8x16xf32>
    %c0_3 = arith.constant 0 : index
    %c0_4 = arith.constant 0 : index
    %3 = vector.load %arg2[%c0_3, %c0_4] : memref<16x32xf32, #tpu.memory_space<vmem>>, vector<16x32xf32>
    %cst = arith.constant dense<0.000000e+00> : vector<8x32xf32>
    %4 = tpu.matmul %2, %3, %cst {dimension_numbers = #tpu.dot_dimension_numbers<[1], [0], [0], [1], [0, 0, 1, 1], [], []>} : vector<8x16xf32>, vector<16x32xf32>, vector<8x32xf32> -> vector<8x32xf32>
    %c0_5 = arith.constant 0 : index
    %c0_6 = arith.constant 0 : index
    %5 = vector.load %arg3[%c0_5, %c0_6] : memref<1x32xf32, #tpu.memory_space<vmem>>, vector<1x32xf32>
    %6 = vector.broadcast %5 : vector<1x32xf32> to vector<8x32xf32>
    %7 = arith.addf %4, %6 : vector<8x32xf32>
    %c0_7 = arith.constant 0 : index
    %c0_8 = arith.constant 0 : index
    %8 = vector.load %arg4[%c0_7, %c0_8] : memref<32x192xf32, #tpu.memory_space<vmem>>, vector<32x192xf32>
    %c0_9 = arith.constant 0 : index
    %c0_10 = arith.constant 0 : index
    %c0_11 = arith.constant 0 : index
    %9 = vector.load %arg6[%c0_9, %c0_10, %c0_11] : memref<3x64x192xf32, #tpu.memory_space<vmem>>, vector<1x64x192xf32>
    %10 = vector.shape_cast %9 : vector<1x64x192xf32> to vector<64x192xf32>
    %c0_12 = arith.constant 0 : index
    %c0_13 = arith.constant 0 : index
    %c0_14 = arith.constant 0 : index
    %11 = vector.load %arg7[%c0_12, %c0_13, %c0_14] : memref<3x1x192xf32, #tpu.memory_space<vmem>>, vector<1x1x192xf32>
    %12 = vector.shape_cast %11 : vector<1x1x192xf32> to vector<1x192xf32>
    %c0_15 = arith.constant 0 : index
    %c0_16 = arith.constant 0 : index
    %c0_17 = arith.constant 0 : index
    %13 = vector.load %arg8[%c0_15, %c0_16, %c0_17] : memref<3x1x64xf32, #tpu.memory_space<vmem>>, vector<1x1x64xf32>
    %14 = vector.shape_cast %13 : vector<1x1x64xf32> to vector<1x64xf32>
    %cst_18 = arith.constant dense<0.000000e+00> : vector<8x192xf32>
    %15 = tpu.matmul %7, %8, %cst_18 {dimension_numbers = #tpu.dot_dimension_numbers<[1], [0], [0], [1], [0, 0, 1, 1], [], []>} : vector<8x32xf32>, vector<32x192xf32>, vector<8x192xf32> -> vector<8x192xf32>
    %16 = vector.broadcast %12 : vector<1x192xf32> to vector<8x192xf32>
    %17 = arith.addf %15, %16 : vector<8x192xf32>
    %18 = vector.shape_cast %17 : vector<8x192xf32> to vector<1x8x192xf32>
    %19 = vector.extract_strided_slice %18 {offsets = [0, 0, 0], sizes = [1, 1, 32], strides = [1, 1, 1]} : vector<1x8x192xf32> to vector<1x1x32xf32>
    %20 = vector.shape_cast %19 : vector<1x1x32xf32> to vector<1x32xf32>
    %21 = vector.extract_strided_slice %18 {offsets = [0, 7, 32], sizes = [1, 1, 32], strides = [1, 1, 1]} : vector<1x8x192xf32> to vector<1x1x32xf32>
    %22 = vector.shape_cast %21 : vector<1x1x32xf32> to vector<1x32xf32>
    %23 = tpu.concatenate %20, %22 in 1 : vector<1x32xf32>, vector<1x32xf32> -> vector<1x64xf32>
    %24 = vector.extract_strided_slice %18 {offsets = [0, 1, 0], sizes = [1, 1, 32], strides = [1, 1, 1]} : vector<1x8x192xf32> to vector<1x1x32xf32>
    %25 = vector.shape_cast %24 : vector<1x1x32xf32> to vector<1x32xf32>
    %26 = vector.extract_strided_slice %18 {offsets = [0, 6, 32], sizes = [1, 1, 32], strides = [1, 1, 1]} : vector<1x8x192xf32> to vector<1x1x32xf32>
    %27 = vector.shape_cast %26 : vector<1x1x32xf32> to vector<1x32xf32>
    %28 = tpu.concatenate %25, %27 in 1 : vector<1x32xf32>, vector<1x32xf32> -> vector<1x64xf32>
    %29 = vector.extract_strided_slice %18 {offsets = [0, 2, 0], sizes = [1, 1, 32], strides = [1, 1, 1]} : vector<1x8x192xf32> to vector<1x1x32xf32>
    %30 = vector.shape_cast %29 : vector<1x1x32xf32> to vector<1x32xf32>
    %31 = vector.extract_strided_slice %18 {offsets = [0, 5, 32], sizes = [1, 1, 32], strides = [1, 1, 1]} : vector<1x8x192xf32> to vector<1x1x32xf32>
    %32 = vector.shape_cast %31 : vector<1x1x32xf32> to vector<1x32xf32>
    %33 = tpu.concatenate %30, %32 in 1 : vector<1x32xf32>, vector<1x32xf32> -> vector<1x64xf32>
    %34 = vector.extract_strided_slice %18 {offsets = [0, 3, 0], sizes = [1, 1, 32], strides = [1, 1, 1]} : vector<1x8x192xf32> to vector<1x1x32xf32>
    %35 = vector.shape_cast %34 : vector<1x1x32xf32> to vector<1x32xf32>
    %36 = vector.extract_strided_slice %18 {offsets = [0, 4, 32], sizes = [1, 1, 32], strides = [1, 1, 1]} : vector<1x8x192xf32> to vector<1x1x32xf32>
    %37 = vector.shape_cast %36 : vector<1x1x32xf32> to vector<1x32xf32>
    %38 = tpu.concatenate %35, %37 in 1 : vector<1x32xf32>, vector<1x32xf32> -> vector<1x64xf32>
    %39 = vector.extract_strided_slice %18 {offsets = [0, 4, 0], sizes = [1, 1, 32], strides = [1, 1, 1]} : vector<1x8x192xf32> to vector<1x1x32xf32>
    %40 = vector.shape_cast %39 : vector<1x1x32xf32> to vector<1x32xf32>
    %41 = vector.extract_strided_slice %18 {offsets = [0, 3, 32], sizes = [1, 1, 32], strides = [1, 1, 1]} : vector<1x8x192xf32> to vector<1x1x32xf32>
    %42 = vector.shape_cast %41 : vector<1x1x32xf32> to vector<1x32xf32>
    %43 = tpu.concatenate %40, %42 in 1 : vector<1x32xf32>, vector<1x32xf32> -> vector<1x64xf32>
    %44 = vector.extract_strided_slice %18 {offsets = [0, 5, 0], sizes = [1, 1, 32], strides = [1, 1, 1]} : vector<1x8x192xf32> to vector<1x1x32xf32>
    %45 = vector.shape_cast %44 : vector<1x1x32xf32> to vector<1x32xf32>
    %46 = vector.extract_strided_slice %18 {offsets = [0, 2, 32], sizes = [1, 1, 32], strides = [1, 1, 1]} : vector<1x8x192xf32> to vector<1x1x32xf32>
    %47 = vector.shape_cast %46 : vector<1x1x32xf32> to vector<1x32xf32>
    %48 = tpu.concatenate %45, %47 in 1 : vector<1x32xf32>, vector<1x32xf32> -> vector<1x64xf32>
    %49 = vector.extract_strided_slice %18 {offsets = [0, 6, 0], sizes = [1, 1, 32], strides = [1, 1, 1]} : vector<1x8x192xf32> to vector<1x1x32xf32>
    %50 = vector.shape_cast %49 : vector<1x1x32xf32> to vector<1x32xf32>
    %51 = vector.extract_strided_slice %18 {offsets = [0, 1, 32], sizes = [1, 1, 32], strides = [1, 1, 1]} : vector<1x8x192xf32> to vector<1x1x32xf32>
    %52 = vector.shape_cast %51 : vector<1x1x32xf32> to vector<1x32xf32>
    %53 = tpu.concatenate %50, %52 in 1 : vector<1x32xf32>, vector<1x32xf32> -> vector<1x64xf32>
    %54 = vector.extract_strided_slice %18 {offsets = [0, 7, 0], sizes = [1, 1, 32], strides = [1, 1, 1]} : vector<1x8x192xf32> to vector<1x1x32xf32>
    %55 = vector.shape_cast %54 : vector<1x1x32xf32> to vector<1x32xf32>
    %56 = vector.extract_strided_slice %18 {offsets = [0, 0, 32], sizes = [1, 1, 32], strides = [1, 1, 1]} : vector<1x8x192xf32> to vector<1x1x32xf32>
    %57 = vector.shape_cast %56 : vector<1x1x32xf32> to vector<1x32xf32>
    %58 = tpu.concatenate %55, %57 in 1 : vector<1x32xf32>, vector<1x32xf32> -> vector<1x64xf32>
    %59 = vector.extract_strided_slice %18 {offsets = [0, 0, 64], sizes = [1, 1, 32], strides = [1, 1, 1]} : vector<1x8x192xf32> to vector<1x1x32xf32>
    %60 = vector.shape_cast %59 : vector<1x1x32xf32> to vector<1x32xf32>
    %61 = vector.extract_strided_slice %18 {offsets = [0, 7, 96], sizes = [1, 1, 32], strides = [1, 1, 1]} : vector<1x8x192xf32> to vector<1x1x32xf32>
    %62 = vector.shape_cast %61 : vector<1x1x32xf32> to vector<1x32xf32>
    %63 = tpu.concatenate %60, %62 in 1 : vector<1x32xf32>, vector<1x32xf32> -> vector<1x64xf32>
    %64 = vector.extract_strided_slice %18 {offsets = [0, 1, 64], sizes = [1, 1, 32], strides = [1, 1, 1]} : vector<1x8x192xf32> to vector<1x1x32xf32>
    %65 = vector.shape_cast %64 : vector<1x1x32xf32> to vector<1x32xf32>
    %66 = vector.extract_strided_slice %18 {offsets = [0, 6, 96], sizes = [1, 1, 32], strides = [1, 1, 1]} : vector<1x8x192xf32> to vector<1x1x32xf32>
    %67 = vector.shape_cast %66 : vector<1x1x32xf32> to vector<1x32xf32>
    %68 = tpu.concatenate %65, %67 in 1 : vector<1x32xf32>, vector<1x32xf32> -> vector<1x64xf32>
    %69 = vector.extract_strided_slice %18 {offsets = [0, 2, 64], sizes = [1, 1, 32], strides = [1, 1, 1]} : vector<1x8x192xf32> to vector<1x1x32xf32>
    %70 = vector.shape_cast %69 : vector<1x1x32xf32> to vector<1x32xf32>
    %71 = vector.extract_strided_slice %18 {offsets = [0, 5, 96], sizes = [1, 1, 32], strides = [1, 1, 1]} : vector<1x8x192xf32> to vector<1x1x32xf32>
    %72 = vector.shape_cast %71 : vector<1x1x32xf32> to vector<1x32xf32>
    %73 = tpu.concatenate %70, %72 in 1 : vector<1x32xf32>, vector<1x32xf32> -> vector<1x64xf32>
    %74 = vector.extract_strided_slice %18 {offsets = [0, 3, 64], sizes = [1, 1, 32], strides = [1, 1, 1]} : vector<1x8x192xf32> to vector<1x1x32xf32>
    %75 = vector.shape_cast %74 : vector<1x1x32xf32> to vector<1x32xf32>
    %76 = vector.extract_strided_slice %18 {offsets = [0, 4, 96], sizes = [1, 1, 32], strides = [1, 1, 1]} : vector<1x8x192xf32> to vector<1x1x32xf32>
    %77 = vector.shape_cast %76 : vector<1x1x32xf32> to vector<1x32xf32>
    %78 = tpu.concatenate %75, %77 in 1 : vector<1x32xf32>, vector<1x32xf32> -> vector<1x64xf32>
    %79 = vector.extract_strided_slice %18 {offsets = [0, 4, 64], sizes = [1, 1, 32], strides = [1, 1, 1]} : vector<1x8x192xf32> to vector<1x1x32xf32>
    %80 = vector.shape_cast %79 : vector<1x1x32xf32> to vector<1x32xf32>
    %81 = vector.extract_strided_slice %18 {offsets = [0, 3, 96], sizes = [1, 1, 32], strides = [1, 1, 1]} : vector<1x8x192xf32> to vector<1x1x32xf32>
    %82 = vector.shape_cast %81 : vector<1x1x32xf32> to vector<1x32xf32>
    %83 = tpu.concatenate %80, %82 in 1 : vector<1x32xf32>, vector<1x32xf32> -> vector<1x64xf32>
    %84 = vector.extract_strided_slice %18 {offsets = [0, 5, 64], sizes = [1, 1, 32], strides = [1, 1, 1]} : vector<1x8x192xf32> to vector<1x1x32xf32>
    %85 = vector.shape_cast %84 : vector<1x1x32xf32> to vector<1x32xf32>
    %86 = vector.extract_strided_slice %18 {offsets = [0, 2, 96], sizes = [1, 1, 32], strides = [1, 1, 1]} : vector<1x8x192xf32> to vector<1x1x32xf32>
    %87 = vector.shape_cast %86 : vector<1x1x32xf32> to vector<1x32xf32>
    %88 = tpu.concatenate %85, %87 in 1 : vector<1x32xf32>, vector<1x32xf32> -> vector<1x64xf32>
    %89 = vector.extract_strided_slice %18 {offsets = [0, 6, 64], sizes = [1, 1, 32], strides = [1, 1, 1]} : vector<1x8x192xf32> to vector<1x1x32xf32>
    %90 = vector.shape_cast %89 : vector<1x1x32xf32> to vector<1x32xf32>
    %91 = vector.extract_strided_slice %18 {offsets = [0, 1, 96], sizes = [1, 1, 32], strides = [1, 1, 1]} : vector<1x8x192xf32> to vector<1x1x32xf32>
    %92 = vector.shape_cast %91 : vector<1x1x32xf32> to vector<1x32xf32>
    %93 = tpu.concatenate %90, %92 in 1 : vector<1x32xf32>, vector<1x32xf32> -> vector<1x64xf32>
    %94 = vector.extract_strided_slice %18 {offsets = [0, 7, 64], sizes = [1, 1, 32], strides = [1, 1, 1]} : vector<1x8x192xf32> to vector<1x1x32xf32>
    %95 = vector.shape_cast %94 : vector<1x1x32xf32> to vector<1x32xf32>
    %96 = vector.extract_strided_slice %18 {offsets = [0, 0, 96], sizes = [1, 1, 32], strides = [1, 1, 1]} : vector<1x8x192xf32> to vector<1x1x32xf32>
    %97 = vector.shape_cast %96 : vector<1x1x32xf32> to vector<1x32xf32>
    %98 = tpu.concatenate %95, %97 in 1 : vector<1x32xf32>, vector<1x32xf32> -> vector<1x64xf32>
    %99 = vector.extract_strided_slice %18 {offsets = [0, 0, 128], sizes = [1, 1, 32], strides = [1, 1, 1]} : vector<1x8x192xf32> to vector<1x1x32xf32>
    %100 = vector.shape_cast %99 : vector<1x1x32xf32> to vector<1x32xf32>
    %101 = vector.extract_strided_slice %18 {offsets = [0, 7, 160], sizes = [1, 1, 32], strides = [1, 1, 1]} : vector<1x8x192xf32> to vector<1x1x32xf32>
    %102 = vector.shape_cast %101 : vector<1x1x32xf32> to vector<1x32xf32>
    %103 = tpu.concatenate %100, %102 in 1 : vector<1x32xf32>, vector<1x32xf32> -> vector<1x64xf32>
    %104 = vector.extract_strided_slice %18 {offsets = [0, 1, 128], sizes = [1, 1, 32], strides = [1, 1, 1]} : vector<1x8x192xf32> to vector<1x1x32xf32>
    %105 = vector.shape_cast %104 : vector<1x1x32xf32> to vector<1x32xf32>
    %106 = vector.extract_strided_slice %18 {offsets = [0, 6, 160], sizes = [1, 1, 32], strides = [1, 1, 1]} : vector<1x8x192xf32> to vector<1x1x32xf32>
    %107 = vector.shape_cast %106 : vector<1x1x32xf32> to vector<1x32xf32>
    %108 = tpu.concatenate %105, %107 in 1 : vector<1x32xf32>, vector<1x32xf32> -> vector<1x64xf32>
    %109 = vector.extract_strided_slice %18 {offsets = [0, 2, 128], sizes = [1, 1, 32], strides = [1, 1, 1]} : vector<1x8x192xf32> to vector<1x1x32xf32>
    %110 = vector.shape_cast %109 : vector<1x1x32xf32> to vector<1x32xf32>
    %111 = vector.extract_strided_slice %18 {offsets = [0, 5, 160], sizes = [1, 1, 32], strides = [1, 1, 1]} : vector<1x8x192xf32> to vector<1x1x32xf32>
    %112 = vector.shape_cast %111 : vector<1x1x32xf32> to vector<1x32xf32>
    %113 = tpu.concatenate %110, %112 in 1 : vector<1x32xf32>, vector<1x32xf32> -> vector<1x64xf32>
    %114 = vector.extract_strided_slice %18 {offsets = [0, 3, 128], sizes = [1, 1, 32], strides = [1, 1, 1]} : vector<1x8x192xf32> to vector<1x1x32xf32>
    %115 = vector.shape_cast %114 : vector<1x1x32xf32> to vector<1x32xf32>
    %116 = vector.extract_strided_slice %18 {offsets = [0, 4, 160], sizes = [1, 1, 32], strides = [1, 1, 1]} : vector<1x8x192xf32> to vector<1x1x32xf32>
    %117 = vector.shape_cast %116 : vector<1x1x32xf32> to vector<1x32xf32>
    %118 = tpu.concatenate %115, %117 in 1 : vector<1x32xf32>, vector<1x32xf32> -> vector<1x64xf32>
    %119 = vector.extract_strided_slice %18 {offsets = [0, 4, 128], sizes = [1, 1, 32], strides = [1, 1, 1]} : vector<1x8x192xf32> to vector<1x1x32xf32>
    %120 = vector.shape_cast %119 : vector<1x1x32xf32> to vector<1x32xf32>
    %121 = vector.extract_strided_slice %18 {offsets = [0, 3, 160], sizes = [1, 1, 32], strides = [1, 1, 1]} : vector<1x8x192xf32> to vector<1x1x32xf32>
    %122 = vector.shape_cast %121 : vector<1x1x32xf32> to vector<1x32xf32>
    %123 = tpu.concatenate %120, %122 in 1 : vector<1x32xf32>, vector<1x32xf32> -> vector<1x64xf32>
    %124 = vector.extract_strided_slice %18 {offsets = [0, 5, 128], sizes = [1, 1, 32], strides = [1, 1, 1]} : vector<1x8x192xf32> to vector<1x1x32xf32>
    %125 = vector.shape_cast %124 : vector<1x1x32xf32> to vector<1x32xf32>
    %126 = vector.extract_strided_slice %18 {offsets = [0, 2, 160], sizes = [1, 1, 32], strides = [1, 1, 1]} : vector<1x8x192xf32> to vector<1x1x32xf32>
    %127 = vector.shape_cast %126 : vector<1x1x32xf32> to vector<1x32xf32>
    %128 = tpu.concatenate %125, %127 in 1 : vector<1x32xf32>, vector<1x32xf32> -> vector<1x64xf32>
    %129 = vector.extract_strided_slice %18 {offsets = [0, 6, 128], sizes = [1, 1, 32], strides = [1, 1, 1]} : vector<1x8x192xf32> to vector<1x1x32xf32>
    %130 = vector.shape_cast %129 : vector<1x1x32xf32> to vector<1x32xf32>
    %131 = vector.extract_strided_slice %18 {offsets = [0, 1, 160], sizes = [1, 1, 32], strides = [1, 1, 1]} : vector<1x8x192xf32> to vector<1x1x32xf32>
    %132 = vector.shape_cast %131 : vector<1x1x32xf32> to vector<1x32xf32>
    %133 = tpu.concatenate %130, %132 in 1 : vector<1x32xf32>, vector<1x32xf32> -> vector<1x64xf32>
    %134 = vector.extract_strided_slice %18 {offsets = [0, 7, 128], sizes = [1, 1, 32], strides = [1, 1, 1]} : vector<1x8x192xf32> to vector<1x1x32xf32>
    %135 = vector.shape_cast %134 : vector<1x1x32xf32> to vector<1x32xf32>
    %136 = vector.extract_strided_slice %18 {offsets = [0, 0, 160], sizes = [1, 1, 32], strides = [1, 1, 1]} : vector<1x8x192xf32> to vector<1x1x32xf32>
    %137 = vector.shape_cast %136 : vector<1x1x32xf32> to vector<1x32xf32>
    %138 = tpu.concatenate %135, %137 in 1 : vector<1x32xf32>, vector<1x32xf32> -> vector<1x64xf32>
    %cst_19 = arith.constant 0.000000e+00 : f32
    %139 = vector.broadcast %cst_19 : f32 to vector<1x64xf32>
    %cst_20 = arith.constant dense<0.000000e+00> : vector<1x192xf32>
    %140 = tpu.matmul %139, %10, %cst_20 {dimension_numbers = #tpu.dot_dimension_numbers<[1], [0], [0], [1], [0, 0, 1, 1], [], []>} : vector<1x64xf32>, vector<64x192xf32>, vector<1x192xf32> -> vector<1x192xf32>
    %141 = vector.extract_strided_slice %140 {offsets = [0, 0], sizes = [1, 64], strides = [1, 1]} : vector<1x192xf32> to vector<1x64xf32>
    %142 = arith.addf %23, %141 : vector<1x64xf32>
    %143 = arith.negf %142 : vector<1x64xf32>
    %144 = math.exp %143 : vector<1x64xf32>
    %cst_21 = arith.constant 1.000000e+00 : f32
    %145 = vector.broadcast %cst_21 : f32 to vector<1x64xf32>
    %146 = arith.addf %145, %144 : vector<1x64xf32>
    %147 = arith.divf %145, %146 : vector<1x64xf32>
    %148 = vector.extract_strided_slice %140 {offsets = [0, 64], sizes = [1, 64], strides = [1, 1]} : vector<1x192xf32> to vector<1x64xf32>
    %149 = arith.addf %63, %148 : vector<1x64xf32>
    %150 = arith.negf %149 : vector<1x64xf32>
    %151 = math.exp %150 : vector<1x64xf32>
    %cst_22 = arith.constant 1.000000e+00 : f32
    %152 = vector.broadcast %cst_22 : f32 to vector<1x64xf32>
    %153 = arith.addf %152, %151 : vector<1x64xf32>
    %154 = arith.divf %152, %153 : vector<1x64xf32>
    %155 = vector.extract_strided_slice %140 {offsets = [0, 128], sizes = [1, 64], strides = [1, 1]} : vector<1x192xf32> to vector<1x64xf32>
    %156 = arith.addf %155, %14 : vector<1x64xf32>
    %157 = arith.mulf %147, %156 : vector<1x64xf32>
    %158 = arith.addf %103, %157 : vector<1x64xf32>
    %159 = math.tanh %158 : vector<1x64xf32>
    %cst_23 = arith.constant 1.000000e+00 : f32
    %160 = vector.broadcast %cst_23 : f32 to vector<1x64xf32>
    %161 = arith.subf %160, %154 : vector<1x64xf32>
    %162 = arith.mulf %161, %159 : vector<1x64xf32>
    %163 = arith.mulf %154, %139 : vector<1x64xf32>
    %164 = arith.addf %162, %163 : vector<1x64xf32>
    %165 = vector.extract_strided_slice %164 {offsets = [0, 0], sizes = [1, 32], strides = [1, 1]} : vector<1x64xf32> to vector<1x32xf32>
    %166 = vector.extract_strided_slice %164 {offsets = [0, 32], sizes = [1, 32], strides = [1, 1]} : vector<1x64xf32> to vector<1x32xf32>
    %cst_24 = arith.constant dense<0.000000e+00> : vector<1x192xf32>
    %167 = tpu.matmul %164, %10, %cst_24 {dimension_numbers = #tpu.dot_dimension_numbers<[1], [0], [0], [1], [0, 0, 1, 1], [], []>} : vector<1x64xf32>, vector<64x192xf32>, vector<1x192xf32> -> vector<1x192xf32>
    %168 = vector.extract_strided_slice %167 {offsets = [0, 0], sizes = [1, 64], strides = [1, 1]} : vector<1x192xf32> to vector<1x64xf32>
    %169 = arith.addf %28, %168 : vector<1x64xf32>
    %170 = arith.negf %169 : vector<1x64xf32>
    %171 = math.exp %170 : vector<1x64xf32>
    %cst_25 = arith.constant 1.000000e+00 : f32
    %172 = vector.broadcast %cst_25 : f32 to vector<1x64xf32>
    %173 = arith.addf %172, %171 : vector<1x64xf32>
    %174 = arith.divf %172, %173 : vector<1x64xf32>
    %175 = vector.extract_strided_slice %167 {offsets = [0, 64], sizes = [1, 64], strides = [1, 1]} : vector<1x192xf32> to vector<1x64xf32>
    %176 = arith.addf %68, %175 : vector<1x64xf32>
    %177 = arith.negf %176 : vector<1x64xf32>
    %178 = math.exp %177 : vector<1x64xf32>
    %cst_26 = arith.constant 1.000000e+00 : f32
    %179 = vector.broadcast %cst_26 : f32 to vector<1x64xf32>
    %180 = arith.addf %179, %178 : vector<1x64xf32>
    %181 = arith.divf %179, %180 : vector<1x64xf32>
    %182 = vector.extract_strided_slice %167 {offsets = [0, 128], sizes = [1, 64], strides = [1, 1]} : vector<1x192xf32> to vector<1x64xf32>
    %183 = arith.addf %182, %14 : vector<1x64xf32>
    %184 = arith.mulf %174, %183 : vector<1x64xf32>
    %185 = arith.addf %108, %184 : vector<1x64xf32>
    %186 = math.tanh %185 : vector<1x64xf32>
    %cst_27 = arith.constant 1.000000e+00 : f32
    %187 = vector.broadcast %cst_27 : f32 to vector<1x64xf32>
    %188 = arith.subf %187, %181 : vector<1x64xf32>
    %189 = arith.mulf %188, %186 : vector<1x64xf32>
    %190 = arith.mulf %181, %164 : vector<1x64xf32>
    %191 = arith.addf %189, %190 : vector<1x64xf32>
    %192 = vector.extract_strided_slice %191 {offsets = [0, 0], sizes = [1, 32], strides = [1, 1]} : vector<1x64xf32> to vector<1x32xf32>
    %193 = vector.extract_strided_slice %191 {offsets = [0, 32], sizes = [1, 32], strides = [1, 1]} : vector<1x64xf32> to vector<1x32xf32>
    %cst_28 = arith.constant dense<0.000000e+00> : vector<1x192xf32>
    %194 = tpu.matmul %191, %10, %cst_28 {dimension_numbers = #tpu.dot_dimension_numbers<[1], [0], [0], [1], [0, 0, 1, 1], [], []>} : vector<1x64xf32>, vector<64x192xf32>, vector<1x192xf32> -> vector<1x192xf32>
    %195 = vector.extract_strided_slice %194 {offsets = [0, 0], sizes = [1, 64], strides = [1, 1]} : vector<1x192xf32> to vector<1x64xf32>
    %196 = arith.addf %33, %195 : vector<1x64xf32>
    %197 = arith.negf %196 : vector<1x64xf32>
    %198 = math.exp %197 : vector<1x64xf32>
    %cst_29 = arith.constant 1.000000e+00 : f32
    %199 = vector.broadcast %cst_29 : f32 to vector<1x64xf32>
    %200 = arith.addf %199, %198 : vector<1x64xf32>
    %201 = arith.divf %199, %200 : vector<1x64xf32>
    %202 = vector.extract_strided_slice %194 {offsets = [0, 64], sizes = [1, 64], strides = [1, 1]} : vector<1x192xf32> to vector<1x64xf32>
    %203 = arith.addf %73, %202 : vector<1x64xf32>
    %204 = arith.negf %203 : vector<1x64xf32>
    %205 = math.exp %204 : vector<1x64xf32>
    %cst_30 = arith.constant 1.000000e+00 : f32
    %206 = vector.broadcast %cst_30 : f32 to vector<1x64xf32>
    %207 = arith.addf %206, %205 : vector<1x64xf32>
    %208 = arith.divf %206, %207 : vector<1x64xf32>
    %209 = vector.extract_strided_slice %194 {offsets = [0, 128], sizes = [1, 64], strides = [1, 1]} : vector<1x192xf32> to vector<1x64xf32>
    %210 = arith.addf %209, %14 : vector<1x64xf32>
    %211 = arith.mulf %201, %210 : vector<1x64xf32>
    %212 = arith.addf %113, %211 : vector<1x64xf32>
    %213 = math.tanh %212 : vector<1x64xf32>
    %cst_31 = arith.constant 1.000000e+00 : f32
    %214 = vector.broadcast %cst_31 : f32 to vector<1x64xf32>
    %215 = arith.subf %214, %208 : vector<1x64xf32>
    %216 = arith.mulf %215, %213 : vector<1x64xf32>
    %217 = arith.mulf %208, %191 : vector<1x64xf32>
    %218 = arith.addf %216, %217 : vector<1x64xf32>
    %219 = vector.extract_strided_slice %218 {offsets = [0, 0], sizes = [1, 32], strides = [1, 1]} : vector<1x64xf32> to vector<1x32xf32>
    %220 = vector.extract_strided_slice %218 {offsets = [0, 32], sizes = [1, 32], strides = [1, 1]} : vector<1x64xf32> to vector<1x32xf32>
    %cst_32 = arith.constant dense<0.000000e+00> : vector<1x192xf32>
    %221 = tpu.matmul %218, %10, %cst_32 {dimension_numbers = #tpu.dot_dimension_numbers<[1], [0], [0], [1], [0, 0, 1, 1], [], []>} : vector<1x64xf32>, vector<64x192xf32>, vector<1x192xf32> -> vector<1x192xf32>
    %222 = vector.extract_strided_slice %221 {offsets = [0, 0], sizes = [1, 64], strides = [1, 1]} : vector<1x192xf32> to vector<1x64xf32>
    %223 = arith.addf %38, %222 : vector<1x64xf32>
    %224 = arith.negf %223 : vector<1x64xf32>
    %225 = math.exp %224 : vector<1x64xf32>
    %cst_33 = arith.constant 1.000000e+00 : f32
    %226 = vector.broadcast %cst_33 : f32 to vector<1x64xf32>
    %227 = arith.addf %226, %225 : vector<1x64xf32>
    %228 = arith.divf %226, %227 : vector<1x64xf32>
    %229 = vector.extract_strided_slice %221 {offsets = [0, 64], sizes = [1, 64], strides = [1, 1]} : vector<1x192xf32> to vector<1x64xf32>
    %230 = arith.addf %78, %229 : vector<1x64xf32>
    %231 = arith.negf %230 : vector<1x64xf32>
    %232 = math.exp %231 : vector<1x64xf32>
    %cst_34 = arith.constant 1.000000e+00 : f32
    %233 = vector.broadcast %cst_34 : f32 to vector<1x64xf32>
    %234 = arith.addf %233, %232 : vector<1x64xf32>
    %235 = arith.divf %233, %234 : vector<1x64xf32>
    %236 = vector.extract_strided_slice %221 {offsets = [0, 128], sizes = [1, 64], strides = [1, 1]} : vector<1x192xf32> to vector<1x64xf32>
    %237 = arith.addf %236, %14 : vector<1x64xf32>
    %238 = arith.mulf %228, %237 : vector<1x64xf32>
    %239 = arith.addf %118, %238 : vector<1x64xf32>
    %240 = math.tanh %239 : vector<1x64xf32>
    %cst_35 = arith.constant 1.000000e+00 : f32
    %241 = vector.broadcast %cst_35 : f32 to vector<1x64xf32>
    %242 = arith.subf %241, %235 : vector<1x64xf32>
    %243 = arith.mulf %242, %240 : vector<1x64xf32>
    %244 = arith.mulf %235, %218 : vector<1x64xf32>
    %245 = arith.addf %243, %244 : vector<1x64xf32>
    %246 = vector.extract_strided_slice %245 {offsets = [0, 0], sizes = [1, 32], strides = [1, 1]} : vector<1x64xf32> to vector<1x32xf32>
    %247 = vector.extract_strided_slice %245 {offsets = [0, 32], sizes = [1, 32], strides = [1, 1]} : vector<1x64xf32> to vector<1x32xf32>
    %cst_36 = arith.constant dense<0.000000e+00> : vector<1x192xf32>
    %248 = tpu.matmul %245, %10, %cst_36 {dimension_numbers = #tpu.dot_dimension_numbers<[1], [0], [0], [1], [0, 0, 1, 1], [], []>} : vector<1x64xf32>, vector<64x192xf32>, vector<1x192xf32> -> vector<1x192xf32>
    %249 = vector.extract_strided_slice %248 {offsets = [0, 0], sizes = [1, 64], strides = [1, 1]} : vector<1x192xf32> to vector<1x64xf32>
    %250 = arith.addf %43, %249 : vector<1x64xf32>
    %251 = arith.negf %250 : vector<1x64xf32>
    %252 = math.exp %251 : vector<1x64xf32>
    %cst_37 = arith.constant 1.000000e+00 : f32
    %253 = vector.broadcast %cst_37 : f32 to vector<1x64xf32>
    %254 = arith.addf %253, %252 : vector<1x64xf32>
    %255 = arith.divf %253, %254 : vector<1x64xf32>
    %256 = vector.extract_strided_slice %248 {offsets = [0, 64], sizes = [1, 64], strides = [1, 1]} : vector<1x192xf32> to vector<1x64xf32>
    %257 = arith.addf %83, %256 : vector<1x64xf32>
    %258 = arith.negf %257 : vector<1x64xf32>
    %259 = math.exp %258 : vector<1x64xf32>
    %cst_38 = arith.constant 1.000000e+00 : f32
    %260 = vector.broadcast %cst_38 : f32 to vector<1x64xf32>
    %261 = arith.addf %260, %259 : vector<1x64xf32>
    %262 = arith.divf %260, %261 : vector<1x64xf32>
    %263 = vector.extract_strided_slice %248 {offsets = [0, 128], sizes = [1, 64], strides = [1, 1]} : vector<1x192xf32> to vector<1x64xf32>
    %264 = arith.addf %263, %14 : vector<1x64xf32>
    %265 = arith.mulf %255, %264 : vector<1x64xf32>
    %266 = arith.addf %123, %265 : vector<1x64xf32>
    %267 = math.tanh %266 : vector<1x64xf32>
    %cst_39 = arith.constant 1.000000e+00 : f32
    %268 = vector.broadcast %cst_39 : f32 to vector<1x64xf32>
    %269 = arith.subf %268, %262 : vector<1x64xf32>
    %270 = arith.mulf %269, %267 : vector<1x64xf32>
    %271 = arith.mulf %262, %245 : vector<1x64xf32>
    %272 = arith.addf %270, %271 : vector<1x64xf32>
    %273 = vector.extract_strided_slice %272 {offsets = [0, 0], sizes = [1, 32], strides = [1, 1]} : vector<1x64xf32> to vector<1x32xf32>
    %274 = vector.extract_strided_slice %272 {offsets = [0, 32], sizes = [1, 32], strides = [1, 1]} : vector<1x64xf32> to vector<1x32xf32>
    %cst_40 = arith.constant dense<0.000000e+00> : vector<1x192xf32>
    %275 = tpu.matmul %272, %10, %cst_40 {dimension_numbers = #tpu.dot_dimension_numbers<[1], [0], [0], [1], [0, 0, 1, 1], [], []>} : vector<1x64xf32>, vector<64x192xf32>, vector<1x192xf32> -> vector<1x192xf32>
    %276 = vector.extract_strided_slice %275 {offsets = [0, 0], sizes = [1, 64], strides = [1, 1]} : vector<1x192xf32> to vector<1x64xf32>
    %277 = arith.addf %48, %276 : vector<1x64xf32>
    %278 = arith.negf %277 : vector<1x64xf32>
    %279 = math.exp %278 : vector<1x64xf32>
    %cst_41 = arith.constant 1.000000e+00 : f32
    %280 = vector.broadcast %cst_41 : f32 to vector<1x64xf32>
    %281 = arith.addf %280, %279 : vector<1x64xf32>
    %282 = arith.divf %280, %281 : vector<1x64xf32>
    %283 = vector.extract_strided_slice %275 {offsets = [0, 64], sizes = [1, 64], strides = [1, 1]} : vector<1x192xf32> to vector<1x64xf32>
    %284 = arith.addf %88, %283 : vector<1x64xf32>
    %285 = arith.negf %284 : vector<1x64xf32>
    %286 = math.exp %285 : vector<1x64xf32>
    %cst_42 = arith.constant 1.000000e+00 : f32
    %287 = vector.broadcast %cst_42 : f32 to vector<1x64xf32>
    %288 = arith.addf %287, %286 : vector<1x64xf32>
    %289 = arith.divf %287, %288 : vector<1x64xf32>
    %290 = vector.extract_strided_slice %275 {offsets = [0, 128], sizes = [1, 64], strides = [1, 1]} : vector<1x192xf32> to vector<1x64xf32>
    %291 = arith.addf %290, %14 : vector<1x64xf32>
    %292 = arith.mulf %282, %291 : vector<1x64xf32>
    %293 = arith.addf %128, %292 : vector<1x64xf32>
    %294 = math.tanh %293 : vector<1x64xf32>
    %cst_43 = arith.constant 1.000000e+00 : f32
    %295 = vector.broadcast %cst_43 : f32 to vector<1x64xf32>
    %296 = arith.subf %295, %289 : vector<1x64xf32>
    %297 = arith.mulf %296, %294 : vector<1x64xf32>
    %298 = arith.mulf %289, %272 : vector<1x64xf32>
    %299 = arith.addf %297, %298 : vector<1x64xf32>
    %300 = vector.extract_strided_slice %299 {offsets = [0, 0], sizes = [1, 32], strides = [1, 1]} : vector<1x64xf32> to vector<1x32xf32>
    %301 = vector.extract_strided_slice %299 {offsets = [0, 32], sizes = [1, 32], strides = [1, 1]} : vector<1x64xf32> to vector<1x32xf32>
    %cst_44 = arith.constant dense<0.000000e+00> : vector<1x192xf32>
    %302 = tpu.matmul %299, %10, %cst_44 {dimension_numbers = #tpu.dot_dimension_numbers<[1], [0], [0], [1], [0, 0, 1, 1], [], []>} : vector<1x64xf32>, vector<64x192xf32>, vector<1x192xf32> -> vector<1x192xf32>
    %303 = vector.extract_strided_slice %302 {offsets = [0, 0], sizes = [1, 64], strides = [1, 1]} : vector<1x192xf32> to vector<1x64xf32>
    %304 = arith.addf %53, %303 : vector<1x64xf32>
    %305 = arith.negf %304 : vector<1x64xf32>
    %306 = math.exp %305 : vector<1x64xf32>
    %cst_45 = arith.constant 1.000000e+00 : f32
    %307 = vector.broadcast %cst_45 : f32 to vector<1x64xf32>
    %308 = arith.addf %307, %306 : vector<1x64xf32>
    %309 = arith.divf %307, %308 : vector<1x64xf32>
    %310 = vector.extract_strided_slice %302 {offsets = [0, 64], sizes = [1, 64], strides = [1, 1]} : vector<1x192xf32> to vector<1x64xf32>
    %311 = arith.addf %93, %310 : vector<1x64xf32>
    %312 = arith.negf %311 : vector<1x64xf32>
    %313 = math.exp %312 : vector<1x64xf32>
    %cst_46 = arith.constant 1.000000e+00 : f32
    %314 = vector.broadcast %cst_46 : f32 to vector<1x64xf32>
    %315 = arith.addf %314, %313 : vector<1x64xf32>
    %316 = arith.divf %314, %315 : vector<1x64xf32>
    %317 = vector.extract_strided_slice %302 {offsets = [0, 128], sizes = [1, 64], strides = [1, 1]} : vector<1x192xf32> to vector<1x64xf32>
    %318 = arith.addf %317, %14 : vector<1x64xf32>
    %319 = arith.mulf %309, %318 : vector<1x64xf32>
    %320 = arith.addf %133, %319 : vector<1x64xf32>
    %321 = math.tanh %320 : vector<1x64xf32>
    %cst_47 = arith.constant 1.000000e+00 : f32
    %322 = vector.broadcast %cst_47 : f32 to vector<1x64xf32>
    %323 = arith.subf %322, %316 : vector<1x64xf32>
    %324 = arith.mulf %323, %321 : vector<1x64xf32>
    %325 = arith.mulf %316, %299 : vector<1x64xf32>
    %326 = arith.addf %324, %325 : vector<1x64xf32>
    %327 = vector.extract_strided_slice %326 {offsets = [0, 0], sizes = [1, 32], strides = [1, 1]} : vector<1x64xf32> to vector<1x32xf32>
    %328 = vector.extract_strided_slice %326 {offsets = [0, 32], sizes = [1, 32], strides = [1, 1]} : vector<1x64xf32> to vector<1x32xf32>
    %cst_48 = arith.constant dense<0.000000e+00> : vector<1x192xf32>
    %329 = tpu.matmul %326, %10, %cst_48 {dimension_numbers = #tpu.dot_dimension_numbers<[1], [0], [0], [1], [0, 0, 1, 1], [], []>} : vector<1x64xf32>, vector<64x192xf32>, vector<1x192xf32> -> vector<1x192xf32>
    %330 = vector.extract_strided_slice %329 {offsets = [0, 0], sizes = [1, 64], strides = [1, 1]} : vector<1x192xf32> to vector<1x64xf32>
    %331 = arith.addf %58, %330 : vector<1x64xf32>
    %332 = arith.negf %331 : vector<1x64xf32>
    %333 = math.exp %332 : vector<1x64xf32>
    %cst_49 = arith.constant 1.000000e+00 : f32
    %334 = vector.broadcast %cst_49 : f32 to vector<1x64xf32>
    %335 = arith.addf %334, %333 : vector<1x64xf32>
    %336 = arith.divf %334, %335 : vector<1x64xf32>
    %337 = vector.extract_strided_slice %329 {offsets = [0, 64], sizes = [1, 64], strides = [1, 1]} : vector<1x192xf32> to vector<1x64xf32>
    %338 = arith.addf %98, %337 : vector<1x64xf32>
    %339 = arith.negf %338 : vector<1x64xf32>
    %340 = math.exp %339 : vector<1x64xf32>
    %cst_50 = arith.constant 1.000000e+00 : f32
    %341 = vector.broadcast %cst_50 : f32 to vector<1x64xf32>
    %342 = arith.addf %341, %340 : vector<1x64xf32>
    %343 = arith.divf %341, %342 : vector<1x64xf32>
    %344 = vector.extract_strided_slice %329 {offsets = [0, 128], sizes = [1, 64], strides = [1, 1]} : vector<1x192xf32> to vector<1x64xf32>
    %345 = arith.addf %344, %14 : vector<1x64xf32>
    %346 = arith.mulf %336, %345 : vector<1x64xf32>
    %347 = arith.addf %138, %346 : vector<1x64xf32>
    %348 = math.tanh %347 : vector<1x64xf32>
    %cst_51 = arith.constant 1.000000e+00 : f32
    %349 = vector.broadcast %cst_51 : f32 to vector<1x64xf32>
    %350 = arith.subf %349, %343 : vector<1x64xf32>
    %351 = arith.mulf %350, %348 : vector<1x64xf32>
    %352 = arith.mulf %343, %326 : vector<1x64xf32>
    %353 = arith.addf %351, %352 : vector<1x64xf32>
    %354 = vector.extract_strided_slice %353 {offsets = [0, 0], sizes = [1, 32], strides = [1, 1]} : vector<1x64xf32> to vector<1x32xf32>
    %355 = vector.extract_strided_slice %353 {offsets = [0, 32], sizes = [1, 32], strides = [1, 1]} : vector<1x64xf32> to vector<1x32xf32>
    %356 = tpu.concatenate %165, %355 in 1 : vector<1x32xf32>, vector<1x32xf32> -> vector<1x64xf32>
    %357 = tpu.concatenate %192, %328 in 1 : vector<1x32xf32>, vector<1x32xf32> -> vector<1x64xf32>
    %358 = tpu.concatenate %219, %301 in 1 : vector<1x32xf32>, vector<1x32xf32> -> vector<1x64xf32>
    %359 = tpu.concatenate %246, %274 in 1 : vector<1x32xf32>, vector<1x32xf32> -> vector<1x64xf32>
    %360 = tpu.concatenate %273, %247 in 1 : vector<1x32xf32>, vector<1x32xf32> -> vector<1x64xf32>
    %361 = tpu.concatenate %300, %220 in 1 : vector<1x32xf32>, vector<1x32xf32> -> vector<1x64xf32>
    %362 = tpu.concatenate %327, %193 in 1 : vector<1x32xf32>, vector<1x32xf32> -> vector<1x64xf32>
    %363 = tpu.concatenate %354, %166 in 1 : vector<1x32xf32>, vector<1x32xf32> -> vector<1x64xf32>
    %364 = vector.shape_cast %356 : vector<1x64xf32> to vector<1x1x64xf32>
    %365 = vector.shape_cast %357 : vector<1x64xf32> to vector<1x1x64xf32>
    %366 = vector.shape_cast %358 : vector<1x64xf32> to vector<1x1x64xf32>
    %367 = vector.shape_cast %359 : vector<1x64xf32> to vector<1x1x64xf32>
    %368 = vector.shape_cast %360 : vector<1x64xf32> to vector<1x1x64xf32>
    %369 = vector.shape_cast %361 : vector<1x64xf32> to vector<1x1x64xf32>
    %370 = vector.shape_cast %362 : vector<1x64xf32> to vector<1x1x64xf32>
    %371 = vector.shape_cast %363 : vector<1x64xf32> to vector<1x1x64xf32>
    %372 = tpu.concatenate %364, %365, %366, %367, %368, %369, %370, %371 in 1 : vector<1x1x64xf32>, vector<1x1x64xf32>, vector<1x1x64xf32>, vector<1x1x64xf32>, vector<1x1x64xf32>, vector<1x1x64xf32>, vector<1x1x64xf32>, vector<1x1x64xf32> -> vector<1x8x64xf32>
    %373 = vector.shape_cast %372 : vector<1x8x64xf32> to vector<8x64xf32>
    %c0_52 = arith.constant 0 : index
    %c0_53 = arith.constant 0 : index
    %c0_54 = arith.constant 0 : index
    %374 = vector.load %arg5[%c0_52, %c0_53, %c0_54] : memref<2x64x192xf32, #tpu.memory_space<vmem>>, vector<1x64x192xf32>
    %375 = vector.shape_cast %374 : vector<1x64x192xf32> to vector<64x192xf32>
    %c1 = arith.constant 1 : index
    %c0_55 = arith.constant 0 : index
    %c0_56 = arith.constant 0 : index
    %376 = vector.load %arg6[%c1, %c0_55, %c0_56] : memref<3x64x192xf32, #tpu.memory_space<vmem>>, vector<1x64x192xf32>
    %377 = vector.shape_cast %376 : vector<1x64x192xf32> to vector<64x192xf32>
    %c1_57 = arith.constant 1 : index
    %c0_58 = arith.constant 0 : index
    %c0_59 = arith.constant 0 : index
    %378 = vector.load %arg7[%c1_57, %c0_58, %c0_59] : memref<3x1x192xf32, #tpu.memory_space<vmem>>, vector<1x1x192xf32>
    %379 = vector.shape_cast %378 : vector<1x1x192xf32> to vector<1x192xf32>
    %c1_60 = arith.constant 1 : index
    %c0_61 = arith.constant 0 : index
    %c0_62 = arith.constant 0 : index
    %380 = vector.load %arg8[%c1_60, %c0_61, %c0_62] : memref<3x1x64xf32, #tpu.memory_space<vmem>>, vector<1x1x64xf32>
    %381 = vector.shape_cast %380 : vector<1x1x64xf32> to vector<1x64xf32>
    %cst_63 = arith.constant dense<0.000000e+00> : vector<8x192xf32>
    %382 = tpu.matmul %373, %375, %cst_63 {dimension_numbers = #tpu.dot_dimension_numbers<[1], [0], [0], [1], [0, 0, 1, 1], [], []>} : vector<8x64xf32>, vector<64x192xf32>, vector<8x192xf32> -> vector<8x192xf32>
    %383 = vector.broadcast %379 : vector<1x192xf32> to vector<8x192xf32>
    %384 = arith.addf %382, %383 : vector<8x192xf32>
    %385 = vector.shape_cast %384 : vector<8x192xf32> to vector<1x8x192xf32>
    %386 = vector.extract_strided_slice %385 {offsets = [0, 0, 0], sizes = [1, 1, 32], strides = [1, 1, 1]} : vector<1x8x192xf32> to vector<1x1x32xf32>
    %387 = vector.shape_cast %386 : vector<1x1x32xf32> to vector<1x32xf32>
    %388 = vector.extract_strided_slice %385 {offsets = [0, 7, 32], sizes = [1, 1, 32], strides = [1, 1, 1]} : vector<1x8x192xf32> to vector<1x1x32xf32>
    %389 = vector.shape_cast %388 : vector<1x1x32xf32> to vector<1x32xf32>
    %390 = tpu.concatenate %387, %389 in 1 : vector<1x32xf32>, vector<1x32xf32> -> vector<1x64xf32>
    %391 = vector.extract_strided_slice %385 {offsets = [0, 1, 0], sizes = [1, 1, 32], strides = [1, 1, 1]} : vector<1x8x192xf32> to vector<1x1x32xf32>
    %392 = vector.shape_cast %391 : vector<1x1x32xf32> to vector<1x32xf32>
    %393 = vector.extract_strided_slice %385 {offsets = [0, 6, 32], sizes = [1, 1, 32], strides = [1, 1, 1]} : vector<1x8x192xf32> to vector<1x1x32xf32>
    %394 = vector.shape_cast %393 : vector<1x1x32xf32> to vector<1x32xf32>
    %395 = tpu.concatenate %392, %394 in 1 : vector<1x32xf32>, vector<1x32xf32> -> vector<1x64xf32>
    %396 = vector.extract_strided_slice %385 {offsets = [0, 2, 0], sizes = [1, 1, 32], strides = [1, 1, 1]} : vector<1x8x192xf32> to vector<1x1x32xf32>
    %397 = vector.shape_cast %396 : vector<1x1x32xf32> to vector<1x32xf32>
    %398 = vector.extract_strided_slice %385 {offsets = [0, 5, 32], sizes = [1, 1, 32], strides = [1, 1, 1]} : vector<1x8x192xf32> to vector<1x1x32xf32>
    %399 = vector.shape_cast %398 : vector<1x1x32xf32> to vector<1x32xf32>
    %400 = tpu.concatenate %397, %399 in 1 : vector<1x32xf32>, vector<1x32xf32> -> vector<1x64xf32>
    %401 = vector.extract_strided_slice %385 {offsets = [0, 3, 0], sizes = [1, 1, 32], strides = [1, 1, 1]} : vector<1x8x192xf32> to vector<1x1x32xf32>
    %402 = vector.shape_cast %401 : vector<1x1x32xf32> to vector<1x32xf32>
    %403 = vector.extract_strided_slice %385 {offsets = [0, 4, 32], sizes = [1, 1, 32], strides = [1, 1, 1]} : vector<1x8x192xf32> to vector<1x1x32xf32>
    %404 = vector.shape_cast %403 : vector<1x1x32xf32> to vector<1x32xf32>
    %405 = tpu.concatenate %402, %404 in 1 : vector<1x32xf32>, vector<1x32xf32> -> vector<1x64xf32>
    %406 = vector.extract_strided_slice %385 {offsets = [0, 4, 0], sizes = [1, 1, 32], strides = [1, 1, 1]} : vector<1x8x192xf32> to vector<1x1x32xf32>
    %407 = vector.shape_cast %406 : vector<1x1x32xf32> to vector<1x32xf32>
    %408 = vector.extract_strided_slice %385 {offsets = [0, 3, 32], sizes = [1, 1, 32], strides = [1, 1, 1]} : vector<1x8x192xf32> to vector<1x1x32xf32>
    %409 = vector.shape_cast %408 : vector<1x1x32xf32> to vector<1x32xf32>
    %410 = tpu.concatenate %407, %409 in 1 : vector<1x32xf32>, vector<1x32xf32> -> vector<1x64xf32>
    %411 = vector.extract_strided_slice %385 {offsets = [0, 5, 0], sizes = [1, 1, 32], strides = [1, 1, 1]} : vector<1x8x192xf32> to vector<1x1x32xf32>
    %412 = vector.shape_cast %411 : vector<1x1x32xf32> to vector<1x32xf32>
    %413 = vector.extract_strided_slice %385 {offsets = [0, 2, 32], sizes = [1, 1, 32], strides = [1, 1, 1]} : vector<1x8x192xf32> to vector<1x1x32xf32>
    %414 = vector.shape_cast %413 : vector<1x1x32xf32> to vector<1x32xf32>
    %415 = tpu.concatenate %412, %414 in 1 : vector<1x32xf32>, vector<1x32xf32> -> vector<1x64xf32>
    %416 = vector.extract_strided_slice %385 {offsets = [0, 6, 0], sizes = [1, 1, 32], strides = [1, 1, 1]} : vector<1x8x192xf32> to vector<1x1x32xf32>
    %417 = vector.shape_cast %416 : vector<1x1x32xf32> to vector<1x32xf32>
    %418 = vector.extract_strided_slice %385 {offsets = [0, 1, 32], sizes = [1, 1, 32], strides = [1, 1, 1]} : vector<1x8x192xf32> to vector<1x1x32xf32>
    %419 = vector.shape_cast %418 : vector<1x1x32xf32> to vector<1x32xf32>
    %420 = tpu.concatenate %417, %419 in 1 : vector<1x32xf32>, vector<1x32xf32> -> vector<1x64xf32>
    %421 = vector.extract_strided_slice %385 {offsets = [0, 7, 0], sizes = [1, 1, 32], strides = [1, 1, 1]} : vector<1x8x192xf32> to vector<1x1x32xf32>
    %422 = vector.shape_cast %421 : vector<1x1x32xf32> to vector<1x32xf32>
    %423 = vector.extract_strided_slice %385 {offsets = [0, 0, 32], sizes = [1, 1, 32], strides = [1, 1, 1]} : vector<1x8x192xf32> to vector<1x1x32xf32>
    %424 = vector.shape_cast %423 : vector<1x1x32xf32> to vector<1x32xf32>
    %425 = tpu.concatenate %422, %424 in 1 : vector<1x32xf32>, vector<1x32xf32> -> vector<1x64xf32>
    %426 = vector.extract_strided_slice %385 {offsets = [0, 0, 64], sizes = [1, 1, 32], strides = [1, 1, 1]} : vector<1x8x192xf32> to vector<1x1x32xf32>
    %427 = vector.shape_cast %426 : vector<1x1x32xf32> to vector<1x32xf32>
    %428 = vector.extract_strided_slice %385 {offsets = [0, 7, 96], sizes = [1, 1, 32], strides = [1, 1, 1]} : vector<1x8x192xf32> to vector<1x1x32xf32>
    %429 = vector.shape_cast %428 : vector<1x1x32xf32> to vector<1x32xf32>
    %430 = tpu.concatenate %427, %429 in 1 : vector<1x32xf32>, vector<1x32xf32> -> vector<1x64xf32>
    %431 = vector.extract_strided_slice %385 {offsets = [0, 1, 64], sizes = [1, 1, 32], strides = [1, 1, 1]} : vector<1x8x192xf32> to vector<1x1x32xf32>
    %432 = vector.shape_cast %431 : vector<1x1x32xf32> to vector<1x32xf32>
    %433 = vector.extract_strided_slice %385 {offsets = [0, 6, 96], sizes = [1, 1, 32], strides = [1, 1, 1]} : vector<1x8x192xf32> to vector<1x1x32xf32>
    %434 = vector.shape_cast %433 : vector<1x1x32xf32> to vector<1x32xf32>
    %435 = tpu.concatenate %432, %434 in 1 : vector<1x32xf32>, vector<1x32xf32> -> vector<1x64xf32>
    %436 = vector.extract_strided_slice %385 {offsets = [0, 2, 64], sizes = [1, 1, 32], strides = [1, 1, 1]} : vector<1x8x192xf32> to vector<1x1x32xf32>
    %437 = vector.shape_cast %436 : vector<1x1x32xf32> to vector<1x32xf32>
    %438 = vector.extract_strided_slice %385 {offsets = [0, 5, 96], sizes = [1, 1, 32], strides = [1, 1, 1]} : vector<1x8x192xf32> to vector<1x1x32xf32>
    %439 = vector.shape_cast %438 : vector<1x1x32xf32> to vector<1x32xf32>
    %440 = tpu.concatenate %437, %439 in 1 : vector<1x32xf32>, vector<1x32xf32> -> vector<1x64xf32>
    %441 = vector.extract_strided_slice %385 {offsets = [0, 3, 64], sizes = [1, 1, 32], strides = [1, 1, 1]} : vector<1x8x192xf32> to vector<1x1x32xf32>
    %442 = vector.shape_cast %441 : vector<1x1x32xf32> to vector<1x32xf32>
    %443 = vector.extract_strided_slice %385 {offsets = [0, 4, 96], sizes = [1, 1, 32], strides = [1, 1, 1]} : vector<1x8x192xf32> to vector<1x1x32xf32>
    %444 = vector.shape_cast %443 : vector<1x1x32xf32> to vector<1x32xf32>
    %445 = tpu.concatenate %442, %444 in 1 : vector<1x32xf32>, vector<1x32xf32> -> vector<1x64xf32>
    %446 = vector.extract_strided_slice %385 {offsets = [0, 4, 64], sizes = [1, 1, 32], strides = [1, 1, 1]} : vector<1x8x192xf32> to vector<1x1x32xf32>
    %447 = vector.shape_cast %446 : vector<1x1x32xf32> to vector<1x32xf32>
    %448 = vector.extract_strided_slice %385 {offsets = [0, 3, 96], sizes = [1, 1, 32], strides = [1, 1, 1]} : vector<1x8x192xf32> to vector<1x1x32xf32>
    %449 = vector.shape_cast %448 : vector<1x1x32xf32> to vector<1x32xf32>
    %450 = tpu.concatenate %447, %449 in 1 : vector<1x32xf32>, vector<1x32xf32> -> vector<1x64xf32>
    %451 = vector.extract_strided_slice %385 {offsets = [0, 5, 64], sizes = [1, 1, 32], strides = [1, 1, 1]} : vector<1x8x192xf32> to vector<1x1x32xf32>
    %452 = vector.shape_cast %451 : vector<1x1x32xf32> to vector<1x32xf32>
    %453 = vector.extract_strided_slice %385 {offsets = [0, 2, 96], sizes = [1, 1, 32], strides = [1, 1, 1]} : vector<1x8x192xf32> to vector<1x1x32xf32>
    %454 = vector.shape_cast %453 : vector<1x1x32xf32> to vector<1x32xf32>
    %455 = tpu.concatenate %452, %454 in 1 : vector<1x32xf32>, vector<1x32xf32> -> vector<1x64xf32>
    %456 = vector.extract_strided_slice %385 {offsets = [0, 6, 64], sizes = [1, 1, 32], strides = [1, 1, 1]} : vector<1x8x192xf32> to vector<1x1x32xf32>
    %457 = vector.shape_cast %456 : vector<1x1x32xf32> to vector<1x32xf32>
    %458 = vector.extract_strided_slice %385 {offsets = [0, 1, 96], sizes = [1, 1, 32], strides = [1, 1, 1]} : vector<1x8x192xf32> to vector<1x1x32xf32>
    %459 = vector.shape_cast %458 : vector<1x1x32xf32> to vector<1x32xf32>
    %460 = tpu.concatenate %457, %459 in 1 : vector<1x32xf32>, vector<1x32xf32> -> vector<1x64xf32>
    %461 = vector.extract_strided_slice %385 {offsets = [0, 7, 64], sizes = [1, 1, 32], strides = [1, 1, 1]} : vector<1x8x192xf32> to vector<1x1x32xf32>
    %462 = vector.shape_cast %461 : vector<1x1x32xf32> to vector<1x32xf32>
    %463 = vector.extract_strided_slice %385 {offsets = [0, 0, 96], sizes = [1, 1, 32], strides = [1, 1, 1]} : vector<1x8x192xf32> to vector<1x1x32xf32>
    %464 = vector.shape_cast %463 : vector<1x1x32xf32> to vector<1x32xf32>
    %465 = tpu.concatenate %462, %464 in 1 : vector<1x32xf32>, vector<1x32xf32> -> vector<1x64xf32>
    %466 = vector.extract_strided_slice %385 {offsets = [0, 0, 128], sizes = [1, 1, 32], strides = [1, 1, 1]} : vector<1x8x192xf32> to vector<1x1x32xf32>
    %467 = vector.shape_cast %466 : vector<1x1x32xf32> to vector<1x32xf32>
    %468 = vector.extract_strided_slice %385 {offsets = [0, 7, 160], sizes = [1, 1, 32], strides = [1, 1, 1]} : vector<1x8x192xf32> to vector<1x1x32xf32>
    %469 = vector.shape_cast %468 : vector<1x1x32xf32> to vector<1x32xf32>
    %470 = tpu.concatenate %467, %469 in 1 : vector<1x32xf32>, vector<1x32xf32> -> vector<1x64xf32>
    %471 = vector.extract_strided_slice %385 {offsets = [0, 1, 128], sizes = [1, 1, 32], strides = [1, 1, 1]} : vector<1x8x192xf32> to vector<1x1x32xf32>
    %472 = vector.shape_cast %471 : vector<1x1x32xf32> to vector<1x32xf32>
    %473 = vector.extract_strided_slice %385 {offsets = [0, 6, 160], sizes = [1, 1, 32], strides = [1, 1, 1]} : vector<1x8x192xf32> to vector<1x1x32xf32>
    %474 = vector.shape_cast %473 : vector<1x1x32xf32> to vector<1x32xf32>
    %475 = tpu.concatenate %472, %474 in 1 : vector<1x32xf32>, vector<1x32xf32> -> vector<1x64xf32>
    %476 = vector.extract_strided_slice %385 {offsets = [0, 2, 128], sizes = [1, 1, 32], strides = [1, 1, 1]} : vector<1x8x192xf32> to vector<1x1x32xf32>
    %477 = vector.shape_cast %476 : vector<1x1x32xf32> to vector<1x32xf32>
    %478 = vector.extract_strided_slice %385 {offsets = [0, 5, 160], sizes = [1, 1, 32], strides = [1, 1, 1]} : vector<1x8x192xf32> to vector<1x1x32xf32>
    %479 = vector.shape_cast %478 : vector<1x1x32xf32> to vector<1x32xf32>
    %480 = tpu.concatenate %477, %479 in 1 : vector<1x32xf32>, vector<1x32xf32> -> vector<1x64xf32>
    %481 = vector.extract_strided_slice %385 {offsets = [0, 3, 128], sizes = [1, 1, 32], strides = [1, 1, 1]} : vector<1x8x192xf32> to vector<1x1x32xf32>
    %482 = vector.shape_cast %481 : vector<1x1x32xf32> to vector<1x32xf32>
    %483 = vector.extract_strided_slice %385 {offsets = [0, 4, 160], sizes = [1, 1, 32], strides = [1, 1, 1]} : vector<1x8x192xf32> to vector<1x1x32xf32>
    %484 = vector.shape_cast %483 : vector<1x1x32xf32> to vector<1x32xf32>
    %485 = tpu.concatenate %482, %484 in 1 : vector<1x32xf32>, vector<1x32xf32> -> vector<1x64xf32>
    %486 = vector.extract_strided_slice %385 {offsets = [0, 4, 128], sizes = [1, 1, 32], strides = [1, 1, 1]} : vector<1x8x192xf32> to vector<1x1x32xf32>
    %487 = vector.shape_cast %486 : vector<1x1x32xf32> to vector<1x32xf32>
    %488 = vector.extract_strided_slice %385 {offsets = [0, 3, 160], sizes = [1, 1, 32], strides = [1, 1, 1]} : vector<1x8x192xf32> to vector<1x1x32xf32>
    %489 = vector.shape_cast %488 : vector<1x1x32xf32> to vector<1x32xf32>
    %490 = tpu.concatenate %487, %489 in 1 : vector<1x32xf32>, vector<1x32xf32> -> vector<1x64xf32>
    %491 = vector.extract_strided_slice %385 {offsets = [0, 5, 128], sizes = [1, 1, 32], strides = [1, 1, 1]} : vector<1x8x192xf32> to vector<1x1x32xf32>
    %492 = vector.shape_cast %491 : vector<1x1x32xf32> to vector<1x32xf32>
    %493 = vector.extract_strided_slice %385 {offsets = [0, 2, 160], sizes = [1, 1, 32], strides = [1, 1, 1]} : vector<1x8x192xf32> to vector<1x1x32xf32>
    %494 = vector.shape_cast %493 : vector<1x1x32xf32> to vector<1x32xf32>
    %495 = tpu.concatenate %492, %494 in 1 : vector<1x32xf32>, vector<1x32xf32> -> vector<1x64xf32>
    %496 = vector.extract_strided_slice %385 {offsets = [0, 6, 128], sizes = [1, 1, 32], strides = [1, 1, 1]} : vector<1x8x192xf32> to vector<1x1x32xf32>
    %497 = vector.shape_cast %496 : vector<1x1x32xf32> to vector<1x32xf32>
    %498 = vector.extract_strided_slice %385 {offsets = [0, 1, 160], sizes = [1, 1, 32], strides = [1, 1, 1]} : vector<1x8x192xf32> to vector<1x1x32xf32>
    %499 = vector.shape_cast %498 : vector<1x1x32xf32> to vector<1x32xf32>
    %500 = tpu.concatenate %497, %499 in 1 : vector<1x32xf32>, vector<1x32xf32> -> vector<1x64xf32>
    %501 = vector.extract_strided_slice %385 {offsets = [0, 7, 128], sizes = [1, 1, 32], strides = [1, 1, 1]} : vector<1x8x192xf32> to vector<1x1x32xf32>
    %502 = vector.shape_cast %501 : vector<1x1x32xf32> to vector<1x32xf32>
    %503 = vector.extract_strided_slice %385 {offsets = [0, 0, 160], sizes = [1, 1, 32], strides = [1, 1, 1]} : vector<1x8x192xf32> to vector<1x1x32xf32>
    %504 = vector.shape_cast %503 : vector<1x1x32xf32> to vector<1x32xf32>
    %505 = tpu.concatenate %502, %504 in 1 : vector<1x32xf32>, vector<1x32xf32> -> vector<1x64xf32>
    %cst_64 = arith.constant 0.000000e+00 : f32
    %506 = vector.broadcast %cst_64 : f32 to vector<1x64xf32>
    %cst_65 = arith.constant dense<0.000000e+00> : vector<1x192xf32>
    %507 = tpu.matmul %506, %377, %cst_65 {dimension_numbers = #tpu.dot_dimension_numbers<[1], [0], [0], [1], [0, 0, 1, 1], [], []>} : vector<1x64xf32>, vector<64x192xf32>, vector<1x192xf32> -> vector<1x192xf32>
    %508 = vector.extract_strided_slice %507 {offsets = [0, 0], sizes = [1, 64], strides = [1, 1]} : vector<1x192xf32> to vector<1x64xf32>
    %509 = arith.addf %390, %508 : vector<1x64xf32>
    %510 = arith.negf %509 : vector<1x64xf32>
    %511 = math.exp %510 : vector<1x64xf32>
    %cst_66 = arith.constant 1.000000e+00 : f32
    %512 = vector.broadcast %cst_66 : f32 to vector<1x64xf32>
    %513 = arith.addf %512, %511 : vector<1x64xf32>
    %514 = arith.divf %512, %513 : vector<1x64xf32>
    %515 = vector.extract_strided_slice %507 {offsets = [0, 64], sizes = [1, 64], strides = [1, 1]} : vector<1x192xf32> to vector<1x64xf32>
    %516 = arith.addf %430, %515 : vector<1x64xf32>
    %517 = arith.negf %516 : vector<1x64xf32>
    %518 = math.exp %517 : vector<1x64xf32>
    %cst_67 = arith.constant 1.000000e+00 : f32
    %519 = vector.broadcast %cst_67 : f32 to vector<1x64xf32>
    %520 = arith.addf %519, %518 : vector<1x64xf32>
    %521 = arith.divf %519, %520 : vector<1x64xf32>
    %522 = vector.extract_strided_slice %507 {offsets = [0, 128], sizes = [1, 64], strides = [1, 1]} : vector<1x192xf32> to vector<1x64xf32>
    %523 = arith.addf %522, %381 : vector<1x64xf32>
    %524 = arith.mulf %514, %523 : vector<1x64xf32>
    %525 = arith.addf %470, %524 : vector<1x64xf32>
    %526 = math.tanh %525 : vector<1x64xf32>
    %cst_68 = arith.constant 1.000000e+00 : f32
    %527 = vector.broadcast %cst_68 : f32 to vector<1x64xf32>
    %528 = arith.subf %527, %521 : vector<1x64xf32>
    %529 = arith.mulf %528, %526 : vector<1x64xf32>
    %530 = arith.mulf %521, %506 : vector<1x64xf32>
    %531 = arith.addf %529, %530 : vector<1x64xf32>
    %532 = vector.extract_strided_slice %531 {offsets = [0, 0], sizes = [1, 32], strides = [1, 1]} : vector<1x64xf32> to vector<1x32xf32>
    %533 = vector.extract_strided_slice %531 {offsets = [0, 32], sizes = [1, 32], strides = [1, 1]} : vector<1x64xf32> to vector<1x32xf32>
    %cst_69 = arith.constant dense<0.000000e+00> : vector<1x192xf32>
    %534 = tpu.matmul %531, %377, %cst_69 {dimension_numbers = #tpu.dot_dimension_numbers<[1], [0], [0], [1], [0, 0, 1, 1], [], []>} : vector<1x64xf32>, vector<64x192xf32>, vector<1x192xf32> -> vector<1x192xf32>
    %535 = vector.extract_strided_slice %534 {offsets = [0, 0], sizes = [1, 64], strides = [1, 1]} : vector<1x192xf32> to vector<1x64xf32>
    %536 = arith.addf %395, %535 : vector<1x64xf32>
    %537 = arith.negf %536 : vector<1x64xf32>
    %538 = math.exp %537 : vector<1x64xf32>
    %cst_70 = arith.constant 1.000000e+00 : f32
    %539 = vector.broadcast %cst_70 : f32 to vector<1x64xf32>
    %540 = arith.addf %539, %538 : vector<1x64xf32>
    %541 = arith.divf %539, %540 : vector<1x64xf32>
    %542 = vector.extract_strided_slice %534 {offsets = [0, 64], sizes = [1, 64], strides = [1, 1]} : vector<1x192xf32> to vector<1x64xf32>
    %543 = arith.addf %435, %542 : vector<1x64xf32>
    %544 = arith.negf %543 : vector<1x64xf32>
    %545 = math.exp %544 : vector<1x64xf32>
    %cst_71 = arith.constant 1.000000e+00 : f32
    %546 = vector.broadcast %cst_71 : f32 to vector<1x64xf32>
    %547 = arith.addf %546, %545 : vector<1x64xf32>
    %548 = arith.divf %546, %547 : vector<1x64xf32>
    %549 = vector.extract_strided_slice %534 {offsets = [0, 128], sizes = [1, 64], strides = [1, 1]} : vector<1x192xf32> to vector<1x64xf32>
    %550 = arith.addf %549, %381 : vector<1x64xf32>
    %551 = arith.mulf %541, %550 : vector<1x64xf32>
    %552 = arith.addf %475, %551 : vector<1x64xf32>
    %553 = math.tanh %552 : vector<1x64xf32>
    %cst_72 = arith.constant 1.000000e+00 : f32
    %554 = vector.broadcast %cst_72 : f32 to vector<1x64xf32>
    %555 = arith.subf %554, %548 : vector<1x64xf32>
    %556 = arith.mulf %555, %553 : vector<1x64xf32>
    %557 = arith.mulf %548, %531 : vector<1x64xf32>
    %558 = arith.addf %556, %557 : vector<1x64xf32>
    %559 = vector.extract_strided_slice %558 {offsets = [0, 0], sizes = [1, 32], strides = [1, 1]} : vector<1x64xf32> to vector<1x32xf32>
    %560 = vector.extract_strided_slice %558 {offsets = [0, 32], sizes = [1, 32], strides = [1, 1]} : vector<1x64xf32> to vector<1x32xf32>
    %cst_73 = arith.constant dense<0.000000e+00> : vector<1x192xf32>
    %561 = tpu.matmul %558, %377, %cst_73 {dimension_numbers = #tpu.dot_dimension_numbers<[1], [0], [0], [1], [0, 0, 1, 1], [], []>} : vector<1x64xf32>, vector<64x192xf32>, vector<1x192xf32> -> vector<1x192xf32>
    %562 = vector.extract_strided_slice %561 {offsets = [0, 0], sizes = [1, 64], strides = [1, 1]} : vector<1x192xf32> to vector<1x64xf32>
    %563 = arith.addf %400, %562 : vector<1x64xf32>
    %564 = arith.negf %563 : vector<1x64xf32>
    %565 = math.exp %564 : vector<1x64xf32>
    %cst_74 = arith.constant 1.000000e+00 : f32
    %566 = vector.broadcast %cst_74 : f32 to vector<1x64xf32>
    %567 = arith.addf %566, %565 : vector<1x64xf32>
    %568 = arith.divf %566, %567 : vector<1x64xf32>
    %569 = vector.extract_strided_slice %561 {offsets = [0, 64], sizes = [1, 64], strides = [1, 1]} : vector<1x192xf32> to vector<1x64xf32>
    %570 = arith.addf %440, %569 : vector<1x64xf32>
    %571 = arith.negf %570 : vector<1x64xf32>
    %572 = math.exp %571 : vector<1x64xf32>
    %cst_75 = arith.constant 1.000000e+00 : f32
    %573 = vector.broadcast %cst_75 : f32 to vector<1x64xf32>
    %574 = arith.addf %573, %572 : vector<1x64xf32>
    %575 = arith.divf %573, %574 : vector<1x64xf32>
    %576 = vector.extract_strided_slice %561 {offsets = [0, 128], sizes = [1, 64], strides = [1, 1]} : vector<1x192xf32> to vector<1x64xf32>
    %577 = arith.addf %576, %381 : vector<1x64xf32>
    %578 = arith.mulf %568, %577 : vector<1x64xf32>
    %579 = arith.addf %480, %578 : vector<1x64xf32>
    %580 = math.tanh %579 : vector<1x64xf32>
    %cst_76 = arith.constant 1.000000e+00 : f32
    %581 = vector.broadcast %cst_76 : f32 to vector<1x64xf32>
    %582 = arith.subf %581, %575 : vector<1x64xf32>
    %583 = arith.mulf %582, %580 : vector<1x64xf32>
    %584 = arith.mulf %575, %558 : vector<1x64xf32>
    %585 = arith.addf %583, %584 : vector<1x64xf32>
    %586 = vector.extract_strided_slice %585 {offsets = [0, 0], sizes = [1, 32], strides = [1, 1]} : vector<1x64xf32> to vector<1x32xf32>
    %587 = vector.extract_strided_slice %585 {offsets = [0, 32], sizes = [1, 32], strides = [1, 1]} : vector<1x64xf32> to vector<1x32xf32>
    %cst_77 = arith.constant dense<0.000000e+00> : vector<1x192xf32>
    %588 = tpu.matmul %585, %377, %cst_77 {dimension_numbers = #tpu.dot_dimension_numbers<[1], [0], [0], [1], [0, 0, 1, 1], [], []>} : vector<1x64xf32>, vector<64x192xf32>, vector<1x192xf32> -> vector<1x192xf32>
    %589 = vector.extract_strided_slice %588 {offsets = [0, 0], sizes = [1, 64], strides = [1, 1]} : vector<1x192xf32> to vector<1x64xf32>
    %590 = arith.addf %405, %589 : vector<1x64xf32>
    %591 = arith.negf %590 : vector<1x64xf32>
    %592 = math.exp %591 : vector<1x64xf32>
    %cst_78 = arith.constant 1.000000e+00 : f32
    %593 = vector.broadcast %cst_78 : f32 to vector<1x64xf32>
    %594 = arith.addf %593, %592 : vector<1x64xf32>
    %595 = arith.divf %593, %594 : vector<1x64xf32>
    %596 = vector.extract_strided_slice %588 {offsets = [0, 64], sizes = [1, 64], strides = [1, 1]} : vector<1x192xf32> to vector<1x64xf32>
    %597 = arith.addf %445, %596 : vector<1x64xf32>
    %598 = arith.negf %597 : vector<1x64xf32>
    %599 = math.exp %598 : vector<1x64xf32>
    %cst_79 = arith.constant 1.000000e+00 : f32
    %600 = vector.broadcast %cst_79 : f32 to vector<1x64xf32>
    %601 = arith.addf %600, %599 : vector<1x64xf32>
    %602 = arith.divf %600, %601 : vector<1x64xf32>
    %603 = vector.extract_strided_slice %588 {offsets = [0, 128], sizes = [1, 64], strides = [1, 1]} : vector<1x192xf32> to vector<1x64xf32>
    %604 = arith.addf %603, %381 : vector<1x64xf32>
    %605 = arith.mulf %595, %604 : vector<1x64xf32>
    %606 = arith.addf %485, %605 : vector<1x64xf32>
    %607 = math.tanh %606 : vector<1x64xf32>
    %cst_80 = arith.constant 1.000000e+00 : f32
    %608 = vector.broadcast %cst_80 : f32 to vector<1x64xf32>
    %609 = arith.subf %608, %602 : vector<1x64xf32>
    %610 = arith.mulf %609, %607 : vector<1x64xf32>
    %611 = arith.mulf %602, %585 : vector<1x64xf32>
    %612 = arith.addf %610, %611 : vector<1x64xf32>
    %613 = vector.extract_strided_slice %612 {offsets = [0, 0], sizes = [1, 32], strides = [1, 1]} : vector<1x64xf32> to vector<1x32xf32>
    %614 = vector.extract_strided_slice %612 {offsets = [0, 32], sizes = [1, 32], strides = [1, 1]} : vector<1x64xf32> to vector<1x32xf32>
    %cst_81 = arith.constant dense<0.000000e+00> : vector<1x192xf32>
    %615 = tpu.matmul %612, %377, %cst_81 {dimension_numbers = #tpu.dot_dimension_numbers<[1], [0], [0], [1], [0, 0, 1, 1], [], []>} : vector<1x64xf32>, vector<64x192xf32>, vector<1x192xf32> -> vector<1x192xf32>
    %616 = vector.extract_strided_slice %615 {offsets = [0, 0], sizes = [1, 64], strides = [1, 1]} : vector<1x192xf32> to vector<1x64xf32>
    %617 = arith.addf %410, %616 : vector<1x64xf32>
    %618 = arith.negf %617 : vector<1x64xf32>
    %619 = math.exp %618 : vector<1x64xf32>
    %cst_82 = arith.constant 1.000000e+00 : f32
    %620 = vector.broadcast %cst_82 : f32 to vector<1x64xf32>
    %621 = arith.addf %620, %619 : vector<1x64xf32>
    %622 = arith.divf %620, %621 : vector<1x64xf32>
    %623 = vector.extract_strided_slice %615 {offsets = [0, 64], sizes = [1, 64], strides = [1, 1]} : vector<1x192xf32> to vector<1x64xf32>
    %624 = arith.addf %450, %623 : vector<1x64xf32>
    %625 = arith.negf %624 : vector<1x64xf32>
    %626 = math.exp %625 : vector<1x64xf32>
    %cst_83 = arith.constant 1.000000e+00 : f32
    %627 = vector.broadcast %cst_83 : f32 to vector<1x64xf32>
    %628 = arith.addf %627, %626 : vector<1x64xf32>
    %629 = arith.divf %627, %628 : vector<1x64xf32>
    %630 = vector.extract_strided_slice %615 {offsets = [0, 128], sizes = [1, 64], strides = [1, 1]} : vector<1x192xf32> to vector<1x64xf32>
    %631 = arith.addf %630, %381 : vector<1x64xf32>
    %632 = arith.mulf %622, %631 : vector<1x64xf32>
    %633 = arith.addf %490, %632 : vector<1x64xf32>
    %634 = math.tanh %633 : vector<1x64xf32>
    %cst_84 = arith.constant 1.000000e+00 : f32
    %635 = vector.broadcast %cst_84 : f32 to vector<1x64xf32>
    %636 = arith.subf %635, %629 : vector<1x64xf32>
    %637 = arith.mulf %636, %634 : vector<1x64xf32>
    %638 = arith.mulf %629, %612 : vector<1x64xf32>
    %639 = arith.addf %637, %638 : vector<1x64xf32>
    %640 = vector.extract_strided_slice %639 {offsets = [0, 0], sizes = [1, 32], strides = [1, 1]} : vector<1x64xf32> to vector<1x32xf32>
    %641 = vector.extract_strided_slice %639 {offsets = [0, 32], sizes = [1, 32], strides = [1, 1]} : vector<1x64xf32> to vector<1x32xf32>
    %cst_85 = arith.constant dense<0.000000e+00> : vector<1x192xf32>
    %642 = tpu.matmul %639, %377, %cst_85 {dimension_numbers = #tpu.dot_dimension_numbers<[1], [0], [0], [1], [0, 0, 1, 1], [], []>} : vector<1x64xf32>, vector<64x192xf32>, vector<1x192xf32> -> vector<1x192xf32>
    %643 = vector.extract_strided_slice %642 {offsets = [0, 0], sizes = [1, 64], strides = [1, 1]} : vector<1x192xf32> to vector<1x64xf32>
    %644 = arith.addf %415, %643 : vector<1x64xf32>
    %645 = arith.negf %644 : vector<1x64xf32>
    %646 = math.exp %645 : vector<1x64xf32>
    %cst_86 = arith.constant 1.000000e+00 : f32
    %647 = vector.broadcast %cst_86 : f32 to vector<1x64xf32>
    %648 = arith.addf %647, %646 : vector<1x64xf32>
    %649 = arith.divf %647, %648 : vector<1x64xf32>
    %650 = vector.extract_strided_slice %642 {offsets = [0, 64], sizes = [1, 64], strides = [1, 1]} : vector<1x192xf32> to vector<1x64xf32>
    %651 = arith.addf %455, %650 : vector<1x64xf32>
    %652 = arith.negf %651 : vector<1x64xf32>
    %653 = math.exp %652 : vector<1x64xf32>
    %cst_87 = arith.constant 1.000000e+00 : f32
    %654 = vector.broadcast %cst_87 : f32 to vector<1x64xf32>
    %655 = arith.addf %654, %653 : vector<1x64xf32>
    %656 = arith.divf %654, %655 : vector<1x64xf32>
    %657 = vector.extract_strided_slice %642 {offsets = [0, 128], sizes = [1, 64], strides = [1, 1]} : vector<1x192xf32> to vector<1x64xf32>
    %658 = arith.addf %657, %381 : vector<1x64xf32>
    %659 = arith.mulf %649, %658 : vector<1x64xf32>
    %660 = arith.addf %495, %659 : vector<1x64xf32>
    %661 = math.tanh %660 : vector<1x64xf32>
    %cst_88 = arith.constant 1.000000e+00 : f32
    %662 = vector.broadcast %cst_88 : f32 to vector<1x64xf32>
    %663 = arith.subf %662, %656 : vector<1x64xf32>
    %664 = arith.mulf %663, %661 : vector<1x64xf32>
    %665 = arith.mulf %656, %639 : vector<1x64xf32>
    %666 = arith.addf %664, %665 : vector<1x64xf32>
    %667 = vector.extract_strided_slice %666 {offsets = [0, 0], sizes = [1, 32], strides = [1, 1]} : vector<1x64xf32> to vector<1x32xf32>
    %668 = vector.extract_strided_slice %666 {offsets = [0, 32], sizes = [1, 32], strides = [1, 1]} : vector<1x64xf32> to vector<1x32xf32>
    %cst_89 = arith.constant dense<0.000000e+00> : vector<1x192xf32>
    %669 = tpu.matmul %666, %377, %cst_89 {dimension_numbers = #tpu.dot_dimension_numbers<[1], [0], [0], [1], [0, 0, 1, 1], [], []>} : vector<1x64xf32>, vector<64x192xf32>, vector<1x192xf32> -> vector<1x192xf32>
    %670 = vector.extract_strided_slice %669 {offsets = [0, 0], sizes = [1, 64], strides = [1, 1]} : vector<1x192xf32> to vector<1x64xf32>
    %671 = arith.addf %420, %670 : vector<1x64xf32>
    %672 = arith.negf %671 : vector<1x64xf32>
    %673 = math.exp %672 : vector<1x64xf32>
    %cst_90 = arith.constant 1.000000e+00 : f32
    %674 = vector.broadcast %cst_90 : f32 to vector<1x64xf32>
    %675 = arith.addf %674, %673 : vector<1x64xf32>
    %676 = arith.divf %674, %675 : vector<1x64xf32>
    %677 = vector.extract_strided_slice %669 {offsets = [0, 64], sizes = [1, 64], strides = [1, 1]} : vector<1x192xf32> to vector<1x64xf32>
    %678 = arith.addf %460, %677 : vector<1x64xf32>
    %679 = arith.negf %678 : vector<1x64xf32>
    %680 = math.exp %679 : vector<1x64xf32>
    %cst_91 = arith.constant 1.000000e+00 : f32
    %681 = vector.broadcast %cst_91 : f32 to vector<1x64xf32>
    %682 = arith.addf %681, %680 : vector<1x64xf32>
    %683 = arith.divf %681, %682 : vector<1x64xf32>
    %684 = vector.extract_strided_slice %669 {offsets = [0, 128], sizes = [1, 64], strides = [1, 1]} : vector<1x192xf32> to vector<1x64xf32>
    %685 = arith.addf %684, %381 : vector<1x64xf32>
    %686 = arith.mulf %676, %685 : vector<1x64xf32>
    %687 = arith.addf %500, %686 : vector<1x64xf32>
    %688 = math.tanh %687 : vector<1x64xf32>
    %cst_92 = arith.constant 1.000000e+00 : f32
    %689 = vector.broadcast %cst_92 : f32 to vector<1x64xf32>
    %690 = arith.subf %689, %683 : vector<1x64xf32>
    %691 = arith.mulf %690, %688 : vector<1x64xf32>
    %692 = arith.mulf %683, %666 : vector<1x64xf32>
    %693 = arith.addf %691, %692 : vector<1x64xf32>
    %694 = vector.extract_strided_slice %693 {offsets = [0, 0], sizes = [1, 32], strides = [1, 1]} : vector<1x64xf32> to vector<1x32xf32>
    %695 = vector.extract_strided_slice %693 {offsets = [0, 32], sizes = [1, 32], strides = [1, 1]} : vector<1x64xf32> to vector<1x32xf32>
    %cst_93 = arith.constant dense<0.000000e+00> : vector<1x192xf32>
    %696 = tpu.matmul %693, %377, %cst_93 {dimension_numbers = #tpu.dot_dimension_numbers<[1], [0], [0], [1], [0, 0, 1, 1], [], []>} : vector<1x64xf32>, vector<64x192xf32>, vector<1x192xf32> -> vector<1x192xf32>
    %697 = vector.extract_strided_slice %696 {offsets = [0, 0], sizes = [1, 64], strides = [1, 1]} : vector<1x192xf32> to vector<1x64xf32>
    %698 = arith.addf %425, %697 : vector<1x64xf32>
    %699 = arith.negf %698 : vector<1x64xf32>
    %700 = math.exp %699 : vector<1x64xf32>
    %cst_94 = arith.constant 1.000000e+00 : f32
    %701 = vector.broadcast %cst_94 : f32 to vector<1x64xf32>
    %702 = arith.addf %701, %700 : vector<1x64xf32>
    %703 = arith.divf %701, %702 : vector<1x64xf32>
    %704 = vector.extract_strided_slice %696 {offsets = [0, 64], sizes = [1, 64], strides = [1, 1]} : vector<1x192xf32> to vector<1x64xf32>
    %705 = arith.addf %465, %704 : vector<1x64xf32>
    %706 = arith.negf %705 : vector<1x64xf32>
    %707 = math.exp %706 : vector<1x64xf32>
    %cst_95 = arith.constant 1.000000e+00 : f32
    %708 = vector.broadcast %cst_95 : f32 to vector<1x64xf32>
    %709 = arith.addf %708, %707 : vector<1x64xf32>
    %710 = arith.divf %708, %709 : vector<1x64xf32>
    %711 = vector.extract_strided_slice %696 {offsets = [0, 128], sizes = [1, 64], strides = [1, 1]} : vector<1x192xf32> to vector<1x64xf32>
    %712 = arith.addf %711, %381 : vector<1x64xf32>
    %713 = arith.mulf %703, %712 : vector<1x64xf32>
    %714 = arith.addf %505, %713 : vector<1x64xf32>
    %715 = math.tanh %714 : vector<1x64xf32>
    %cst_96 = arith.constant 1.000000e+00 : f32
    %716 = vector.broadcast %cst_96 : f32 to vector<1x64xf32>
    %717 = arith.subf %716, %710 : vector<1x64xf32>
    %718 = arith.mulf %717, %715 : vector<1x64xf32>
    %719 = arith.mulf %710, %693 : vector<1x64xf32>
    %720 = arith.addf %718, %719 : vector<1x64xf32>
    %721 = vector.extract_strided_slice %720 {offsets = [0, 0], sizes = [1, 32], strides = [1, 1]} : vector<1x64xf32> to vector<1x32xf32>
    %722 = vector.extract_strided_slice %720 {offsets = [0, 32], sizes = [1, 32], strides = [1, 1]} : vector<1x64xf32> to vector<1x32xf32>
    %723 = tpu.concatenate %532, %722 in 1 : vector<1x32xf32>, vector<1x32xf32> -> vector<1x64xf32>
    %724 = tpu.concatenate %559, %695 in 1 : vector<1x32xf32>, vector<1x32xf32> -> vector<1x64xf32>
    %725 = tpu.concatenate %586, %668 in 1 : vector<1x32xf32>, vector<1x32xf32> -> vector<1x64xf32>
    %726 = tpu.concatenate %613, %641 in 1 : vector<1x32xf32>, vector<1x32xf32> -> vector<1x64xf32>
    %727 = tpu.concatenate %640, %614 in 1 : vector<1x32xf32>, vector<1x32xf32> -> vector<1x64xf32>
    %728 = tpu.concatenate %667, %587 in 1 : vector<1x32xf32>, vector<1x32xf32> -> vector<1x64xf32>
    %729 = tpu.concatenate %694, %560 in 1 : vector<1x32xf32>, vector<1x32xf32> -> vector<1x64xf32>
    %730 = tpu.concatenate %721, %533 in 1 : vector<1x32xf32>, vector<1x32xf32> -> vector<1x64xf32>
    %731 = vector.shape_cast %723 : vector<1x64xf32> to vector<1x1x64xf32>
    %732 = vector.shape_cast %724 : vector<1x64xf32> to vector<1x1x64xf32>
    %733 = vector.shape_cast %725 : vector<1x64xf32> to vector<1x1x64xf32>
    %734 = vector.shape_cast %726 : vector<1x64xf32> to vector<1x1x64xf32>
    %735 = vector.shape_cast %727 : vector<1x64xf32> to vector<1x1x64xf32>
    %736 = vector.shape_cast %728 : vector<1x64xf32> to vector<1x1x64xf32>
    %737 = vector.shape_cast %729 : vector<1x64xf32> to vector<1x1x64xf32>
    %738 = vector.shape_cast %730 : vector<1x64xf32> to vector<1x1x64xf32>
    %739 = tpu.concatenate %731, %732, %733, %734, %735, %736, %737, %738 in 1 : vector<1x1x64xf32>, vector<1x1x64xf32>, vector<1x1x64xf32>, vector<1x1x64xf32>, vector<1x1x64xf32>, vector<1x1x64xf32>, vector<1x1x64xf32>, vector<1x1x64xf32> -> vector<1x8x64xf32>
    %740 = vector.shape_cast %739 : vector<1x8x64xf32> to vector<8x64xf32>
    %c1_97 = arith.constant 1 : index
    %c0_98 = arith.constant 0 : index
    %c0_99 = arith.constant 0 : index
    %741 = vector.load %arg5[%c1_97, %c0_98, %c0_99] : memref<2x64x192xf32, #tpu.memory_space<vmem>>, vector<1x64x192xf32>
    %742 = vector.shape_cast %741 : vector<1x64x192xf32> to vector<64x192xf32>
    %c2 = arith.constant 2 : index
    %c0_100 = arith.constant 0 : index
    %c0_101 = arith.constant 0 : index
    %743 = vector.load %arg6[%c2, %c0_100, %c0_101] : memref<3x64x192xf32, #tpu.memory_space<vmem>>, vector<1x64x192xf32>
    %744 = vector.shape_cast %743 : vector<1x64x192xf32> to vector<64x192xf32>
    %c2_102 = arith.constant 2 : index
    %c0_103 = arith.constant 0 : index
    %c0_104 = arith.constant 0 : index
    %745 = vector.load %arg7[%c2_102, %c0_103, %c0_104] : memref<3x1x192xf32, #tpu.memory_space<vmem>>, vector<1x1x192xf32>
    %746 = vector.shape_cast %745 : vector<1x1x192xf32> to vector<1x192xf32>
    %c2_105 = arith.constant 2 : index
    %c0_106 = arith.constant 0 : index
    %c0_107 = arith.constant 0 : index
    %747 = vector.load %arg8[%c2_105, %c0_106, %c0_107] : memref<3x1x64xf32, #tpu.memory_space<vmem>>, vector<1x1x64xf32>
    %748 = vector.shape_cast %747 : vector<1x1x64xf32> to vector<1x64xf32>
    %cst_108 = arith.constant dense<0.000000e+00> : vector<8x192xf32>
    %749 = tpu.matmul %740, %742, %cst_108 {dimension_numbers = #tpu.dot_dimension_numbers<[1], [0], [0], [1], [0, 0, 1, 1], [], []>} : vector<8x64xf32>, vector<64x192xf32>, vector<8x192xf32> -> vector<8x192xf32>
    %750 = vector.broadcast %746 : vector<1x192xf32> to vector<8x192xf32>
    %751 = arith.addf %749, %750 : vector<8x192xf32>
    %752 = vector.shape_cast %751 : vector<8x192xf32> to vector<1x8x192xf32>
    %753 = vector.extract_strided_slice %752 {offsets = [0, 0, 0], sizes = [1, 1, 32], strides = [1, 1, 1]} : vector<1x8x192xf32> to vector<1x1x32xf32>
    %754 = vector.shape_cast %753 : vector<1x1x32xf32> to vector<1x32xf32>
    %755 = vector.extract_strided_slice %752 {offsets = [0, 7, 32], sizes = [1, 1, 32], strides = [1, 1, 1]} : vector<1x8x192xf32> to vector<1x1x32xf32>
    %756 = vector.shape_cast %755 : vector<1x1x32xf32> to vector<1x32xf32>
    %757 = tpu.concatenate %754, %756 in 1 : vector<1x32xf32>, vector<1x32xf32> -> vector<1x64xf32>
    %758 = vector.extract_strided_slice %752 {offsets = [0, 1, 0], sizes = [1, 1, 32], strides = [1, 1, 1]} : vector<1x8x192xf32> to vector<1x1x32xf32>
    %759 = vector.shape_cast %758 : vector<1x1x32xf32> to vector<1x32xf32>
    %760 = vector.extract_strided_slice %752 {offsets = [0, 6, 32], sizes = [1, 1, 32], strides = [1, 1, 1]} : vector<1x8x192xf32> to vector<1x1x32xf32>
    %761 = vector.shape_cast %760 : vector<1x1x32xf32> to vector<1x32xf32>
    %762 = tpu.concatenate %759, %761 in 1 : vector<1x32xf32>, vector<1x32xf32> -> vector<1x64xf32>
    %763 = vector.extract_strided_slice %752 {offsets = [0, 2, 0], sizes = [1, 1, 32], strides = [1, 1, 1]} : vector<1x8x192xf32> to vector<1x1x32xf32>
    %764 = vector.shape_cast %763 : vector<1x1x32xf32> to vector<1x32xf32>
    %765 = vector.extract_strided_slice %752 {offsets = [0, 5, 32], sizes = [1, 1, 32], strides = [1, 1, 1]} : vector<1x8x192xf32> to vector<1x1x32xf32>
    %766 = vector.shape_cast %765 : vector<1x1x32xf32> to vector<1x32xf32>
    %767 = tpu.concatenate %764, %766 in 1 : vector<1x32xf32>, vector<1x32xf32> -> vector<1x64xf32>
    %768 = vector.extract_strided_slice %752 {offsets = [0, 3, 0], sizes = [1, 1, 32], strides = [1, 1, 1]} : vector<1x8x192xf32> to vector<1x1x32xf32>
    %769 = vector.shape_cast %768 : vector<1x1x32xf32> to vector<1x32xf32>
    %770 = vector.extract_strided_slice %752 {offsets = [0, 4, 32], sizes = [1, 1, 32], strides = [1, 1, 1]} : vector<1x8x192xf32> to vector<1x1x32xf32>
    %771 = vector.shape_cast %770 : vector<1x1x32xf32> to vector<1x32xf32>
    %772 = tpu.concatenate %769, %771 in 1 : vector<1x32xf32>, vector<1x32xf32> -> vector<1x64xf32>
    %773 = vector.extract_strided_slice %752 {offsets = [0, 4, 0], sizes = [1, 1, 32], strides = [1, 1, 1]} : vector<1x8x192xf32> to vector<1x1x32xf32>
    %774 = vector.shape_cast %773 : vector<1x1x32xf32> to vector<1x32xf32>
    %775 = vector.extract_strided_slice %752 {offsets = [0, 3, 32], sizes = [1, 1, 32], strides = [1, 1, 1]} : vector<1x8x192xf32> to vector<1x1x32xf32>
    %776 = vector.shape_cast %775 : vector<1x1x32xf32> to vector<1x32xf32>
    %777 = tpu.concatenate %774, %776 in 1 : vector<1x32xf32>, vector<1x32xf32> -> vector<1x64xf32>
    %778 = vector.extract_strided_slice %752 {offsets = [0, 5, 0], sizes = [1, 1, 32], strides = [1, 1, 1]} : vector<1x8x192xf32> to vector<1x1x32xf32>
    %779 = vector.shape_cast %778 : vector<1x1x32xf32> to vector<1x32xf32>
    %780 = vector.extract_strided_slice %752 {offsets = [0, 2, 32], sizes = [1, 1, 32], strides = [1, 1, 1]} : vector<1x8x192xf32> to vector<1x1x32xf32>
    %781 = vector.shape_cast %780 : vector<1x1x32xf32> to vector<1x32xf32>
    %782 = tpu.concatenate %779, %781 in 1 : vector<1x32xf32>, vector<1x32xf32> -> vector<1x64xf32>
    %783 = vector.extract_strided_slice %752 {offsets = [0, 6, 0], sizes = [1, 1, 32], strides = [1, 1, 1]} : vector<1x8x192xf32> to vector<1x1x32xf32>
    %784 = vector.shape_cast %783 : vector<1x1x32xf32> to vector<1x32xf32>
    %785 = vector.extract_strided_slice %752 {offsets = [0, 1, 32], sizes = [1, 1, 32], strides = [1, 1, 1]} : vector<1x8x192xf32> to vector<1x1x32xf32>
    %786 = vector.shape_cast %785 : vector<1x1x32xf32> to vector<1x32xf32>
    %787 = tpu.concatenate %784, %786 in 1 : vector<1x32xf32>, vector<1x32xf32> -> vector<1x64xf32>
    %788 = vector.extract_strided_slice %752 {offsets = [0, 7, 0], sizes = [1, 1, 32], strides = [1, 1, 1]} : vector<1x8x192xf32> to vector<1x1x32xf32>
    %789 = vector.shape_cast %788 : vector<1x1x32xf32> to vector<1x32xf32>
    %790 = vector.extract_strided_slice %752 {offsets = [0, 0, 32], sizes = [1, 1, 32], strides = [1, 1, 1]} : vector<1x8x192xf32> to vector<1x1x32xf32>
    %791 = vector.shape_cast %790 : vector<1x1x32xf32> to vector<1x32xf32>
    %792 = tpu.concatenate %789, %791 in 1 : vector<1x32xf32>, vector<1x32xf32> -> vector<1x64xf32>
    %793 = vector.extract_strided_slice %752 {offsets = [0, 0, 64], sizes = [1, 1, 32], strides = [1, 1, 1]} : vector<1x8x192xf32> to vector<1x1x32xf32>
    %794 = vector.shape_cast %793 : vector<1x1x32xf32> to vector<1x32xf32>
    %795 = vector.extract_strided_slice %752 {offsets = [0, 7, 96], sizes = [1, 1, 32], strides = [1, 1, 1]} : vector<1x8x192xf32> to vector<1x1x32xf32>
    %796 = vector.shape_cast %795 : vector<1x1x32xf32> to vector<1x32xf32>
    %797 = tpu.concatenate %794, %796 in 1 : vector<1x32xf32>, vector<1x32xf32> -> vector<1x64xf32>
    %798 = vector.extract_strided_slice %752 {offsets = [0, 1, 64], sizes = [1, 1, 32], strides = [1, 1, 1]} : vector<1x8x192xf32> to vector<1x1x32xf32>
    %799 = vector.shape_cast %798 : vector<1x1x32xf32> to vector<1x32xf32>
    %800 = vector.extract_strided_slice %752 {offsets = [0, 6, 96], sizes = [1, 1, 32], strides = [1, 1, 1]} : vector<1x8x192xf32> to vector<1x1x32xf32>
    %801 = vector.shape_cast %800 : vector<1x1x32xf32> to vector<1x32xf32>
    %802 = tpu.concatenate %799, %801 in 1 : vector<1x32xf32>, vector<1x32xf32> -> vector<1x64xf32>
    %803 = vector.extract_strided_slice %752 {offsets = [0, 2, 64], sizes = [1, 1, 32], strides = [1, 1, 1]} : vector<1x8x192xf32> to vector<1x1x32xf32>
    %804 = vector.shape_cast %803 : vector<1x1x32xf32> to vector<1x32xf32>
    %805 = vector.extract_strided_slice %752 {offsets = [0, 5, 96], sizes = [1, 1, 32], strides = [1, 1, 1]} : vector<1x8x192xf32> to vector<1x1x32xf32>
    %806 = vector.shape_cast %805 : vector<1x1x32xf32> to vector<1x32xf32>
    %807 = tpu.concatenate %804, %806 in 1 : vector<1x32xf32>, vector<1x32xf32> -> vector<1x64xf32>
    %808 = vector.extract_strided_slice %752 {offsets = [0, 3, 64], sizes = [1, 1, 32], strides = [1, 1, 1]} : vector<1x8x192xf32> to vector<1x1x32xf32>
    %809 = vector.shape_cast %808 : vector<1x1x32xf32> to vector<1x32xf32>
    %810 = vector.extract_strided_slice %752 {offsets = [0, 4, 96], sizes = [1, 1, 32], strides = [1, 1, 1]} : vector<1x8x192xf32> to vector<1x1x32xf32>
    %811 = vector.shape_cast %810 : vector<1x1x32xf32> to vector<1x32xf32>
    %812 = tpu.concatenate %809, %811 in 1 : vector<1x32xf32>, vector<1x32xf32> -> vector<1x64xf32>
    %813 = vector.extract_strided_slice %752 {offsets = [0, 4, 64], sizes = [1, 1, 32], strides = [1, 1, 1]} : vector<1x8x192xf32> to vector<1x1x32xf32>
    %814 = vector.shape_cast %813 : vector<1x1x32xf32> to vector<1x32xf32>
    %815 = vector.extract_strided_slice %752 {offsets = [0, 3, 96], sizes = [1, 1, 32], strides = [1, 1, 1]} : vector<1x8x192xf32> to vector<1x1x32xf32>
    %816 = vector.shape_cast %815 : vector<1x1x32xf32> to vector<1x32xf32>
    %817 = tpu.concatenate %814, %816 in 1 : vector<1x32xf32>, vector<1x32xf32> -> vector<1x64xf32>
    %818 = vector.extract_strided_slice %752 {offsets = [0, 5, 64], sizes = [1, 1, 32], strides = [1, 1, 1]} : vector<1x8x192xf32> to vector<1x1x32xf32>
    %819 = vector.shape_cast %818 : vector<1x1x32xf32> to vector<1x32xf32>
    %820 = vector.extract_strided_slice %752 {offsets = [0, 2, 96], sizes = [1, 1, 32], strides = [1, 1, 1]} : vector<1x8x192xf32> to vector<1x1x32xf32>
    %821 = vector.shape_cast %820 : vector<1x1x32xf32> to vector<1x32xf32>
    %822 = tpu.concatenate %819, %821 in 1 : vector<1x32xf32>, vector<1x32xf32> -> vector<1x64xf32>
    %823 = vector.extract_strided_slice %752 {offsets = [0, 6, 64], sizes = [1, 1, 32], strides = [1, 1, 1]} : vector<1x8x192xf32> to vector<1x1x32xf32>
    %824 = vector.shape_cast %823 : vector<1x1x32xf32> to vector<1x32xf32>
    %825 = vector.extract_strided_slice %752 {offsets = [0, 1, 96], sizes = [1, 1, 32], strides = [1, 1, 1]} : vector<1x8x192xf32> to vector<1x1x32xf32>
    %826 = vector.shape_cast %825 : vector<1x1x32xf32> to vector<1x32xf32>
    %827 = tpu.concatenate %824, %826 in 1 : vector<1x32xf32>, vector<1x32xf32> -> vector<1x64xf32>
    %828 = vector.extract_strided_slice %752 {offsets = [0, 7, 64], sizes = [1, 1, 32], strides = [1, 1, 1]} : vector<1x8x192xf32> to vector<1x1x32xf32>
    %829 = vector.shape_cast %828 : vector<1x1x32xf32> to vector<1x32xf32>
    %830 = vector.extract_strided_slice %752 {offsets = [0, 0, 96], sizes = [1, 1, 32], strides = [1, 1, 1]} : vector<1x8x192xf32> to vector<1x1x32xf32>
    %831 = vector.shape_cast %830 : vector<1x1x32xf32> to vector<1x32xf32>
    %832 = tpu.concatenate %829, %831 in 1 : vector<1x32xf32>, vector<1x32xf32> -> vector<1x64xf32>
    %833 = vector.extract_strided_slice %752 {offsets = [0, 0, 128], sizes = [1, 1, 32], strides = [1, 1, 1]} : vector<1x8x192xf32> to vector<1x1x32xf32>
    %834 = vector.shape_cast %833 : vector<1x1x32xf32> to vector<1x32xf32>
    %835 = vector.extract_strided_slice %752 {offsets = [0, 7, 160], sizes = [1, 1, 32], strides = [1, 1, 1]} : vector<1x8x192xf32> to vector<1x1x32xf32>
    %836 = vector.shape_cast %835 : vector<1x1x32xf32> to vector<1x32xf32>
    %837 = tpu.concatenate %834, %836 in 1 : vector<1x32xf32>, vector<1x32xf32> -> vector<1x64xf32>
    %838 = vector.extract_strided_slice %752 {offsets = [0, 1, 128], sizes = [1, 1, 32], strides = [1, 1, 1]} : vector<1x8x192xf32> to vector<1x1x32xf32>
    %839 = vector.shape_cast %838 : vector<1x1x32xf32> to vector<1x32xf32>
    %840 = vector.extract_strided_slice %752 {offsets = [0, 6, 160], sizes = [1, 1, 32], strides = [1, 1, 1]} : vector<1x8x192xf32> to vector<1x1x32xf32>
    %841 = vector.shape_cast %840 : vector<1x1x32xf32> to vector<1x32xf32>
    %842 = tpu.concatenate %839, %841 in 1 : vector<1x32xf32>, vector<1x32xf32> -> vector<1x64xf32>
    %843 = vector.extract_strided_slice %752 {offsets = [0, 2, 128], sizes = [1, 1, 32], strides = [1, 1, 1]} : vector<1x8x192xf32> to vector<1x1x32xf32>
    %844 = vector.shape_cast %843 : vector<1x1x32xf32> to vector<1x32xf32>
    %845 = vector.extract_strided_slice %752 {offsets = [0, 5, 160], sizes = [1, 1, 32], strides = [1, 1, 1]} : vector<1x8x192xf32> to vector<1x1x32xf32>
    %846 = vector.shape_cast %845 : vector<1x1x32xf32> to vector<1x32xf32>
    %847 = tpu.concatenate %844, %846 in 1 : vector<1x32xf32>, vector<1x32xf32> -> vector<1x64xf32>
    %848 = vector.extract_strided_slice %752 {offsets = [0, 3, 128], sizes = [1, 1, 32], strides = [1, 1, 1]} : vector<1x8x192xf32> to vector<1x1x32xf32>
    %849 = vector.shape_cast %848 : vector<1x1x32xf32> to vector<1x32xf32>
    %850 = vector.extract_strided_slice %752 {offsets = [0, 4, 160], sizes = [1, 1, 32], strides = [1, 1, 1]} : vector<1x8x192xf32> to vector<1x1x32xf32>
    %851 = vector.shape_cast %850 : vector<1x1x32xf32> to vector<1x32xf32>
    %852 = tpu.concatenate %849, %851 in 1 : vector<1x32xf32>, vector<1x32xf32> -> vector<1x64xf32>
    %853 = vector.extract_strided_slice %752 {offsets = [0, 4, 128], sizes = [1, 1, 32], strides = [1, 1, 1]} : vector<1x8x192xf32> to vector<1x1x32xf32>
    %854 = vector.shape_cast %853 : vector<1x1x32xf32> to vector<1x32xf32>
    %855 = vector.extract_strided_slice %752 {offsets = [0, 3, 160], sizes = [1, 1, 32], strides = [1, 1, 1]} : vector<1x8x192xf32> to vector<1x1x32xf32>
    %856 = vector.shape_cast %855 : vector<1x1x32xf32> to vector<1x32xf32>
    %857 = tpu.concatenate %854, %856 in 1 : vector<1x32xf32>, vector<1x32xf32> -> vector<1x64xf32>
    %858 = vector.extract_strided_slice %752 {offsets = [0, 5, 128], sizes = [1, 1, 32], strides = [1, 1, 1]} : vector<1x8x192xf32> to vector<1x1x32xf32>
    %859 = vector.shape_cast %858 : vector<1x1x32xf32> to vector<1x32xf32>
    %860 = vector.extract_strided_slice %752 {offsets = [0, 2, 160], sizes = [1, 1, 32], strides = [1, 1, 1]} : vector<1x8x192xf32> to vector<1x1x32xf32>
    %861 = vector.shape_cast %860 : vector<1x1x32xf32> to vector<1x32xf32>
    %862 = tpu.concatenate %859, %861 in 1 : vector<1x32xf32>, vector<1x32xf32> -> vector<1x64xf32>
    %863 = vector.extract_strided_slice %752 {offsets = [0, 6, 128], sizes = [1, 1, 32], strides = [1, 1, 1]} : vector<1x8x192xf32> to vector<1x1x32xf32>
    %864 = vector.shape_cast %863 : vector<1x1x32xf32> to vector<1x32xf32>
    %865 = vector.extract_strided_slice %752 {offsets = [0, 1, 160], sizes = [1, 1, 32], strides = [1, 1, 1]} : vector<1x8x192xf32> to vector<1x1x32xf32>
    %866 = vector.shape_cast %865 : vector<1x1x32xf32> to vector<1x32xf32>
    %867 = tpu.concatenate %864, %866 in 1 : vector<1x32xf32>, vector<1x32xf32> -> vector<1x64xf32>
    %868 = vector.extract_strided_slice %752 {offsets = [0, 7, 128], sizes = [1, 1, 32], strides = [1, 1, 1]} : vector<1x8x192xf32> to vector<1x1x32xf32>
    %869 = vector.shape_cast %868 : vector<1x1x32xf32> to vector<1x32xf32>
    %870 = vector.extract_strided_slice %752 {offsets = [0, 0, 160], sizes = [1, 1, 32], strides = [1, 1, 1]} : vector<1x8x192xf32> to vector<1x1x32xf32>
    %871 = vector.shape_cast %870 : vector<1x1x32xf32> to vector<1x32xf32>
    %872 = tpu.concatenate %869, %871 in 1 : vector<1x32xf32>, vector<1x32xf32> -> vector<1x64xf32>
    %cst_109 = arith.constant 0.000000e+00 : f32
    %873 = vector.broadcast %cst_109 : f32 to vector<1x64xf32>
    %cst_110 = arith.constant dense<0.000000e+00> : vector<1x192xf32>
    %874 = tpu.matmul %873, %744, %cst_110 {dimension_numbers = #tpu.dot_dimension_numbers<[1], [0], [0], [1], [0, 0, 1, 1], [], []>} : vector<1x64xf32>, vector<64x192xf32>, vector<1x192xf32> -> vector<1x192xf32>
    %875 = vector.extract_strided_slice %874 {offsets = [0, 0], sizes = [1, 64], strides = [1, 1]} : vector<1x192xf32> to vector<1x64xf32>
    %876 = arith.addf %757, %875 : vector<1x64xf32>
    %877 = arith.negf %876 : vector<1x64xf32>
    %878 = math.exp %877 : vector<1x64xf32>
    %cst_111 = arith.constant 1.000000e+00 : f32
    %879 = vector.broadcast %cst_111 : f32 to vector<1x64xf32>
    %880 = arith.addf %879, %878 : vector<1x64xf32>
    %881 = arith.divf %879, %880 : vector<1x64xf32>
    %882 = vector.extract_strided_slice %874 {offsets = [0, 64], sizes = [1, 64], strides = [1, 1]} : vector<1x192xf32> to vector<1x64xf32>
    %883 = arith.addf %797, %882 : vector<1x64xf32>
    %884 = arith.negf %883 : vector<1x64xf32>
    %885 = math.exp %884 : vector<1x64xf32>
    %cst_112 = arith.constant 1.000000e+00 : f32
    %886 = vector.broadcast %cst_112 : f32 to vector<1x64xf32>
    %887 = arith.addf %886, %885 : vector<1x64xf32>
    %888 = arith.divf %886, %887 : vector<1x64xf32>
    %889 = vector.extract_strided_slice %874 {offsets = [0, 128], sizes = [1, 64], strides = [1, 1]} : vector<1x192xf32> to vector<1x64xf32>
    %890 = arith.addf %889, %748 : vector<1x64xf32>
    %891 = arith.mulf %881, %890 : vector<1x64xf32>
    %892 = arith.addf %837, %891 : vector<1x64xf32>
    %893 = math.tanh %892 : vector<1x64xf32>
    %cst_113 = arith.constant 1.000000e+00 : f32
    %894 = vector.broadcast %cst_113 : f32 to vector<1x64xf32>
    %895 = arith.subf %894, %888 : vector<1x64xf32>
    %896 = arith.mulf %895, %893 : vector<1x64xf32>
    %897 = arith.mulf %888, %873 : vector<1x64xf32>
    %898 = arith.addf %896, %897 : vector<1x64xf32>
    %899 = vector.extract_strided_slice %898 {offsets = [0, 0], sizes = [1, 32], strides = [1, 1]} : vector<1x64xf32> to vector<1x32xf32>
    %900 = vector.extract_strided_slice %898 {offsets = [0, 32], sizes = [1, 32], strides = [1, 1]} : vector<1x64xf32> to vector<1x32xf32>
    %cst_114 = arith.constant dense<0.000000e+00> : vector<1x192xf32>
    %901 = tpu.matmul %898, %744, %cst_114 {dimension_numbers = #tpu.dot_dimension_numbers<[1], [0], [0], [1], [0, 0, 1, 1], [], []>} : vector<1x64xf32>, vector<64x192xf32>, vector<1x192xf32> -> vector<1x192xf32>
    %902 = vector.extract_strided_slice %901 {offsets = [0, 0], sizes = [1, 64], strides = [1, 1]} : vector<1x192xf32> to vector<1x64xf32>
    %903 = arith.addf %762, %902 : vector<1x64xf32>
    %904 = arith.negf %903 : vector<1x64xf32>
    %905 = math.exp %904 : vector<1x64xf32>
    %cst_115 = arith.constant 1.000000e+00 : f32
    %906 = vector.broadcast %cst_115 : f32 to vector<1x64xf32>
    %907 = arith.addf %906, %905 : vector<1x64xf32>
    %908 = arith.divf %906, %907 : vector<1x64xf32>
    %909 = vector.extract_strided_slice %901 {offsets = [0, 64], sizes = [1, 64], strides = [1, 1]} : vector<1x192xf32> to vector<1x64xf32>
    %910 = arith.addf %802, %909 : vector<1x64xf32>
    %911 = arith.negf %910 : vector<1x64xf32>
    %912 = math.exp %911 : vector<1x64xf32>
    %cst_116 = arith.constant 1.000000e+00 : f32
    %913 = vector.broadcast %cst_116 : f32 to vector<1x64xf32>
    %914 = arith.addf %913, %912 : vector<1x64xf32>
    %915 = arith.divf %913, %914 : vector<1x64xf32>
    %916 = vector.extract_strided_slice %901 {offsets = [0, 128], sizes = [1, 64], strides = [1, 1]} : vector<1x192xf32> to vector<1x64xf32>
    %917 = arith.addf %916, %748 : vector<1x64xf32>
    %918 = arith.mulf %908, %917 : vector<1x64xf32>
    %919 = arith.addf %842, %918 : vector<1x64xf32>
    %920 = math.tanh %919 : vector<1x64xf32>
    %cst_117 = arith.constant 1.000000e+00 : f32
    %921 = vector.broadcast %cst_117 : f32 to vector<1x64xf32>
    %922 = arith.subf %921, %915 : vector<1x64xf32>
    %923 = arith.mulf %922, %920 : vector<1x64xf32>
    %924 = arith.mulf %915, %898 : vector<1x64xf32>
    %925 = arith.addf %923, %924 : vector<1x64xf32>
    %926 = vector.extract_strided_slice %925 {offsets = [0, 0], sizes = [1, 32], strides = [1, 1]} : vector<1x64xf32> to vector<1x32xf32>
    %927 = vector.extract_strided_slice %925 {offsets = [0, 32], sizes = [1, 32], strides = [1, 1]} : vector<1x64xf32> to vector<1x32xf32>
    %cst_118 = arith.constant dense<0.000000e+00> : vector<1x192xf32>
    %928 = tpu.matmul %925, %744, %cst_118 {dimension_numbers = #tpu.dot_dimension_numbers<[1], [0], [0], [1], [0, 0, 1, 1], [], []>} : vector<1x64xf32>, vector<64x192xf32>, vector<1x192xf32> -> vector<1x192xf32>
    %929 = vector.extract_strided_slice %928 {offsets = [0, 0], sizes = [1, 64], strides = [1, 1]} : vector<1x192xf32> to vector<1x64xf32>
    %930 = arith.addf %767, %929 : vector<1x64xf32>
    %931 = arith.negf %930 : vector<1x64xf32>
    %932 = math.exp %931 : vector<1x64xf32>
    %cst_119 = arith.constant 1.000000e+00 : f32
    %933 = vector.broadcast %cst_119 : f32 to vector<1x64xf32>
    %934 = arith.addf %933, %932 : vector<1x64xf32>
    %935 = arith.divf %933, %934 : vector<1x64xf32>
    %936 = vector.extract_strided_slice %928 {offsets = [0, 64], sizes = [1, 64], strides = [1, 1]} : vector<1x192xf32> to vector<1x64xf32>
    %937 = arith.addf %807, %936 : vector<1x64xf32>
    %938 = arith.negf %937 : vector<1x64xf32>
    %939 = math.exp %938 : vector<1x64xf32>
    %cst_120 = arith.constant 1.000000e+00 : f32
    %940 = vector.broadcast %cst_120 : f32 to vector<1x64xf32>
    %941 = arith.addf %940, %939 : vector<1x64xf32>
    %942 = arith.divf %940, %941 : vector<1x64xf32>
    %943 = vector.extract_strided_slice %928 {offsets = [0, 128], sizes = [1, 64], strides = [1, 1]} : vector<1x192xf32> to vector<1x64xf32>
    %944 = arith.addf %943, %748 : vector<1x64xf32>
    %945 = arith.mulf %935, %944 : vector<1x64xf32>
    %946 = arith.addf %847, %945 : vector<1x64xf32>
    %947 = math.tanh %946 : vector<1x64xf32>
    %cst_121 = arith.constant 1.000000e+00 : f32
    %948 = vector.broadcast %cst_121 : f32 to vector<1x64xf32>
    %949 = arith.subf %948, %942 : vector<1x64xf32>
    %950 = arith.mulf %949, %947 : vector<1x64xf32>
    %951 = arith.mulf %942, %925 : vector<1x64xf32>
    %952 = arith.addf %950, %951 : vector<1x64xf32>
    %953 = vector.extract_strided_slice %952 {offsets = [0, 0], sizes = [1, 32], strides = [1, 1]} : vector<1x64xf32> to vector<1x32xf32>
    %954 = vector.extract_strided_slice %952 {offsets = [0, 32], sizes = [1, 32], strides = [1, 1]} : vector<1x64xf32> to vector<1x32xf32>
    %cst_122 = arith.constant dense<0.000000e+00> : vector<1x192xf32>
    %955 = tpu.matmul %952, %744, %cst_122 {dimension_numbers = #tpu.dot_dimension_numbers<[1], [0], [0], [1], [0, 0, 1, 1], [], []>} : vector<1x64xf32>, vector<64x192xf32>, vector<1x192xf32> -> vector<1x192xf32>
    %956 = vector.extract_strided_slice %955 {offsets = [0, 0], sizes = [1, 64], strides = [1, 1]} : vector<1x192xf32> to vector<1x64xf32>
    %957 = arith.addf %772, %956 : vector<1x64xf32>
    %958 = arith.negf %957 : vector<1x64xf32>
    %959 = math.exp %958 : vector<1x64xf32>
    %cst_123 = arith.constant 1.000000e+00 : f32
    %960 = vector.broadcast %cst_123 : f32 to vector<1x64xf32>
    %961 = arith.addf %960, %959 : vector<1x64xf32>
    %962 = arith.divf %960, %961 : vector<1x64xf32>
    %963 = vector.extract_strided_slice %955 {offsets = [0, 64], sizes = [1, 64], strides = [1, 1]} : vector<1x192xf32> to vector<1x64xf32>
    %964 = arith.addf %812, %963 : vector<1x64xf32>
    %965 = arith.negf %964 : vector<1x64xf32>
    %966 = math.exp %965 : vector<1x64xf32>
    %cst_124 = arith.constant 1.000000e+00 : f32
    %967 = vector.broadcast %cst_124 : f32 to vector<1x64xf32>
    %968 = arith.addf %967, %966 : vector<1x64xf32>
    %969 = arith.divf %967, %968 : vector<1x64xf32>
    %970 = vector.extract_strided_slice %955 {offsets = [0, 128], sizes = [1, 64], strides = [1, 1]} : vector<1x192xf32> to vector<1x64xf32>
    %971 = arith.addf %970, %748 : vector<1x64xf32>
    %972 = arith.mulf %962, %971 : vector<1x64xf32>
    %973 = arith.addf %852, %972 : vector<1x64xf32>
    %974 = math.tanh %973 : vector<1x64xf32>
    %cst_125 = arith.constant 1.000000e+00 : f32
    %975 = vector.broadcast %cst_125 : f32 to vector<1x64xf32>
    %976 = arith.subf %975, %969 : vector<1x64xf32>
    %977 = arith.mulf %976, %974 : vector<1x64xf32>
    %978 = arith.mulf %969, %952 : vector<1x64xf32>
    %979 = arith.addf %977, %978 : vector<1x64xf32>
    %980 = vector.extract_strided_slice %979 {offsets = [0, 0], sizes = [1, 32], strides = [1, 1]} : vector<1x64xf32> to vector<1x32xf32>
    %981 = vector.extract_strided_slice %979 {offsets = [0, 32], sizes = [1, 32], strides = [1, 1]} : vector<1x64xf32> to vector<1x32xf32>
    %cst_126 = arith.constant dense<0.000000e+00> : vector<1x192xf32>
    %982 = tpu.matmul %979, %744, %cst_126 {dimension_numbers = #tpu.dot_dimension_numbers<[1], [0], [0], [1], [0, 0, 1, 1], [], []>} : vector<1x64xf32>, vector<64x192xf32>, vector<1x192xf32> -> vector<1x192xf32>
    %983 = vector.extract_strided_slice %982 {offsets = [0, 0], sizes = [1, 64], strides = [1, 1]} : vector<1x192xf32> to vector<1x64xf32>
    %984 = arith.addf %777, %983 : vector<1x64xf32>
    %985 = arith.negf %984 : vector<1x64xf32>
    %986 = math.exp %985 : vector<1x64xf32>
    %cst_127 = arith.constant 1.000000e+00 : f32
    %987 = vector.broadcast %cst_127 : f32 to vector<1x64xf32>
    %988 = arith.addf %987, %986 : vector<1x64xf32>
    %989 = arith.divf %987, %988 : vector<1x64xf32>
    %990 = vector.extract_strided_slice %982 {offsets = [0, 64], sizes = [1, 64], strides = [1, 1]} : vector<1x192xf32> to vector<1x64xf32>
    %991 = arith.addf %817, %990 : vector<1x64xf32>
    %992 = arith.negf %991 : vector<1x64xf32>
    %993 = math.exp %992 : vector<1x64xf32>
    %cst_128 = arith.constant 1.000000e+00 : f32
    %994 = vector.broadcast %cst_128 : f32 to vector<1x64xf32>
    %995 = arith.addf %994, %993 : vector<1x64xf32>
    %996 = arith.divf %994, %995 : vector<1x64xf32>
    %997 = vector.extract_strided_slice %982 {offsets = [0, 128], sizes = [1, 64], strides = [1, 1]} : vector<1x192xf32> to vector<1x64xf32>
    %998 = arith.addf %997, %748 : vector<1x64xf32>
    %999 = arith.mulf %989, %998 : vector<1x64xf32>
    %1000 = arith.addf %857, %999 : vector<1x64xf32>
    %1001 = math.tanh %1000 : vector<1x64xf32>
    %cst_129 = arith.constant 1.000000e+00 : f32
    %1002 = vector.broadcast %cst_129 : f32 to vector<1x64xf32>
    %1003 = arith.subf %1002, %996 : vector<1x64xf32>
    %1004 = arith.mulf %1003, %1001 : vector<1x64xf32>
    %1005 = arith.mulf %996, %979 : vector<1x64xf32>
    %1006 = arith.addf %1004, %1005 : vector<1x64xf32>
    %1007 = vector.extract_strided_slice %1006 {offsets = [0, 0], sizes = [1, 32], strides = [1, 1]} : vector<1x64xf32> to vector<1x32xf32>
    %1008 = vector.extract_strided_slice %1006 {offsets = [0, 32], sizes = [1, 32], strides = [1, 1]} : vector<1x64xf32> to vector<1x32xf32>
    %cst_130 = arith.constant dense<0.000000e+00> : vector<1x192xf32>
    %1009 = tpu.matmul %1006, %744, %cst_130 {dimension_numbers = #tpu.dot_dimension_numbers<[1], [0], [0], [1], [0, 0, 1, 1], [], []>} : vector<1x64xf32>, vector<64x192xf32>, vector<1x192xf32> -> vector<1x192xf32>
    %1010 = vector.extract_strided_slice %1009 {offsets = [0, 0], sizes = [1, 64], strides = [1, 1]} : vector<1x192xf32> to vector<1x64xf32>
    %1011 = arith.addf %782, %1010 : vector<1x64xf32>
    %1012 = arith.negf %1011 : vector<1x64xf32>
    %1013 = math.exp %1012 : vector<1x64xf32>
    %cst_131 = arith.constant 1.000000e+00 : f32
    %1014 = vector.broadcast %cst_131 : f32 to vector<1x64xf32>
    %1015 = arith.addf %1014, %1013 : vector<1x64xf32>
    %1016 = arith.divf %1014, %1015 : vector<1x64xf32>
    %1017 = vector.extract_strided_slice %1009 {offsets = [0, 64], sizes = [1, 64], strides = [1, 1]} : vector<1x192xf32> to vector<1x64xf32>
    %1018 = arith.addf %822, %1017 : vector<1x64xf32>
    %1019 = arith.negf %1018 : vector<1x64xf32>
    %1020 = math.exp %1019 : vector<1x64xf32>
    %cst_132 = arith.constant 1.000000e+00 : f32
    %1021 = vector.broadcast %cst_132 : f32 to vector<1x64xf32>
    %1022 = arith.addf %1021, %1020 : vector<1x64xf32>
    %1023 = arith.divf %1021, %1022 : vector<1x64xf32>
    %1024 = vector.extract_strided_slice %1009 {offsets = [0, 128], sizes = [1, 64], strides = [1, 1]} : vector<1x192xf32> to vector<1x64xf32>
    %1025 = arith.addf %1024, %748 : vector<1x64xf32>
    %1026 = arith.mulf %1016, %1025 : vector<1x64xf32>
    %1027 = arith.addf %862, %1026 : vector<1x64xf32>
    %1028 = math.tanh %1027 : vector<1x64xf32>
    %cst_133 = arith.constant 1.000000e+00 : f32
    %1029 = vector.broadcast %cst_133 : f32 to vector<1x64xf32>
    %1030 = arith.subf %1029, %1023 : vector<1x64xf32>
    %1031 = arith.mulf %1030, %1028 : vector<1x64xf32>
    %1032 = arith.mulf %1023, %1006 : vector<1x64xf32>
    %1033 = arith.addf %1031, %1032 : vector<1x64xf32>
    %1034 = vector.extract_strided_slice %1033 {offsets = [0, 0], sizes = [1, 32], strides = [1, 1]} : vector<1x64xf32> to vector<1x32xf32>
    %1035 = vector.extract_strided_slice %1033 {offsets = [0, 32], sizes = [1, 32], strides = [1, 1]} : vector<1x64xf32> to vector<1x32xf32>
    %cst_134 = arith.constant dense<0.000000e+00> : vector<1x192xf32>
    %1036 = tpu.matmul %1033, %744, %cst_134 {dimension_numbers = #tpu.dot_dimension_numbers<[1], [0], [0], [1], [0, 0, 1, 1], [], []>} : vector<1x64xf32>, vector<64x192xf32>, vector<1x192xf32> -> vector<1x192xf32>
    %1037 = vector.extract_strided_slice %1036 {offsets = [0, 0], sizes = [1, 64], strides = [1, 1]} : vector<1x192xf32> to vector<1x64xf32>
    %1038 = arith.addf %787, %1037 : vector<1x64xf32>
    %1039 = arith.negf %1038 : vector<1x64xf32>
    %1040 = math.exp %1039 : vector<1x64xf32>
    %cst_135 = arith.constant 1.000000e+00 : f32
    %1041 = vector.broadcast %cst_135 : f32 to vector<1x64xf32>
    %1042 = arith.addf %1041, %1040 : vector<1x64xf32>
    %1043 = arith.divf %1041, %1042 : vector<1x64xf32>
    %1044 = vector.extract_strided_slice %1036 {offsets = [0, 64], sizes = [1, 64], strides = [1, 1]} : vector<1x192xf32> to vector<1x64xf32>
    %1045 = arith.addf %827, %1044 : vector<1x64xf32>
    %1046 = arith.negf %1045 : vector<1x64xf32>
    %1047 = math.exp %1046 : vector<1x64xf32>
    %cst_136 = arith.constant 1.000000e+00 : f32
    %1048 = vector.broadcast %cst_136 : f32 to vector<1x64xf32>
    %1049 = arith.addf %1048, %1047 : vector<1x64xf32>
    %1050 = arith.divf %1048, %1049 : vector<1x64xf32>
    %1051 = vector.extract_strided_slice %1036 {offsets = [0, 128], sizes = [1, 64], strides = [1, 1]} : vector<1x192xf32> to vector<1x64xf32>
    %1052 = arith.addf %1051, %748 : vector<1x64xf32>
    %1053 = arith.mulf %1043, %1052 : vector<1x64xf32>
    %1054 = arith.addf %867, %1053 : vector<1x64xf32>
    %1055 = math.tanh %1054 : vector<1x64xf32>
    %cst_137 = arith.constant 1.000000e+00 : f32
    %1056 = vector.broadcast %cst_137 : f32 to vector<1x64xf32>
    %1057 = arith.subf %1056, %1050 : vector<1x64xf32>
    %1058 = arith.mulf %1057, %1055 : vector<1x64xf32>
    %1059 = arith.mulf %1050, %1033 : vector<1x64xf32>
    %1060 = arith.addf %1058, %1059 : vector<1x64xf32>
    %1061 = vector.extract_strided_slice %1060 {offsets = [0, 0], sizes = [1, 32], strides = [1, 1]} : vector<1x64xf32> to vector<1x32xf32>
    %1062 = vector.extract_strided_slice %1060 {offsets = [0, 32], sizes = [1, 32], strides = [1, 1]} : vector<1x64xf32> to vector<1x32xf32>
    %cst_138 = arith.constant dense<0.000000e+00> : vector<1x192xf32>
    %1063 = tpu.matmul %1060, %744, %cst_138 {dimension_numbers = #tpu.dot_dimension_numbers<[1], [0], [0], [1], [0, 0, 1, 1], [], []>} : vector<1x64xf32>, vector<64x192xf32>, vector<1x192xf32> -> vector<1x192xf32>
    %1064 = vector.extract_strided_slice %1063 {offsets = [0, 0], sizes = [1, 64], strides = [1, 1]} : vector<1x192xf32> to vector<1x64xf32>
    %1065 = arith.addf %792, %1064 : vector<1x64xf32>
    %1066 = arith.negf %1065 : vector<1x64xf32>
    %1067 = math.exp %1066 : vector<1x64xf32>
    %cst_139 = arith.constant 1.000000e+00 : f32
    %1068 = vector.broadcast %cst_139 : f32 to vector<1x64xf32>
    %1069 = arith.addf %1068, %1067 : vector<1x64xf32>
    %1070 = arith.divf %1068, %1069 : vector<1x64xf32>
    %1071 = vector.extract_strided_slice %1063 {offsets = [0, 64], sizes = [1, 64], strides = [1, 1]} : vector<1x192xf32> to vector<1x64xf32>
    %1072 = arith.addf %832, %1071 : vector<1x64xf32>
    %1073 = arith.negf %1072 : vector<1x64xf32>
    %1074 = math.exp %1073 : vector<1x64xf32>
    %cst_140 = arith.constant 1.000000e+00 : f32
    %1075 = vector.broadcast %cst_140 : f32 to vector<1x64xf32>
    %1076 = arith.addf %1075, %1074 : vector<1x64xf32>
    %1077 = arith.divf %1075, %1076 : vector<1x64xf32>
    %1078 = vector.extract_strided_slice %1063 {offsets = [0, 128], sizes = [1, 64], strides = [1, 1]} : vector<1x192xf32> to vector<1x64xf32>
    %1079 = arith.addf %1078, %748 : vector<1x64xf32>
    %1080 = arith.mulf %1070, %1079 : vector<1x64xf32>
    %1081 = arith.addf %872, %1080 : vector<1x64xf32>
    %1082 = math.tanh %1081 : vector<1x64xf32>
    %cst_141 = arith.constant 1.000000e+00 : f32
    %1083 = vector.broadcast %cst_141 : f32 to vector<1x64xf32>
    %1084 = arith.subf %1083, %1077 : vector<1x64xf32>
    %1085 = arith.mulf %1084, %1082 : vector<1x64xf32>
    %1086 = arith.mulf %1077, %1060 : vector<1x64xf32>
    %1087 = arith.addf %1085, %1086 : vector<1x64xf32>
    %1088 = vector.extract_strided_slice %1087 {offsets = [0, 0], sizes = [1, 32], strides = [1, 1]} : vector<1x64xf32> to vector<1x32xf32>
    %1089 = vector.extract_strided_slice %1087 {offsets = [0, 32], sizes = [1, 32], strides = [1, 1]} : vector<1x64xf32> to vector<1x32xf32>
    %1090 = tpu.concatenate %899, %1089 in 1 : vector<1x32xf32>, vector<1x32xf32> -> vector<1x64xf32>
    %1091 = tpu.concatenate %926, %1062 in 1 : vector<1x32xf32>, vector<1x32xf32> -> vector<1x64xf32>
    %1092 = tpu.concatenate %953, %1035 in 1 : vector<1x32xf32>, vector<1x32xf32> -> vector<1x64xf32>
    %1093 = tpu.concatenate %980, %1008 in 1 : vector<1x32xf32>, vector<1x32xf32> -> vector<1x64xf32>
    %1094 = tpu.concatenate %1007, %981 in 1 : vector<1x32xf32>, vector<1x32xf32> -> vector<1x64xf32>
    %1095 = tpu.concatenate %1034, %954 in 1 : vector<1x32xf32>, vector<1x32xf32> -> vector<1x64xf32>
    %1096 = tpu.concatenate %1061, %927 in 1 : vector<1x32xf32>, vector<1x32xf32> -> vector<1x64xf32>
    %1097 = tpu.concatenate %1088, %900 in 1 : vector<1x32xf32>, vector<1x32xf32> -> vector<1x64xf32>
    %1098 = vector.shape_cast %1090 : vector<1x64xf32> to vector<1x1x64xf32>
    %1099 = vector.shape_cast %1091 : vector<1x64xf32> to vector<1x1x64xf32>
    %1100 = vector.shape_cast %1092 : vector<1x64xf32> to vector<1x1x64xf32>
    %1101 = vector.shape_cast %1093 : vector<1x64xf32> to vector<1x1x64xf32>
    %1102 = vector.shape_cast %1094 : vector<1x64xf32> to vector<1x1x64xf32>
    %1103 = vector.shape_cast %1095 : vector<1x64xf32> to vector<1x1x64xf32>
    %1104 = vector.shape_cast %1096 : vector<1x64xf32> to vector<1x1x64xf32>
    %1105 = vector.shape_cast %1097 : vector<1x64xf32> to vector<1x1x64xf32>
    %1106 = tpu.concatenate %1098, %1099, %1100, %1101, %1102, %1103, %1104, %1105 in 1 : vector<1x1x64xf32>, vector<1x1x64xf32>, vector<1x1x64xf32>, vector<1x1x64xf32>, vector<1x1x64xf32>, vector<1x1x64xf32>, vector<1x1x64xf32>, vector<1x1x64xf32> -> vector<1x8x64xf32>
    %1107 = vector.shape_cast %1106 : vector<1x8x64xf32> to vector<8x64xf32>
    %c0_142 = arith.constant 0 : index
    %c0_143 = arith.constant 0 : index
    %1108 = vector.load %arg9[%c0_142, %c0_143] : memref<64x32xf32, #tpu.memory_space<vmem>>, vector<64x32xf32>
    %cst_144 = arith.constant dense<0.000000e+00> : vector<8x32xf32>
    %1109 = tpu.matmul %1107, %1108, %cst_144 {dimension_numbers = #tpu.dot_dimension_numbers<[1], [0], [0], [1], [0, 0, 1, 1], [], []>} : vector<8x64xf32>, vector<64x32xf32>, vector<8x32xf32> -> vector<8x32xf32>
    %c0_145 = arith.constant 0 : index
    %c0_146 = arith.constant 0 : index
    %1110 = vector.load %arg10[%c0_145, %c0_146] : memref<1x32xf32, #tpu.memory_space<vmem>>, vector<1x32xf32>
    %1111 = vector.broadcast %1110 : vector<1x32xf32> to vector<8x32xf32>
    %1112 = arith.addf %1109, %1111 : vector<8x32xf32>
    %1113 = math.tanh %1112 : vector<8x32xf32>
    %c0_147 = arith.constant 0 : index
    %c0_148 = arith.constant 0 : index
    %1114 = vector.load %arg11[%c0_147, %c0_148] : memref<32x1xf32, #tpu.memory_space<vmem>>, vector<32x1xf32>
    %cst_149 = arith.constant dense<0.000000e+00> : vector<8x1xf32>
    %1115 = tpu.matmul %1113, %1114, %cst_149 {dimension_numbers = #tpu.dot_dimension_numbers<[1], [0], [0], [1], [0, 0, 1, 1], [], []>} : vector<8x32xf32>, vector<32x1xf32>, vector<8x1xf32> -> vector<8x1xf32>
    %c0_150 = arith.constant 0 : index
    %c0_151 = arith.constant 0 : index
    %1116 = vector.load %arg12[%c0_150, %c0_151] : memref<1x1xf32, #tpu.memory_space<vmem>>, vector<1x1xf32>
    %1117 = vector.broadcast %1116 : vector<1x1xf32> to vector<8x1xf32>
    %1118 = arith.addf %1115, %1117 : vector<8x1xf32>
    %1119 = vector.shape_cast %1118 : vector<8x1xf32> to vector<1x8x1xf32>
    %cst_152 = arith.constant dense<0xFF800000> : vector<1x1xf32>
    %1120 = vector.multi_reduction <maximumf>, %1119, %cst_152 [1] : vector<1x8x1xf32> to vector<1x1xf32>
    %1121 = vector.shape_cast %1120 : vector<1x1xf32> to vector<1x1x1xf32>
    %1122 = vector.broadcast %1121 : vector<1x1x1xf32> to vector<1x8x1xf32>
    %1123 = arith.subf %1119, %1122 : vector<1x8x1xf32>
    %1124 = math.exp %1123 : vector<1x8x1xf32>
    %cst_153 = arith.constant dense<0.000000e+00> : vector<1x1xf32>
    %1125 = vector.multi_reduction <add>, %1124, %cst_153 [1] : vector<1x8x1xf32> to vector<1x1xf32>
    %1126 = vector.shape_cast %1125 : vector<1x1xf32> to vector<1x1x1xf32>
    %1127 = tpu.reciprocal %1126 {approx = true} : vector<1x1x1xf32> -> vector<1x1x1xf32>
    %1128 = vector.broadcast %1127 : vector<1x1x1xf32> to vector<1x8x1xf32>
    %1129 = arith.mulf %1124, %1128 : vector<1x8x1xf32>
    %1130 = vector.shape_cast %1107 : vector<8x64xf32> to vector<1x8x64xf32>
    %1131 = vector.broadcast %1129 : vector<1x8x1xf32> to vector<1x8x64xf32>
    %1132 = arith.mulf %1130, %1131 : vector<1x8x64xf32>
    %cst_154 = arith.constant dense<0.000000e+00> : vector<1x64xf32>
    %1133 = vector.multi_reduction <add>, %1132, %cst_154 [1] : vector<1x8x64xf32> to vector<1x64xf32>
    %c0_155 = arith.constant 0 : index
    %c0_156 = arith.constant 0 : index
    %1134 = vector.load %arg13[%c0_155, %c0_156] : memref<64x32xf32, #tpu.memory_space<vmem>>, vector<64x32xf32>
    %cst_157 = arith.constant dense<0.000000e+00> : vector<1x32xf32>
    %1135 = tpu.matmul %1133, %1134, %cst_157 {dimension_numbers = #tpu.dot_dimension_numbers<[1], [0], [0], [1], [0, 0, 1, 1], [], []>} : vector<1x64xf32>, vector<64x32xf32>, vector<1x32xf32> -> vector<1x32xf32>
    %c0_158 = arith.constant 0 : index
    %c0_159 = arith.constant 0 : index
    %1136 = vector.load %arg14[%c0_158, %c0_159] : memref<1x32xf32, #tpu.memory_space<vmem>>, vector<1x32xf32>
    %1137 = arith.addf %1135, %1136 : vector<1x32xf32>
    %cst_160 = arith.constant 5.000000e-01 : f32
    %1138 = vector.broadcast %cst_160 : f32 to vector<1x32xf32>
    %1139 = arith.mulf %1138, %1137 : vector<1x32xf32>
    %cst_161 = arith.constant 0.707106769 : f32
    %1140 = vector.broadcast %cst_161 : f32 to vector<1x32xf32>
    %1141 = arith.mulf %1137, %1140 : vector<1x32xf32>
    %1142 = math.erf %1141 : vector<1x32xf32>
    %cst_162 = arith.constant 1.000000e+00 : f32
    %1143 = vector.broadcast %cst_162 : f32 to vector<1x32xf32>
    %1144 = arith.addf %1143, %1142 : vector<1x32xf32>
    %1145 = arith.mulf %1139, %1144 : vector<1x32xf32>
    %c0_163 = arith.constant 0 : index
    %c0_164 = arith.constant 0 : index
    %1146 = vector.load %arg15[%c0_163, %c0_164] : memref<32x1xf32, #tpu.memory_space<vmem>>, vector<32x1xf32>
    %cst_165 = arith.constant dense<0.000000e+00> : vector<1x1xf32>
    %1147 = tpu.matmul %1145, %1146, %cst_165 {dimension_numbers = #tpu.dot_dimension_numbers<[1], [0], [0], [1], [0, 0, 1, 1], [], []>} : vector<1x32xf32>, vector<32x1xf32>, vector<1x1xf32> -> vector<1x1xf32>
    %c0_166 = arith.constant 0 : index
    %c0_167 = arith.constant 0 : index
    %1148 = vector.load %arg16[%c0_166, %c0_167] : memref<1x1xf32, #tpu.memory_space<vmem>>, vector<1x1xf32>
    %1149 = arith.addf %1147, %1148 : vector<1x1xf32>
    %c0_168 = arith.constant 0 : index
    %c0_169 = arith.constant 0 : index
    %c0_170 = arith.constant 0 : index
    %1150 = vector.load %arg17[%c0_168, %c0_169, %c0_170] : memref<1x1x1xf32, #tpu.memory_space<vmem>>, vector<1x1x1xf32>
    %1151 = vector.shape_cast %1150 : vector<1x1x1xf32> to vector<1x1xf32>
    %1152 = vector.shape_cast %1149 : vector<1x1xf32> to vector<1x1x1xf32>
    tpu.vector_store %arg17[%c0_168, %c0_169, %c0_170], %1152 {strides = array<i32>} : memref<1x1x1xf32, #tpu.memory_space<vmem>>, vector<1x1x1xf32>,
    return
  }
  func.func @transform_0(%arg0: i32) -> (i32, i32, i32, i32) {
    %c0_i32 = arith.constant 0 : i32
    %c0_i32_0 = arith.constant 0 : i32
    %c0_i32_1 = arith.constant 0 : i32
    %c0_i32_2 = arith.constant 0 : i32
    return %arg0, %c0_i32, %c0_i32_0, %c0_i32_1 : i32, i32, i32, i32
  }
  func.func @transform_1(%arg0: i32) -> (i32, i32) {
    %c0_i32 = arith.constant 0 : i32
    %c0_i32_0 = arith.constant 0 : i32
    %c0_i32_1 = arith.constant 0 : i32
    return %c0_i32, %c0_i32_0 : i32, i32
  }
  func.func @transform_2(%arg0: i32) -> (i32, i32) {
    %c0_i32 = arith.constant 0 : i32
    %c0_i32_0 = arith.constant 0 : i32
    %c0_i32_1 = arith.constant 0 : i32
    return %c0_i32, %c0_i32_0 : i32, i32
  }
  func.func @transform_3(%arg0: i32) -> (i32, i32) {
    %c0_i32 = arith.constant 0 : i32
    %c0_i32_0 = arith.constant 0 : i32
    %c0_i32_1 = arith.constant 0 : i32
    return %c0_i32, %c0_i32_0 : i32, i32
  }
  func.func @transform_4(%arg0: i32) -> (i32, i32, i32) {
    %c0_i32 = arith.constant 0 : i32
    %c0_i32_0 = arith.constant 0 : i32
    %c0_i32_1 = arith.constant 0 : i32
    %c0_i32_2 = arith.constant 0 : i32
    return %c0_i32, %c0_i32_0, %c0_i32_1 : i32, i32, i32
  }
  func.func @transform_5(%arg0: i32) -> (i32, i32, i32) {
    %c0_i32 = arith.constant 0 : i32
    %c0_i32_0 = arith.constant 0 : i32
    %c0_i32_1 = arith.constant 0 : i32
    %c0_i32_2 = arith.constant 0 : i32
    return %c0_i32, %c0_i32_0, %c0_i32_1 : i32, i32, i32
  }
  func.func @transform_6(%arg0: i32) -> (i32, i32, i32) {
    %c0_i32 = arith.constant 0 : i32
    %c0_i32_0 = arith.constant 0 : i32
    %c0_i32_1 = arith.constant 0 : i32
    %c0_i32_2 = arith.constant 0 : i32
    return %c0_i32, %c0_i32_0, %c0_i32_1 : i32, i32, i32
  }
  func.func @transform_7(%arg0: i32) -> (i32, i32, i32) {
    %c0_i32 = arith.constant 0 : i32
    %c0_i32_0 = arith.constant 0 : i32
    %c0_i32_1 = arith.constant 0 : i32
    %c0_i32_2 = arith.constant 0 : i32
    return %c0_i32, %c0_i32_0, %c0_i32_1 : i32, i32, i32
  }
  func.func @transform_8(%arg0: i32) -> (i32, i32) {
    %c0_i32 = arith.constant 0 : i32
    %c0_i32_0 = arith.constant 0 : i32
    %c0_i32_1 = arith.constant 0 : i32
    return %c0_i32, %c0_i32_0 : i32, i32
  }
  func.func @transform_9(%arg0: i32) -> (i32, i32) {
    %c0_i32 = arith.constant 0 : i32
    %c0_i32_0 = arith.constant 0 : i32
    %c0_i32_1 = arith.constant 0 : i32
    return %c0_i32, %c0_i32_0 : i32, i32
  }
  func.func @transform_10(%arg0: i32) -> (i32, i32) {
    %c0_i32 = arith.constant 0 : i32
    %c0_i32_0 = arith.constant 0 : i32
    %c0_i32_1 = arith.constant 0 : i32
    return %c0_i32, %c0_i32_0 : i32, i32
  }
  func.func @transform_11(%arg0: i32) -> (i32, i32) {
    %c0_i32 = arith.constant 0 : i32
    %c0_i32_0 = arith.constant 0 : i32
    %c0_i32_1 = arith.constant 0 : i32
    return %c0_i32, %c0_i32_0 : i32, i32
  }
  func.func @transform_12(%arg0: i32) -> (i32, i32) {
    %c0_i32 = arith.constant 0 : i32
    %c0_i32_0 = arith.constant 0 : i32
    %c0_i32_1 = arith.constant 0 : i32
    return %c0_i32, %c0_i32_0 : i32, i32
  }
  func.func @transform_13(%arg0: i32) -> (i32, i32) {
    %c0_i32 = arith.constant 0 : i32
    %c0_i32_0 = arith.constant 0 : i32
    %c0_i32_1 = arith.constant 0 : i32
    return %c0_i32, %c0_i32_0 : i32, i32
  }
  func.func @transform_14(%arg0: i32) -> (i32, i32) {
    %c0_i32 = arith.constant 0 : i32
    %c0_i32_0 = arith.constant 0 : i32
    %c0_i32_1 = arith.constant 0 : i32
    return %c0_i32, %c0_i32_0 : i32, i32
  }
  func.func @transform_15(%arg0: i32) -> (i32, i32) {
    %c0_i32 = arith.constant 0 : i32
    %c0_i32_0 = arith.constant 0 : i32
    %c0_i32_1 = arith.constant 0 : i32
    return %c0_i32, %c0_i32_0 : i32, i32
  }
  func.func @transform_16(%arg0: i32) -> (i32, i32, i32) {
    %c0_i32 = arith.constant 0 : i32
    %c0_i32_0 = arith.constant 0 : i32
    %c0_i32_1 = arith.constant 0 : i32
    return %arg0, %c0_i32, %c0_i32_0 : i32, i32, i32
  }
}

</mosaic_0001>

<bundles_post_ra>
// kernel: lightweight_dpo_forward.1
= control target key start
LH: loop header
LB: loop body
LE: loop exit
PB: predicated region body
PF: predicated region fallthrough
CT: control target
= control target key end

     0   :  { %s6894_s0 = inlined_call_operand.vmem [shape: f32[2,1,8,16], index: 0, kind: input, shape index: {}]   ;;  %s6895_s1 = inlined_call_operand.hbm [shape: f32[16,32], index: 1, kind: input, shape index: {}]   ;;  %s6896_s2 = inlined_call_operand.hbm [shape: f32[1,32], index: 2, kind: input, shape index: {}]   ;;  %s6897_s3 = inlined_call_operand.hbm [shape: f32[32,192], index: 3, kind: input, shape index: {}]   ;;  %s6898_s4 = inlined_call_operand.vmem [shape: f32[2,64,192], index: 4, kind: input, shape index: {}]   ;;  %s6899_s5 = inlined_call_operand.hbm [shape: f32[3,64,192], index: 5, kind: input, shape index: {}]   ;;  %s6900_s6 = inlined_call_operand.vmem [shape: f32[3,1,192], index: 6, kind: input, shape index: {}]   ;;  %s6901_s7 = inlined_call_operand.hbm [shape: f32[3,1,64], index: 7, kind: input, shape index: {}]   ;;  %s6902_s8 = inlined_call_operand.vmem [shape: f32[64,32], index: 8, kind: input, shape index: {}]   ;;  %s6903_s9 = inlined_call_operand.hbm [shape: f32[1,32], index: 9, kind: input, shape index: {}]   ;;  %s6904_s10 = inlined_call_operand.vmem [shape: f32[32,1], index: 10, kind: input, shape index: {}]   ;;  %s6905_s11 = inlined_call_operand.<no memory space> [shape: f32[1,1], index: 11, kind: input, shape index: {}]   ;;  %s6906_s12 = inlined_call_operand.vmem [shape: f32[64,32], index: 12, kind: input, shape index: {}]   ;;  %s6907_s13 = inlined_call_operand.hbm [shape: f32[1,32], index: 13, kind: input, shape index: {}]   ;;  %s6908_s14 = inlined_call_operand.vmem [shape: f32[32,1], index: 14, kind: input, shape index: {}]   ;;  %s6909_s16 = inlined_call_operand.vmem [shape: f32[2,1,1], index: 16, kind: output, shape index: {}]   ;;  %s6910_s15 = inlined_call_operand.<no memory space> [shape: f32[1,1], index: 15, kind: input, shape index: {}]  }
   0x1   :  { %6917 = sst [smem:[#allocation20_spill]] %s6894_s0  ;;  %v21_v0 = vstv %s6905_s11  ;;  %v23_v1 = vstv %s6910_s15 }
   0x2   :  { %6918 = sst [smem:[#allocation21_spill]] %s6896_s2  ;;  %22 = vst [vmem:[#allocation2] sm:$0x1] %v21_v0  ;;  %24 = vst [vmem:[#allocation3] sm:$0x1] %v23_v1 }
   0x3   :  { %6919 = sst [smem:[#allocation22_spill]] %s6899_s5 }
   0x4   :  { %6920 = sst [smem:[#allocation23_spill]] %s6903_s9 }
   0x5   :  { %25 = vsyncpa [#allocation5], 0 }
   0x6   :  { %26 = vsyncpa [#allocation7], 0 }
   0x7   :  { %27 = vsyncpa [#allocation10], 0 }
   0x8   :  { %28 = vsyncpa [#allocation13], 0  ;;  %s5685_s25 = smov 0  }
   0x9 LB: > { %6921 = sst [smem:[#allocation19_spill]] %s5575_s25  ;;  %s5577_s11 = smov [#allocation6]   ;;  %s5575_s25 = sphi %s5685_s25, %s34_s25  }
   0xa   : > { %s432_s26 = sshll.u32 %s5577_s11, 4  ;;  %s5691_s27 = sadd.s32 4294967295, %s5575_s25   ;;  %s5696_s26 = int_to_ptr.vmem [resolvable:$true] %s432_s26 }
   0xb   : > { %p4339_p0 = scmp.ge.s32.totalorder %s5575_s25, 1  ;;  %p406_p1 = scmp.lt.s32.totalorder %s5575_s25, 3 }
   0xc   : > { %p6912_p2 = scmp.eq.s32.totalorder %s5691_s27, 0  ;;  %s5578_s28 = smov [#allocation9]  }
   0xd   : > { %p5698_p3 = pnand %p4339_p0, %p406_p1  ;;  %s458_s29 = sshll.u32 %s5578_s28, 4  ;;  %s5704_s29 = int_to_ptr.vmem [resolvable:$true] %s458_s29 }
   0xe   : > { %s5579_s0 = smov [#allocation12]   ;;  %s5580_s18 = smov [#allocation4]  }
   0xf   : > { %s6922_s15 = scalar_select %p5698_p3, 1, 0 }
  0x10   : > { %p5046_p4 = pneg %p5698_p3  ;;  %s491_s17 = sshll.u32 %s5579_s0, 4  ;;  %s5712_s17 = int_to_ptr.vmem [resolvable:$true] %s491_s17 }
  0x11   : > { %s5714_s19 = sshll.u32 %s5580_s18, 4  ;;  %s6924_s2 = sld [smem:[#allocation21_spill]]  ;;  %s419_s19 = int_to_ptr.vmem [resolvable:$true] %s5714_s19 }
  0x12   : > { %p5708_p5 = pnand %p6912_p2, %p5046_p4 }
  0x14   : > { %p5724_p7 = pneg %p5708_p5 }
  0x17   : > { %s5357_s22 = scalar_lea.hbm %s6924_s2, 16 }
  0x18   : > { %p5358_p6 = scmp.ne.s32.totalorder %s6924_s2, %s5357_s22  ;;  %p5364_p10 = scmp.lt.u32.totalorder %s5357_s22, %s6924_s2 }
  0x1a   : > { %p5360_p8 = pnand %p5724_p7, %p5358_p6 }
  0x1c   : > { %p5361_p9 = pneg %p5360_p8 }
  0x1e   : > { %p5366_p11 = pnand %p5364_p10, %p5361_p9 }
  0x20   : > { %5369 = shalt.err (!%p5366_p11)
}
  0x21   : > { %s5370_s18 = scalar_lea.vmem %s5696_s26, 16  ;;  %s5377_s20 = scalar_lea.vmem %s5696_s26, 32 }
  0x22   : > { %p5371_p12 = scmp.ne.s32.totalorder %s5696_s26, %s5370_s18  ;;  %p5378_p1 = scmp.lt.s32.totalorder %s5696_s26, %s5696_s26 }
  0x23   : > { %p5379_p4 = scmp.lt.s32.totalorder %s5377_s20, %s5370_s18 }
  0x24   : > { %p5373_p13 = pnand %p5371_p12, %p5724_p7 }
  0x25   : > { %p5380_p6 = por %p5379_p4, %p5378_p1 }
  0x26   : > { %p5374_p0 = pneg %p5373_p13 }
  0x28   : > { %p5381_p8 = pnand %p5380_p6, %p5374_p0 }
  0x2a   : > { %5384 = shalt.err (!%p5381_p8)
}
  0x2b   : > { %5052 = dma.hbm_to_vmem [thread:$0]  (!%p5708_p5), %s6924_s2, 16, %s5696_s26, [#allocation7]  }
  0x2c   : > { %s6926_s5 = sld [smem:[#allocation22_spill]] }
  0x32   : > { %s5385_s28 = scalar_lea.hbm %s6926_s5, 6144 }
  0x33   : > { %p5386_p9 = scmp.ne.s32.totalorder %s6926_s5, %s5385_s28  ;;  %p5392_p12 = scmp.lt.u32.totalorder %s5385_s28, %s6926_s5 }
  0x35   : > { %p5388_p10 = pnand %p5386_p9, %p5724_p7 }
  0x37   : > { %p5389_p11 = pneg %p5388_p10 }
  0x39   : > { %p5394_p13 = pnand %p5392_p12, %p5389_p11 }
  0x3b   : > { %5397 = shalt.err (!%p5394_p13)
}
  0x3c   : > { %s5398_s26 = scalar_lea.vmem %s5704_s29, 6144  ;;  %p5406_p6 = scmp.lt.s32.totalorder %s5704_s29, %s5704_s29 }
  0x3d   : > { %p5399_p0 = scmp.ne.s32.totalorder %s5704_s29, %s5398_s26  ;;  %p5407_p8 = scmp.lt.s32.totalorder %s5398_s26, %s5398_s26 }
  0x3f   : > { %p5401_p1 = pnand %p5399_p0, %p5724_p7  ;;  %p5408_p9 = por %p5407_p8, %p5406_p6 }
  0x41   : > { %p5402_p4 = pneg %p5401_p1 }
  0x43   : > { %p5409_p10 = pnand %p5408_p9, %p5402_p4 }
  0x45   : > { %5412 = shalt.err (!%p5409_p10)
}
  0x46   : > { %s6914_s25 = smov 256   ;;  %s6915_s21 = smov 16  }
  0x47   : > { %5058 = dma.hbm_to_vmem [thread:$0]  (!%p5708_p5), %s6926_s5, 6144, %s5704_s29, [#allocation10], %s6914_s25, %s6914_s25, %s6915_s21  }
  0x48   : > { %s6927_s9 = sld [smem:[#allocation23_spill]] }
  0x4e   : > { %s5413_s0 = scalar_lea.hbm %s6927_s9, 16 }
  0x4f   : > { %p5414_p11 = scmp.ne.s32.totalorder %s6927_s9, %s5413_s0  ;;  %p5420_p0 = scmp.lt.u32.totalorder %s5413_s0, %s6927_s9 }
  0x51   : > { %p5416_p12 = pnand %p5414_p11, %p5724_p7 }
  0x53   : > { %p5417_p13 = pneg %p5416_p12 }
  0x55   : > { %p5422_p1 = pnand %p5420_p0, %p5417_p13 }
  0x57   : > { %5425 = shalt.err (!%p5422_p1)
}
  0x58   : > { %s5426_s29 = scalar_lea.vmem %s5712_s17, 16  ;;  %s5433_s22 = scalar_lea.vmem %s5712_s17, 32 }
  0x59   : > { %p5427_p4 = scmp.ne.s32.totalorder %s5712_s17, %s5426_s29  ;;  %p5434_p9 = scmp.lt.s32.totalorder %s5712_s17, %s5712_s17 }
  0x5a   : > { %p5435_p10 = scmp.lt.s32.totalorder %s5433_s22, %s5426_s29 }
  0x5b   : > { %p5429_p6 = pnand %p5427_p4, %p5724_p7 }
  0x5c   : > { %p5436_p11 = por %p5435_p10, %p5434_p9 }
  0x5d   : > { %p5430_p8 = pneg %p5429_p6 }
  0x5f   : > { %p5437_p12 = pnand %p5436_p11, %p5430_p8 }
  0x61   : > { %5440 = shalt.err (!%p5437_p12)
}
  0x62   : > { %5064 = dma.hbm_to_vmem [thread:$0]  (!%p5708_p5), %s6927_s9, 16, %s5712_s17, [#allocation13]  }
  0x63   : > { %s5441_s0 = scalar_lea.hbm %s6895_s1, 256 }
  0x64   : > { %p5442_p13 = scmp.ne.s32.totalorder %s6895_s1, %s5441_s0  ;;  %p5448_p4 = scmp.lt.u32.totalorder %s5441_s0, %s6895_s1 }
  0x66   : > { %p5444_p0 = pnand %p5442_p13, %p5724_p7 }
  0x68   : > { %p5445_p1 = pneg %p5444_p0 }
  0x6a   : > { %p5450_p6 = pnand %p5448_p4, %p5445_p1 }
  0x6c   : > { %5453 = shalt.err (!%p5450_p6)
}
  0x6d   : > { %s5454_s22 = scalar_lea.vmem %s419_s19, 256  ;;  %p5462_p11 = scmp.lt.s32.totalorder %s419_s19, %s419_s19 }
  0x6e   : > { %p5455_p8 = scmp.ne.s32.totalorder %s419_s19, %s5454_s22  ;;  %p5463_p12 = scmp.lt.s32.totalorder %s5454_s22, %s5454_s22 }
  0x70   : > { %p5457_p9 = pnand %p5455_p8, %p5724_p7  ;;  %p5464_p2 = por %p5463_p12, %p5462_p11 }
  0x72   : > { %p5458_p10 = pneg %p5457_p9 }
  0x74   : > { %p5465_p3 = pnand %p5464_p2, %p5458_p10 }
  0x76   : > { %5468 = shalt.err (!%p5465_p3)
}
  0x77   : > { %s5583_s17 = smov 128   ;;  %s5584_s2 = smov 8  }
  0x78   : > { %5049 = dma.hbm_to_vmem [thread:$0]  (!%p5708_p5), %s6895_s1, 256, %s419_s19, [#allocation5], %s5583_s17, %s5583_s17, %s5584_s2  }
  0x79   : > { %s5585_s28 = smov [#allocation8]   ;;  %s5586_s18 = smov [#allocation11]  }
  0x7a   : > { %s442_s0 = sshll.u32 %s5585_s28, 4  ;;  %s474_s20 = sshll.u32 %s5586_s18, 4  ;;  %s443_s0 = int_to_ptr.vmem [resolvable:$true] %s442_s0  ;;  %s475_s20 = int_to_ptr.vmem [resolvable:$true] %s474_s20 }
  0x7b   : > { %s5469_s22 = scalar_lea.hbm %s6897_s3, 1024 }
  0x7c   : > { %p5470_p2 = scmp.ne.s32.totalorder %s6897_s3, %s5469_s22  ;;  %p5476_p0 = scmp.lt.u32.totalorder %s5469_s22, %s6897_s3 }
  0x7e   : > { %p5472_p3 = pnand %p5470_p2, %p5724_p7 }
  0x80   : > { %p5473_p13 = pneg %p5472_p3 }
  0x82   : > { %p5478_p1 = pnand %p5476_p0, %p5473_p13 }
  0x84   : > { %5481 = shalt.err (!%p5478_p1)
}
  0x85   : > { %s5482_s19 = scalar_lea.vmem %s443_s0, 1024  ;;  %p5490_p9 = scmp.lt.s32.totalorder %s443_s0, %s443_s0 }
  0x86   : > { %p5483_p4 = scmp.ne.s32.totalorder %s443_s0, %s5482_s19  ;;  %p5491_p10 = scmp.lt.s32.totalorder %s5482_s19, %s5482_s19 }
  0x88   : > { %p5485_p6 = pnand %p5483_p4, %p5724_p7  ;;  %p5492_p11 = por %p5491_p10, %p5490_p9 }
  0x8a   : > { %p5486_p8 = pneg %p5485_p6 }
  0x8c   : > { %p5493_p12 = pnand %p5492_p11, %p5486_p8 }
  0x8e   : > { %5496 = shalt.err (!%p5493_p12)
}
  0x8f   : > { %s6928_s25 = smov 16   ;;  %s6929_s21 = smov 256  }
  0x90   : > { %5055 = dma.hbm_to_vmem [thread:$0]  (!%p5708_p5), %s6897_s3, 1024, %s443_s0, [#allocation7], %s6929_s21, %s6929_s21, %s6928_s25  }
  0x91   : > { %s5497_s23 = scalar_lea.hbm %s6901_s7, 48 }
  0x92   : > { %p5498_p2 = scmp.ne.s32.totalorder %s6901_s7, %s5497_s23  ;;  %p5504_p0 = scmp.lt.u32.totalorder %s5497_s23, %s6901_s7 }
  0x94   : > { %p5500_p3 = pnand %p5498_p2, %p5724_p7 }
  0x96   : > { %p5501_p13 = pneg %p5500_p3 }
  0x98   : > { %p5506_p1 = pnand %p5504_p0, %p5501_p13 }
  0x9a   : > { %5509 = shalt.err (!%p5506_p1)
}
  0x9b   : > { %s5510_s29 = scalar_lea.vmem %s475_s20, 48  ;;  %s5517_s0 = scalar_lea.vmem %s475_s20, 64 }
  0x9c   : > { %p5511_p4 = scmp.ne.s32.totalorder %s475_s20, %s5510_s29  ;;  %p5518_p9 = scmp.lt.s32.totalorder %s475_s20, %s475_s20 }
  0x9d   : > { %p5519_p10 = scmp.lt.s32.totalorder %s5517_s0, %s5510_s29 }
  0x9e   : > { %p5513_p6 = pnand %p5511_p4, %p5724_p7 }
  0x9f   : > { %p5520_p11 = por %p5519_p10, %p5518_p9 }
  0xa0   : > { %p5514_p8 = pneg %p5513_p6 }
  0xa2   : > { %p5521_p12 = pnand %p5520_p11, %p5514_p8 }
  0xa4   : > { %5524 = shalt.err (!%p5521_p12)
}
  0xa5   : > { %s5587_s22 = smov 1   ;;  %s5588_s5 = smov [#allocation14]  }
  0xa6   : > { %5061 = dma.hbm_to_vmem [thread:$0]  (!%p5708_p5), %s6901_s7, 48, %s475_s20, [#allocation10], %s6928_s25, %s6928_s25, %s5587_s22  }
  0xa7   : > { %s511_s9 = sshll.u32 %s5588_s5, 4  ;;  %s5525_s23 = scalar_lea.hbm %s6907_s13, 16  ;;  %s512_s9 = int_to_ptr.vmem [resolvable:$true] %s511_s9 }
  0xa8   : > { %p5526_p2 = scmp.ne.s32.totalorder %s6907_s13, %s5525_s23  ;;  %p5532_p0 = scmp.lt.u32.totalorder %s5525_s23, %s6907_s13 }
  0xaa   : > { %p5528_p3 = pnand %p5526_p2, %p5724_p7 }
  0xac   : > { %p5529_p13 = pneg %p5528_p3 }
  0xae   : > { %p5534_p1 = pnand %p5532_p0, %p5529_p13 }
  0xb0   : > { %5537 = shalt.err (!%p5534_p1)
}
  0xb1   : > { %s5538_s20 = scalar_lea.vmem %s512_s9, 16  ;;  %s5545_s25 = scalar_lea.vmem %s512_s9, 32 }
  0xb2   : > { %p5539_p4 = scmp.ne.s32.totalorder %s512_s9, %s5538_s20  ;;  %p5546_p9 = scmp.lt.s32.totalorder %s512_s9, %s512_s9 }
  0xb3   : > { %p5547_p10 = scmp.lt.s32.totalorder %s5545_s25, %s5538_s20 }
  0xb4   : > { %p5541_p6 = pnand %p5539_p4, %p5724_p7 }
  0xb5   : > { %p5548_p11 = por %p5547_p10, %p5546_p9 }
  0xb6   : > { %p5542_p8 = pneg %p5541_p6 }
  0xb8   : > { %p5549_p12 = pnand %p5548_p11, %p5542_p8 }
  0xba   : > { %5552 = shalt.err (!%p5549_p12)
}
  0xbb   : > { %5067 = dma.hbm_to_vmem [thread:$0]  (!%p5708_p5), %s6907_s13, 16, %s512_s9, [#allocation13]  }
  0xbc   : > { %p6930_p2 = scmp.ne.s32.totalorder %s6922_s15, 0 }
  0xbd   : > { %p6931_p3 = scmp.eq.s32.totalorder (!%p6930_p2), %s5691_s27, 0 }
  0xbe   : > { %537 = sbr.rel (%p6930_p2) target bundleno = 10304 (0x2840), region = 84 }
  0xc5   : > { %5558 = dma.done.wait (%p6931_p3), [#allocation5], 256   ;;  %p6932_p7 = pmov %p6931_p3 }
  0xc6   : > { %p6933_p13 = pmov %p6931_p3 }
  0xc7   : > { %5560 = vsyncadd (%p6932_p7), [#allocation5], 4294967040 }
  0xc8   : > { %5562 = dma.done.wait (%p6933_p13), [#allocation7], 1040   ;;  %p6934_p0 = pmov %p6931_p3 }
  0xca   : > { %5564 = vsyncadd (%p6934_p0), [#allocation7], 4294966256  ;;  %p6935_p1 = pmov %p6934_p0 }
  0xcb   : > { %p6936_p5 = pmov %p6934_p0 }
  0xcc   : > { %5566 = dma.done.wait (%p6935_p1), [#allocation10], 6192  }
  0xcd   : > { %5568 = vsyncadd (%p6936_p5), [#allocation10], 4294961104  ;;  %p6937_p4 = pmov %p6934_p0 }
  0xce   : > { %p6938_p6 = pmov %p6934_p0 }
  0xcf   : > { %5570 = dma.done.wait (%p6937_p4), [#allocation13], 32  }
  0xd0   : > { %5572 = vsyncadd (%p6938_p6), [#allocation13], 4294967264  ;;  %p608_p8 = scmp.lt.s32.totalorder %s5691_s27, 1  ;;  %v5589_v2 = vmov 0.0|0.0   ;;  %vm5590_vm0 = vmmov 0   ;;  %v5591_v3 = vmov 0.0   ;;  %v726_v50 = vlaneseq }
  0xd1   : > { %4555 = vmatprep.subr.bf16.mxu0 %v5589_v2  ;;  %4492 = vmatprep.mubr.msk.f32.mxu0 %vm5590_vm0, %v5591_v3  ;;  %v616_v4 = vld [vmem:[#allocation4] sm:$0xff]  ;;  %v617_v5 = vld [vmem:[#allocation4 + $0x8] sm:$0xff]  ;;  %s6939_s22 = sld [smem:[#allocation20_spill]]  ;;  %v707_v9 = vld [vmem:[#allocation9] sm:$0xff]  ;;  %vm625_vm1 = vcmask 130048   ;;  %vm736_vm2 = vcmask 261120  }
  0xd2   : > { %s6942_s27 = smov (!%p608_p8, %s5691_s27), 1  ;;  %804 = vmatprep.mubr.f32.mxu1 %v5591_v3  ;;  %v4556_v6 = vpack.c.bf16 %v617_v5, %v616_v4  ;;  %v708_v7 = vld [vmem:[#allocation9 + $0x8] sm:$0xff]  ;;  %v710_v8 = vld [vmem:[#allocation9 + $0x18] sm:$0xff]  ;;  %v709_v11 = vld [vmem:[#allocation9 + $0x10] sm:$0xff]  ;;  %s5592_s21 = smov 64   ;;  %v727_v51 = vshrl.u32 %v726_v50, 7 }
  0xd3   : > { %s4356_s15 = sshll.u32 %s6942_s27, 3  ;;  %v5904_v10 = vpack.c.bf16 %v710_v8, %v708_v7  ;;  %v712_v12 = vld [vmem:[#allocation9 + $0x28] sm:$0xff]  ;;  %v714_v13 = vld [vmem:[#allocation9 + $0x38] sm:$0xff]  ;;  %v5906_v15 = vpack.c.bf16 %v709_v11, %v707_v9  ;;  %v711_v16 = vld [vmem:[#allocation9 + $0x20] sm:$0xff]  ;;  %vm856_vm3 = vcmask 523264   ;;  %vm1735_vm4 = vcmask 1040384   ;;  %s614_s20 = scalar_lea.vmem %s6909_s16, %s6942_s27 }
  0xd4   : > { %4557 = vmatpush3.bf16.msra.mxu0 %v4556_v6  ;;  %v700_v17 = vld [vmem:[#allocation8 + $0x8] sm:$0xff]  ;;  %v5909_v18 = vpack.c.bf16 %v714_v13, %v712_v12  ;;  %v713_v19 = vld [vmem:[#allocation9 + $0x30] sm:$0xff]  ;;  %v702_v20 = vld [vmem:[#allocation8 + $0x18] sm:$0xff]  ;;  %v5952_v52 = vsub.s32 0, %v727_v51  ;;  %vm1737_vm5 = vcmask 1041408   ;;  %vm1739_vm6 = vcmask 1042432  }
  0xd5   : > { %4567 = vmatprep.subr.bf16.mxu0 %v5904_v10  ;;  %v716_v21 = vld [vmem:[#allocation9 + $0x48] sm:$0xff]  ;;  %v4558_v22 = vpack.c.bf16 %v702_v20, %v700_v17  ;;  %v718_v23 = vld [vmem:[#allocation9 + $0x58] sm:$0xff]  ;;  %v699_v24 = vld [vmem:[#allocation8] sm:$0xff]  ;;  %v5912_v29 = vpack.c.bf16 %v713_v19, %v711_v16  ;;  %vm1741_vm7 = vcmask 1043456   ;;  %vm1743_vm8 = vcmask 1044480  }
  0xd6   : > { %v701_v25 = vld [vmem:[#allocation8 + $0x10] sm:$0xff]  ;;  %v704_v27 = vld [vmem:[#allocation8 + $0x28] sm:$0xff]  ;;  %v706_v28 = vld [vmem:[#allocation8 + $0x38] sm:$0xff]  ;;  %v5915_v31 = vpack.c.bf16 %v718_v23, %v716_v21  ;;  %vm1745_vm9 = vcmask 1045504   ;;  %vm1747_vm10 = vcmask 1046528   ;;  %vm4021_vm11 = vcmask 7168  }
  0xd7   : > { %s611_s19 = scalar_lea.vmem %s6939_s22, %s4356_s15  ;;  %v4560_v26 = vpack.c.bf16 %v701_v25, %v699_v24  ;;  %4559 = vmatprep.subr.bf16.mxu1 %v4558_v22  ;;  %v4562_v30 = vpack.c.bf16 %v706_v28, %v704_v27  ;;  %v715_v32 = vld [vmem:[#allocation9 + $0x40] sm:$0xff]  ;;  %v717_v33 = vld [vmem:[#allocation9 + $0x50] sm:$0xff]  ;;  %v720_v34 = vld [vmem:[#allocation9 + $0x68] sm:$0xff]  ;;  %vm4219_vm12 = vcmask 0  }
  0xd8   : > { %v615_v14 = vld [vmem:[%s611_s19] sm:$0xff]  ;;  %v722_v35 = vld [vmem:[#allocation9 + $0x78] sm:$0xff]  ;;  %v5919_v36 = vpack.c.bf16 %v717_v33, %v715_v32  ;;  %v703_v38 = vld [vmem:[#allocation8 + $0x20] sm:$0xff] }
  0xd9   : > { %4493 = vmatmul.mubr.msk.f32.vlgmr.msra.gmra.mrb[0].mxu0 %vm625_vm1, %v615_v14  ;;  %4561 = vmatpush1.bf16.msra.mxu1 %v4560_v26  ;;  %v5922_v37 = vpack.c.bf16 %v722_v35, %v720_v34  ;;  %v705_v39 = vld [vmem:[#allocation8 + $0x30] sm:$0xff]  ;;  %v719_v40 = vld [vmem:[#allocation9 + $0x60] sm:$0xff]  ;;  %v4357_v44 = vld [vmem:[#allocation6] ss:$0 sm:$0xff]  ;;  %v5981_v14 = vsub.s32 1, %v727_v51 }
  0xda   : > { %4569 = vmatpush1.bf16.msra.mxu0 %v5906_v15  ;;  %4563 = vmatprep.subr.bf16.mxu1 %v4562_v30  ;;  %v4564_v41 = vpack.c.bf16 %v705_v39, %v703_v38  ;;  %v721_v42 = vld [vmem:[#allocation9 + $0x70] sm:$0xff]  ;;  %v723_v53 = vld [vmem:[%s6900_s6] sm:$0x3]  ;;  %v5976_v8 = vld [vmem:[#allocation11] sm:$0x1] }
  0xdb   : > { %4571 = vmatprep.subr.bf16.mxu0 %v5909_v18  ;;  %924 = vmatprep.mubr.f32.mxu0 %v5591_v3  ;;  %v5926_v43 = vpack.c.bf16 %v721_v42, %v719_v40  ;;  %v729_v54 = vrot.slane %v723_v53, %v5952_v52  ;;  %v733_v21 = vrot.slane %v723_v53, %v5981_v14 }
  0xdd   : > { %4565 = vmatpush1.bf16.msra.mxu1 %v4564_v41 }
  0xde   : > { %4573 = vmatpush1.bf16.msra.mxu0 %v5912_v29  ;;  %4583 = vmatprep.subr.bf16.mxu1 %v5904_v10 }
  0xdf   : > { %4575 = vmatprep.subr.bf16.mxu0 %v5915_v31 }
  0xe2   : > { %4577 = vmatpush1.bf16.msra.mxu0 %v5919_v36 }
  0xe3   : > { %4579 = vmatprep.subr.bf16.mxu0 %v5922_v37 }
  0xe6   : > { %4581 = vmatpush1.bf16.msra.mxu0 %v5926_v43 }
  0xe7   : > { %4599 = vmatprep.subr.bf16.mxu0 %v5904_v10 }
  0xe9   : > { %925 = vmatmul.mubr.f32.vlgmr.msra.gmra.mrb[2].mxu0 %v5591_v3 }
  0xea   : > { %4601 = vmatpush1.bf16.msra.mxu0 %v5906_v15  ;;  %1132 = vmatprep.mubr.f32.mxu0 %v5591_v3 }
  0xeb   : > { %4603 = vmatprep.subr.bf16.mxu0 %v5909_v18 }
  0xee   : > { %4605 = vmatpush1.bf16.msra.mxu0 %v5912_v29 }
  0xef   : > { %4607 = vmatprep.subr.bf16.mxu0 %v5915_v31 }
  0xf2   : > { %4609 = vmatpush1.bf16.msra.mxu0 %v5919_v36 }
  0xf3   : > { %4611 = vmatprep.subr.bf16.mxu0 %v5922_v37 }
  0xf6   : > { %4613 = vmatpush1.bf16.msra.mxu0 %v5926_v43 }
  0xf7   : > { %4631 = vmatprep.subr.bf16.mxu0 %v5904_v10 }
 0x1ac   : > { %v695_v45 = vpop.f32.mrb[0].mxu0 }
 0x1ad   : > { %v696_v46 = vadd.f32 %v4357_v44, %v695_v45  ;;  %v4494_v47 = vpop.f32.mrb[1].mxu0 }
 0x1af   : > { %4359 = vmatmul.mubr.msk.f32.vlgmr.msra.gmra.mrb[0].mxu1 %vm736_vm2, %v696_v46 }
 0x1b0   : > { %4585 = vmatpush1.bf16.msra.mxu1 %v5906_v15  ;;  %1024 = vmatprep.mubr.f32.mxu1 %v5591_v3 }
 0x1b1   : > { %4587 = vmatprep.subr.bf16.mxu1 %v5909_v18 }
 0x1b4   : > { %4589 = vmatpush1.bf16.msra.mxu1 %v5912_v29 }
 0x1b5   : > { %4591 = vmatprep.subr.bf16.mxu1 %v5915_v31 }
 0x1b8   : > { %4593 = vmatpush1.bf16.msra.mxu1 %v5919_v36 }
 0x1b9   : > { %4595 = vmatprep.subr.bf16.mxu1 %v5922_v37 }
 0x1bc   : > { %4597 = vmatpush1.bf16.msra.mxu1 %v5926_v43  ;;  %v926_v48 = vpop.f32.mrb[2].mxu0 }
 0x1bd   : > { %4615 = vmatprep.subr.bf16.mxu1 %v5904_v10  ;;  %939 = vrot.lane.b32.xlu1 %v926_v48, %s5592_s21  ;;  %v928_v49 = vpop.f32.mrb[3].mxu0 }
 0x1be   : > { %v949_v9 = vadd.f32 %v928_v49, %v5976_v8 }
 0x22f   : > { %v940_v17 = vpop.permute.xlu1 %939 }
 0x282   : > { %v806_v55 = vpop.f32.mrb[0].mxu1 }
 0x283   : > { %v807_v56 = vadd.f32 %v806_v55, %v729_v54  ;;  %v808_v57 = vpop.f32.mrb[1].mxu1 }
 0x284   : > { %v5989_v23 = vadd.f32 %v808_v57, %v733_v21 }
 0x285   : > { %v812_v58 = vrot.slane %v807_v56, 7  ;;  %824 = vrot.lane.b32.xlu0 %v807_v56, %s5592_s21  ;;  %v815_v59 = vrot.slane %v807_v56, 5  ;;  %v818_v60 = vrot.slane %v807_v56, 3  ;;  %v821_v61 = vrot.slane %v807_v56, 1 }
 0x286   : > { %v844_v24 = vrot.slane %v5989_v23, 7  ;;  %v847_v57 = vrot.slane %v5989_v23, 5 }
 0x287   : > { %v5960_v62 = vsel %vm736_vm2, %v807_v56, %v812_v58  ;;  %831 = vrot.lane.b32.xlu1 %v815_v59, %s5592_s21  ;;  %v5964_v63 = vsel %vm736_vm2, %v807_v56, %v815_v59  ;;  %v5967_v0 = vsel %vm736_vm2, %v807_v56, %v818_v60  ;;  %v5970_v1 = vsel %vm736_vm2, %v807_v56, %v821_v61 }
 0x288   : > { %v931_v4 = vadd.f32 %v926_v48, %v5960_v62  ;;  %v5994_v26 = vsel %vm736_vm2, %v5989_v23, %v844_v24  ;;  %v6021_v59 = vsel %vm736_vm2, %v5989_v23, %v847_v57 }
 0x289   : > { %827 = vrot.lane.b32.xlu0 %v812_v58, %s5592_s21 }
 0x28a   : > { %v4360_v5 = vmul.f32 -1.442695, %v931_v4 }
 0x28b   : > { %835 = vrot.lane.b32.xlu1 %v818_v60, %s5592_s21 }
 0x28c   : > { %5109 = vpow2.f32 %v4360_v5 }
 0x28f   : > { %839 = vrot.lane.b32.xlu1 %v821_v61, %s5592_s21 }
 0x296   : > { %v5110_v6 = vpop.eup %5109 }
 0x297   : > { %v935_v7 = vadd.f32 1.0, %v5110_v6 }
 0x299   : > { %5111 = vrcp.f32 %v935_v7 }
 0x2a3   : > { %v5112_v11 = vpop.eup %5111 }
 0x2a4   : > { %v950_v12 = vmul.f32 %v5112_v11, %v949_v9 }
 0x2a6   : > { %v951_v27 = vadd.f32 %v950_v12, %v5994_v26 }
 0x2f7   : > { %v5979_v13 = vpop.permute.xlu0 %824 }
 0x2f9   : > { %v832_v51 = vpop.permute.xlu1 %831 }
 0x2fa   : > { %v6015_v53 = vsel %vm736_vm2, %v5979_v13, %v832_v51 }
 0x2fb   : > { %v828_v16 = vpop.permute.xlu0 %827 }
 0x2fc   : > { %v5985_v19 = vsel %vm736_vm2, %v5979_v13, %v828_v16 }
 0x2fd   : > { %v942_v20 = vadd.f32 %v940_v17, %v5985_v19 }
 0x2ff   : > { %v4361_v22 = vmul.f32 -1.442695, %v942_v20 }
 0x301   : > { %5113 = vpow2.f32 %v4361_v22 }
 0x30b   : > { %v5114_v25 = vpop.eup %5113 }
 0x30c   : > { %v946_v28 = vadd.f32 1.0, %v5114_v25 }
 0x30e   : > { %5115 = vrcp.f32 %v946_v28 }
 0x30f   : > { %5117 = vtanh.f32 %v951_v27 }
 0x318   : > { %v5116_v30 = vpop.eup %5115 }
 0x319   : > { %v953_v32 = vsub.f32 1.0, %v5116_v30  ;;  %v5118_v33 = vpop.eup %5117  ;;  %v955_v35 = vmul.f32 0.0, %v5116_v30 }
 0x31b   : > { %v954_v34 = vmul.f32 %v5118_v33, %v953_v32 }
 0x31d   : > { %v5997_v38 = vadd.f32 %v955_v35, %v954_v34  ;;  %v836_v34 = vpop.permute.xlu1 %835 }
 0x31e   : > { %v6043_v35 = vsel %vm736_vm2, %v5979_v13, %v836_v34 }
 0x31f   : > { %4362 = vmatmul.mubr.msk.f32.vlgmr.msra.gmra.mrb[2].mxu1 %vm856_vm3, %v5997_v38  ;;  %v1060_v5 = vrot.slane %v5997_v38, 7 }
 0x320   : > { %4617 = vmatpush1.bf16.msra.mxu1 %v5906_v15  ;;  %1240 = vmatprep.mubr.f32.mxu1 %v5591_v3 }
 0x321   : > { %4619 = vmatprep.subr.bf16.mxu1 %v5909_v18 }
 0x324   : > { %4621 = vmatpush1.bf16.msra.mxu1 %v5912_v29 }
 0x325   : > { %4623 = vmatprep.subr.bf16.mxu1 %v5915_v31 }
 0x328   : > { %4625 = vmatpush1.bf16.msra.mxu1 %v5919_v36 }
 0x329   : > { %4627 = vmatprep.subr.bf16.mxu1 %v5922_v37 }
 0x32c   : > { %4629 = vmatpush1.bf16.msra.mxu1 %v5926_v43 }
 0x32d   : > { %4647 = vmatprep.subr.bf16.mxu1 %v5904_v10 }
 0x3f2   : > { %v1026_v39 = vpop.f32.mrb[2].mxu1 }
 0x3f3   : > { %v1032_v40 = vrot.slane %v1026_v39, 7  ;;  %v1028_v41 = vpop.f32.mrb[3].mxu1 }
 0x3f4   : > { %v1051_v47 = vadd.f32 %v1028_v41, %v5976_v8 }
 0x3f5   : > { %v1034_v42 = vadd.f32 %v1032_v40, %v5964_v63  ;;  %1041 = vrot.lane.b32.xlu0 %v1032_v40, %s5592_s21 }
 0x3f6   : > { %v1053_v48 = vrot.slane %v1051_v47, 7 }
 0x3f7   : > { %v4363_v44 = vmul.f32 -1.442695, %v1034_v42  ;;  %v850_v42 = vrot.slane %v5989_v23, 3 }
 0x3f9   : > { %5119 = vpow2.f32 %v4363_v44 }
 0x403   : > { %v5120_v45 = vpop.eup %5119 }
 0x404   : > { %v1038_v46 = vadd.f32 1.0, %v5120_v45  ;;  %v6049_v45 = vsel %vm736_vm2, %v5989_v23, %v850_v42 }
 0x406   : > { %5121 = vrcp.f32 %v1038_v46 }
 0x410   : > { %v5122_v49 = vpop.eup %5121 }
 0x411   : > { %v1055_v50 = vmul.f32 %v5122_v49, %v1053_v48 }
 0x413   : > { %v1056_v60 = vadd.f32 %v1055_v50, %v6021_v59 }
 0x467   : > { %v1042_v54 = vpop.permute.xlu0 %1041 }
 0x468   : > { %v1044_v55 = vadd.f32 %v1042_v54, %v6015_v53 }
 0x46a   : > { %v4364_v56 = vmul.f32 -1.442695, %v1044_v55 }
 0x46c   : > { %5123 = vpow2.f32 %v4364_v56 }
 0x476   : > { %v5124_v58 = vpop.eup %5123 }
 0x477   : > { %v1048_v61 = vadd.f32 1.0, %v5124_v58 }
 0x479   : > { %5125 = vrcp.f32 %v1048_v61 }
 0x47a   : > { %5127 = vtanh.f32 %v1056_v60 }
 0x483   : > { %v5126_v4 = vpop.eup %5125 }
 0x484   : > { %v1058_v6 = vsub.f32 1.0, %v5126_v4  ;;  %v5128_v7 = vpop.eup %5127  ;;  %v1062_v11 = vmul.f32 %v5126_v4, %v1060_v5 }
 0x486   : > { %v1059_v9 = vmul.f32 %v5128_v7, %v1058_v6 }
 0x488   : > { %v6025_v12 = vadd.f32 %v1062_v11, %v1059_v9 }
 0x48a   : > { %v1065_v16 = vrot.slane %v6025_v12, 1  ;;  %v1168_v49 = vrot.slane %v6025_v12, 7 }
 0x48c   : > { %4365 = vmatmul.mubr.msk.f32.vlgmr.msra.gmra.mrb[4].mxu0 %vm856_vm3, %v1065_v16 }
 0x48d   : > { %4633 = vmatpush1.bf16.msra.mxu0 %v5906_v15  ;;  %1348 = vmatprep.mubr.f32.mxu0 %v5591_v3 }
 0x48e   : > { %4635 = vmatprep.subr.bf16.mxu0 %v5909_v18 }
 0x491   : > { %4637 = vmatpush1.bf16.msra.mxu0 %v5912_v29 }
 0x492   : > { %4639 = vmatprep.subr.bf16.mxu0 %v5915_v31 }
 0x495   : > { %4641 = vmatpush1.bf16.msra.mxu0 %v5919_v36 }
 0x496   : > { %4643 = vmatprep.subr.bf16.mxu0 %v5922_v37 }
 0x499   : > { %4645 = vmatpush1.bf16.msra.mxu0 %v5926_v43 }
 0x49a   : > { %4663 = vmatprep.subr.bf16.mxu0 %v5904_v10 }
 0x55f   : > { %v1134_v17 = vpop.f32.mrb[4].mxu0 }
 0x560   : > { %v1140_v20 = vrot.slane %v1134_v17, 6  ;;  %v1136_v21 = vpop.f32.mrb[5].mxu0 }
 0x561   : > { %v1159_v28 = vadd.f32 %v1136_v21, %v5976_v8 }
 0x562   : > { %v1142_v22 = vadd.f32 %v1140_v20, %v5967_v0  ;;  %1149 = vrot.lane.b32.xlu0 %v1140_v20, %s5592_s21  ;;  %v840_v20 = vpop.permute.xlu1 %839 }
 0x563   : > { %v1161_v30 = vrot.slane %v1159_v28, 6 }
 0x564   : > { %v4366_v24 = vmul.f32 -1.442695, %v1142_v22 }
 0x566   : > { %5129 = vpow2.f32 %v4366_v24 }
 0x570   : > { %v5130_v25 = vpop.eup %5129 }
 0x571   : > { %v1146_v27 = vadd.f32 1.0, %v5130_v25  ;;  %v853_v25 = vrot.slane %v5989_v23, 1 }
 0x573   : > { %5131 = vrcp.f32 %v1146_v27  ;;  %v6077_v28 = vsel %vm736_vm2, %v5989_v23, %v853_v25 }
 0x57d   : > { %v5132_v32 = vpop.eup %5131 }
 0x57e   : > { %v1163_v33 = vmul.f32 %v5132_v32, %v1161_v30 }
 0x580   : > { %v1164_v46 = vadd.f32 %v1163_v33, %v6049_v45 }
 0x5d4   : > { %v1150_v39 = vpop.permute.xlu0 %1149 }
 0x5d5   : > { %v1152_v40 = vadd.f32 %v1150_v39, %v6043_v35 }
 0x5d7   : > { %v4367_v41 = vmul.f32 -1.442695, %v1152_v40 }
 0x5d9   : > { %5133 = vpow2.f32 %v4367_v41 }
 0x5e3   : > { %v5134_v44 = vpop.eup %5133 }
 0x5e4   : > { %v1156_v47 = vadd.f32 1.0, %v5134_v44 }
 0x5e6   : > { %5135 = vrcp.f32 %v1156_v47 }
 0x5e7   : > { %5137 = vtanh.f32 %v1164_v46 }
 0x5f0   : > { %v5136_v48 = vpop.eup %5135 }
 0x5f1   : > { %v1166_v50 = vsub.f32 1.0, %v5136_v48  ;;  %v5138_v51 = vpop.eup %5137  ;;  %v1170_v55 = vmul.f32 %v5136_v48, %v1168_v49 }
 0x5f3   : > { %v1167_v54 = vmul.f32 %v5138_v51, %v1166_v50 }
 0x5f5   : > { %v6053_v56 = vadd.f32 %v1170_v55, %v1167_v54 }
 0x5f7   : > { %v1173_v57 = vrot.slane %v6053_v56, 2 }
 0x5f9   : > { %4368 = vmatmul.mubr.msk.f32.vlgmr.msra.gmra.mrb[4].mxu1 %vm856_vm3, %v1173_v57 }
 0x5fa   : > { %4649 = vmatpush1.bf16.msra.mxu1 %v5906_v15  ;;  %1456 = vmatprep.mubr.f32.mxu1 %v5591_v3 }
 0x5fb   : > { %4651 = vmatprep.subr.bf16.mxu1 %v5909_v18 }
 0x5fe   : > { %4653 = vmatpush1.bf16.msra.mxu1 %v5912_v29 }
 0x5ff   : > { %4655 = vmatprep.subr.bf16.mxu1 %v5915_v31 }
 0x602   : > { %4657 = vmatpush1.bf16.msra.mxu1 %v5919_v36 }
 0x603   : > { %4659 = vmatprep.subr.bf16.mxu1 %v5922_v37 }
 0x606   : > { %4661 = vmatpush1.bf16.msra.mxu1 %v5926_v43 }
 0x607   : > { %4679 = vmatprep.subr.bf16.mxu1 %v5904_v10  ;;  %v6071_v10 = vsel %vm736_vm2, %v5979_v13, %v840_v20  ;;  %v1276_v13 = vrot.slane %v6053_v56, 7 }
 0x6cc   : > { %v1242_v58 = vpop.f32.mrb[4].mxu1 }
 0x6cd   : > { %v1248_v60 = vrot.slane %v1242_v58, 5  ;;  %v1244_v61 = vpop.f32.mrb[5].mxu1 }
 0x6ce   : > { %v1267_v9 = vadd.f32 %v1244_v61, %v5976_v8 }
 0x6cf   : > { %v1250_v4 = vadd.f32 %v1248_v60, %v5970_v1  ;;  %1257 = vrot.lane.b32.xlu0 %v1248_v60, %s5592_s21 }
 0x6d0   : > { %v1269_v11 = vrot.slane %v1267_v9, 5 }
 0x6d1   : > { %v4369_v5 = vmul.f32 -1.442695, %v1250_v4 }
 0x6d3   : > { %5139 = vpow2.f32 %v4369_v5 }
 0x6dd   : > { %v5140_v6 = vpop.eup %5139 }
 0x6de   : > { %v1254_v7 = vadd.f32 1.0, %v5140_v6 }
 0x6e0   : > { %5141 = vrcp.f32 %v1254_v7 }
 0x6ea   : > { %v5142_v16 = vpop.eup %5141 }
 0x6eb   : > { %v1271_v17 = vmul.f32 %v5142_v16, %v1269_v11 }
 0x6ed   : > { %v1272_v30 = vadd.f32 %v1271_v17, %v6077_v28 }
 0x741   : > { %v1258_v21 = vpop.permute.xlu0 %1257 }
 0x742   : > { %v1260_v22 = vadd.f32 %v1258_v21, %v6071_v10 }
 0x744   : > { %v4370_v24 = vmul.f32 -1.442695, %v1260_v22 }
 0x746   : > { %5143 = vpow2.f32 %v4370_v24 }
 0x750   : > { %v5144_v27 = vpop.eup %5143 }
 0x751   : > { %v1264_v32 = vadd.f32 1.0, %v5144_v27 }
 0x753   : > { %5145 = vrcp.f32 %v1264_v32 }
 0x754   : > { %5147 = vtanh.f32 %v1272_v30 }
 0x75d   : > { %v5146_v33 = vpop.eup %5145 }
 0x75e   : > { %v1274_v34 = vsub.f32 1.0, %v5146_v33  ;;  %v5148_v39 = vpop.eup %5147  ;;  %v1278_v41 = vmul.f32 %v5146_v33, %v1276_v13 }
 0x760   : > { %v1275_v40 = vmul.f32 %v5148_v39, %v1274_v34 }
 0x762   : > { %v6081_v42 = vadd.f32 %v1278_v41, %v1275_v40 }
 0x764   : > { %v1281_v44 = vrot.slane %v6081_v42, 3  ;;  %v1384_v9 = vrot.slane %v6081_v42, 7 }
 0x766   : > { %4371 = vmatmul.mubr.msk.f32.vlgmr.msra.gmra.mrb[6].mxu0 %vm856_vm3, %v1281_v44 }
 0x767   : > { %4665 = vmatpush1.bf16.msra.mxu0 %v5906_v15  ;;  %1564 = vmatprep.mubr.f32.mxu0 %v5591_v3 }
 0x768   : > { %4667 = vmatprep.subr.bf16.mxu0 %v5909_v18 }
 0x76b   : > { %4669 = vmatpush1.bf16.msra.mxu0 %v5912_v29 }
 0x76c   : > { %4671 = vmatprep.subr.bf16.mxu0 %v5915_v31 }
 0x76f   : > { %4673 = vmatpush1.bf16.msra.mxu0 %v5919_v36 }
 0x770   : > { %4675 = vmatprep.subr.bf16.mxu0 %v5922_v37 }
 0x773   : > { %4677 = vmatpush1.bf16.msra.mxu0 %v5926_v43 }
 0x839   : > { %v1350_v23 = vpop.f32.mrb[6].mxu0 }
 0x83a   : > { %v1356_v46 = vrot.slane %v1350_v23, 4  ;;  %v1352_v47 = vpop.f32.mrb[7].mxu0 }
 0x83b   : > { %v1375_v54 = vadd.f32 %v1352_v47, %v5976_v8 }
 0x83c   : > { %v1358_v48 = vadd.f32 %v1356_v46, %v5960_v62  ;;  %1365 = vrot.lane.b32.xlu1 %v1356_v46, %s5592_s21 }
 0x83d   : > { %v1377_v55 = vrot.slane %v1375_v54, 4 }
 0x83e   : > { %v4372_v49 = vmul.f32 -1.442695, %v1358_v48 }
 0x840   : > { %5149 = vpow2.f32 %v4372_v49 }
 0x84a   : > { %v5150_v50 = vpop.eup %5149 }
 0x84b   : > { %v1362_v51 = vadd.f32 1.0, %v5150_v50 }
 0x84d   : > { %5151 = vrcp.f32 %v1362_v51 }
 0x857   : > { %v5152_v57 = vpop.eup %5151 }
 0x858   : > { %v1379_v58 = vmul.f32 %v5152_v57, %v1377_v55 }
 0x85a   : > { %v1380_v62 = vadd.f32 %v1379_v58, %v5994_v26 }
 0x8ae   : > { %v1366_v60 = vpop.permute.xlu1 %1365 }
 0x8af   : > { %v1368_v61 = vadd.f32 %v1366_v60, %v5985_v19 }
 0x8b1   : > { %v4373_v4 = vmul.f32 -1.442695, %v1368_v61 }
 0x8b3   : > { %5153 = vpow2.f32 %v4373_v4 }
 0x8bd   : > { %v5154_v5 = vpop.eup %5153 }
 0x8be   : > { %v1372_v6 = vadd.f32 1.0, %v5154_v5 }
 0x8c0   : > { %5155 = vrcp.f32 %v1372_v6 }
 0x8c1   : > { %5157 = vtanh.f32 %v1380_v62 }
 0x8ca   : > { %v5156_v7 = vpop.eup %5155 }
 0x8cb   : > { %v1382_v11 = vsub.f32 1.0, %v5156_v7  ;;  %v5158_v16 = vpop.eup %5157  ;;  %v1386_v20 = vmul.f32 %v5156_v7, %v1384_v9 }
 0x8cd   : > { %v1383_v17 = vmul.f32 %v5158_v16, %v1382_v11 }
 0x8cf   : > { %v6099_v21 = vadd.f32 %v1386_v20, %v1383_v17 }
 0x8d1   : > { %v1389_v22 = vrot.slane %v6099_v21, 4  ;;  %v6104_v19 = vsel %vm736_vm2, %v6099_v21, %v1384_v9  ;;  %v1492_v40 = vrot.slane %v6099_v21, 7 }
 0x8d3   : > { %4374 = vmatmul.mubr.msk.f32.vlgmr.msra.gmra.mrb[6].mxu1 %vm856_vm3, %v1389_v22 }
 0x8d4   : > { %4681 = vmatpush1.bf16.msra.mxu1 %v5906_v15  ;;  %1672 = vmatprep.mubr.f32.mxu1 %v5591_v3 }
 0x8d5   : > { %4683 = vmatprep.subr.bf16.mxu1 %v5909_v18 }
 0x8d8   : > { %4685 = vmatpush1.bf16.msra.mxu1 %v5912_v29 }
 0x8d9   : > { %4687 = vmatprep.subr.bf16.mxu1 %v5915_v31 }
 0x8dc   : > { %4689 = vmatpush1.bf16.msra.mxu1 %v5919_v36 }
 0x8dd   : > { %4691 = vmatprep.subr.bf16.mxu1 %v5922_v37 }
 0x8e0   : > { %4693 = vmatpush1.bf16.msra.mxu1 %v5926_v43 }
 0x9a6   : > { %v1458_v26 = vpop.f32.mrb[6].mxu1 }
 0x9a7   : > { %v1464_v24 = vrot.slane %v1458_v26, 3  ;;  %v1460_v25 = vpop.f32.mrb[7].mxu1 }
 0x9a8   : > { %v1483_v29 = vadd.f32 %v1460_v25, %v5976_v8 }
 0x9a9   : > { %v1466_v27 = vadd.f32 %v1464_v24, %v5964_v63  ;;  %1473 = vrot.lane.b32.xlu0 %v1464_v24, %s5592_s21 }
 0x9aa   : > { %v1485_v31 = vrot.slane %v1483_v29, 3 }
 0x9ab   : > { %v4375_v15 = vmul.f32 -1.442695, %v1466_v27 }
 0x9ad   : > { %5159 = vpow2.f32 %v4375_v15 }
 0x9b7   : > { %v5160_v18 = vpop.eup %5159 }
 0x9b8   : > { %v1470_v30 = vadd.f32 1.0, %v5160_v18  ;;  %v1750_v18 = vld [vmem:[%s6898_s4 + $0x8] sm:$0xff] }
 0x9ba   : > { %5161 = vrcp.f32 %v1470_v30  ;;  %v1752_v30 = vld [vmem:[%s6898_s4 + $0x18] sm:$0xff] }
 0x9c4   : > { %v5162_v36 = vpop.eup %5161 }
 0x9c5   : > { %v1487_v32 = vmul.f32 %v5162_v36, %v1485_v31  ;;  %v4694_v31 = vpack.c.bf16 %v1752_v30, %v1750_v18  ;;  %v1749_v36 = vld [vmem:[%s6898_s4] sm:$0xff]  ;;  %v1778_v30 = vld [vmem:[#allocation9 + $0xe0] sm:$0xff] }
 0x9c7   : > { %v1488_v63 = vadd.f32 %v1487_v32, %v6021_v59  ;;  %4695 = vmatprep.subr.bf16.mxu0 %v4694_v31 }
 0xa1b   : > { %v1474_v37 = vpop.permute.xlu0 %1473 }
 0xa1c   : > { %v1476_v43 = vadd.f32 %v1474_v37, %v6015_v53 }
 0xa1e   : > { %v4376_v33 = vmul.f32 -1.442695, %v1476_v43  ;;  %v1754_v43 = vld [vmem:[%s6898_s4 + $0x28] sm:$0xff] }
 0xa20   : > { %5163 = vpow2.f32 %v4376_v33  ;;  %v1756_v33 = vld [vmem:[%s6898_s4 + $0x38] sm:$0xff] }
 0xa2a   : > { %v5164_v13 = vpop.eup %5163 }
 0xa2b   : > { %v1480_v34 = vadd.f32 1.0, %v5164_v13  ;;  %v1753_v13 = vld [vmem:[%s6898_s4 + $0x20] sm:$0xff] }
 0xa2d   : > { %5165 = vrcp.f32 %v1480_v34  ;;  %v1755_v34 = vld [vmem:[%s6898_s4 + $0x30] sm:$0xff] }
 0xa2e   : > { %5167 = vtanh.f32 %v1488_v63  ;;  %v4698_v63 = vpack.c.bf16 %v1756_v33, %v1754_v43 }
 0xa37   : > { %v5166_v39 = vpop.eup %5165 }
 0xa38   : > { %v1490_v41 = vsub.f32 1.0, %v5166_v39  ;;  %v5168_v44 = vpop.eup %5167  ;;  %v1494_v46 = vmul.f32 %v5166_v39, %v1492_v40  ;;  %v1767_v39 = vld [vmem:[#allocation9 + $0x88] sm:$0xff]  ;;  %v1769_v40 = vld [vmem:[#allocation9 + $0x98] sm:$0xff] }
 0xa3a   : > { %v1491_v23 = vmul.f32 %v5168_v44, %v1490_v41  ;;  %v4700_v41 = vpack.c.bf16 %v1755_v34, %v1753_v13  ;;  %v6163_v44 = vpack.c.bf16 %v1769_v40, %v1767_v39 }
 0xa3c   : > { %v6121_v47 = vadd.f32 %v1494_v46, %v1491_v23  ;;  %v1766_v23 = vld [vmem:[#allocation9 + $0x80] sm:$0xff]  ;;  %v1768_v46 = vld [vmem:[#allocation9 + $0x90] sm:$0xff]  ;;  %4711 = vmatprep.subr.bf16.mxu1 %v6163_v44 }
 0xa3e   : > { %v1497_v48 = vrot.slane %v6121_v47, 5  ;;  %v1600_v11 = vrot.slane %v6121_v47, 7 }
 0xa40   : > { %4377 = vmatmul.mubr.msk.f32.vlgmr.msra.gmra.mrb[8].mxu0 %vm856_vm3, %v1497_v48  ;;  %v1758_v48 = vld [vmem:[%s6898_s4 + $0x48] sm:$0xff] }
 0xa41   : > { %1864 = vmatprep.mubr.f32.mxu0 %v5591_v3 }
 0xb13   : > { %v1566_v53 = vpop.f32.mrb[8].mxu0 }
 0xb14   : > { %v1572_v59 = vrot.slane %v1566_v53, 2  ;;  %v1568_v49 = vpop.f32.mrb[9].mxu0  ;;  %v6168_v53 = vpack.c.bf16 %v1768_v46, %v1766_v23 }
 0xb15   : > { %v1591_v57 = vadd.f32 %v1568_v49, %v5976_v8  ;;  %v1757_v49 = vld [vmem:[%s6898_s4 + $0x40] sm:$0xff] }
 0xb16   : > { %v1574_v50 = vadd.f32 %v1572_v59, %v5967_v0  ;;  %1581 = vrot.lane.b32.xlu1 %v1572_v59, %s5592_s21  ;;  %v1760_v59 = vld [vmem:[%s6898_s4 + $0x58] sm:$0xff] }
 0xb17   : > { %v1593_v58 = vrot.slane %v1591_v57, 2  ;;  %v1770_v57 = vld [vmem:[#allocation9 + $0xa0] sm:$0xff] }
 0xb18   : > { %v4378_v51 = vmul.f32 -1.442695, %v1574_v50  ;;  %v1759_v50 = vld [vmem:[%s6898_s4 + $0x50] sm:$0xff] }
 0xb1a   : > { %5169 = vpow2.f32 %v4378_v51  ;;  %v4702_v51 = vpack.c.bf16 %v1760_v59, %v1758_v48  ;;  %v1722_v59 = vrot.slane %v6099_v21, 1  ;;  %v1726_v21 = vrot.slane %v6053_v56, 5 }
 0xb24   : > { %v5170_v54 = vpop.eup %5169 }
 0xb25   : > { %v1578_v55 = vadd.f32 1.0, %v5170_v54  ;;  %v1771_v54 = vld [vmem:[#allocation9 + $0xa8] sm:$0xff] }
 0xb27   : > { %5171 = vrcp.f32 %v1578_v55  ;;  %v1773_v55 = vld [vmem:[#allocation9 + $0xb8] sm:$0xff] }
 0xb31   : > { %v5172_v60 = vpop.eup %5171 }
 0xb32   : > { %v1595_v61 = vmul.f32 %v5172_v60, %v1593_v58  ;;  %v6181_v58 = vpack.c.bf16 %v1773_v55, %v1771_v54  ;;  %v1772_v60 = vld [vmem:[#allocation9 + $0xb0] sm:$0xff]  ;;  %v1724_v54 = vsel %vm736_vm2, %v6081_v42, %v1722_v59 }
 0xb34   : > { %v1596_v0 = vadd.f32 %v1595_v61, %v6049_v45  ;;  %v1762_v61 = vld [vmem:[%s6898_s4 + $0x68] sm:$0xff] }
 0xb88   : > { %v1582_v4 = vpop.permute.xlu1 %1581 }
 0xb89   : > { %v1584_v5 = vadd.f32 %v1582_v4, %v6043_v35  ;;  %v1764_v4 = vld [vmem:[%s6898_s4 + $0x78] sm:$0xff] }
 0xb8b   : > { %v4379_v62 = vmul.f32 -1.442695, %v1584_v5  ;;  %v4704_v5 = vpack.c.bf16 %v1759_v50, %v1757_v49 }
 0xb8d   : > { %5173 = vpow2.f32 %v4379_v62  ;;  %v6189_v62 = vpack.c.bf16 %v1772_v60, %v1770_v57  ;;  %v1729_v57 = vrot.slane %v6025_v12, 3 }
 0xb97   : > { %v5174_v6 = vpop.eup %5173 }
 0xb98   : > { %v1588_v7 = vadd.f32 1.0, %v5174_v6  ;;  %v1761_v6 = vld [vmem:[%s6898_s4 + $0x60] sm:$0xff] }
 0xb9a   : > { %5175 = vrcp.f32 %v1588_v7  ;;  %v1775_v7 = vld [vmem:[#allocation9 + $0xc8] sm:$0xff] }
 0xb9b   : > { %5177 = vtanh.f32 %v1596_v0  ;;  %v1763_v0 = vld [vmem:[%s6898_s4 + $0x70] sm:$0xff] }
 0xba4   : > { %v5176_v9 = vpop.eup %5175 }
 0xba5   : > { %v1598_v16 = vsub.f32 1.0, %v5176_v9  ;;  %v5178_v17 = vpop.eup %5177  ;;  %v1602_v22 = vmul.f32 %v5176_v9, %v1600_v11  ;;  %v4706_v11 = vpack.c.bf16 %v1764_v4, %v1762_v61  ;;  %v1728_v61 = vsel %vm736_vm2, %v6121_v47, %v1726_v21 }
 0xba6   : > { %v1732_v4 = vrot.slane %v5997_v38, 1 }
 0xba7   : > { %v1599_v20 = vmul.f32 %v5178_v17, %v1598_v16  ;;  %v1777_v16 = vld [vmem:[#allocation9 + $0xd8] sm:$0xff]  ;;  %v1774_v17 = vld [vmem:[#allocation9 + $0xc0] sm:$0xff] }
 0xba9   : > { %v6132_v26 = vadd.f32 %v1602_v22, %v1599_v20  ;;  %v1776_v20 = vld [vmem:[#allocation9 + $0xd0] sm:$0xff]  ;;  %v6199_v22 = vpack.c.bf16 %v1777_v16, %v1775_v7 }
 0xbab   : > { %v1605_v24 = vrot.slane %v6132_v26, 6  ;;  %v1708_v34 = vrot.slane %v6132_v26, 7  ;;  %v1716_v23 = vrot.slane %v6132_v26, 5 }
 0xbad   : > { %4380 = vmatmul.mubr.msk.f32.vlgmr.msra.gmra.mrb[8].mxu1 %vm856_vm3, %v1605_v24  ;;  %v6202_v24 = vpack.c.bf16 %v1776_v20, %v1774_v17  ;;  %v1718_v49 = vsel %vm736_vm2, %v6025_v12, %v1716_v23 }
 0xbae   : > { %1980 = vmatprep.mubr.f32.mxu1 %v5591_v3  ;;  %4713 = vmatpush1.bf16.msra.mxu1 %v6168_v53 }
 0xbaf   : > { %4715 = vmatprep.subr.bf16.mxu1 %v6181_v58 }
 0xbb2   : > { %4717 = vmatpush1.bf16.msra.mxu1 %v6189_v62 }
 0xbb3   : > { %4719 = vmatprep.subr.bf16.mxu1 %v6199_v22 }
 0xbb6   : > { %4721 = vmatpush1.bf16.msra.mxu1 %v6202_v24 }
 0xc80   : > { %v1674_v35 = vpop.f32.mrb[8].mxu1 }
 0xc81   : > { %v1680_v45 = vrot.slane %v1674_v35, 1  ;;  %v1676_v25 = vpop.f32.mrb[9].mxu1  ;;  %v4708_v35 = vpack.c.bf16 %v1763_v0, %v1761_v6 }
 0xc82   : > { %v1699_v9 = vadd.f32 %v1676_v25, %v5976_v8 }
 0xc83   : > { %v1682_v27 = vadd.f32 %v1680_v45, %v5970_v1  ;;  %1689 = vrot.lane.b32.xlu0 %v1680_v45, %s5592_s21  ;;  %v1751_v1 = vld [vmem:[%s6898_s4 + $0x10] sm:$0xff] }
 0xc84   : > { %v4696_v37 = vpack.c.bf16 %v1751_v1, %v1749_v36  ;;  %v1701_v45 = vrot.slane %v1699_v9, 1 }
 0xc85   : > { %v4381_v15 = vmul.f32 -1.442695, %v1682_v27  ;;  %v1779_v27 = vld [vmem:[#allocation9 + $0xe8] sm:$0xff] }
 0xc86   : > { %4697 = vmatpush1.bf16.msra.mxu0 %v4696_v37 }
 0xc87   : > { %5179 = vpow2.f32 %v4381_v15  ;;  %4699 = vmatprep.subr.bf16.mxu0 %v4698_v63  ;;  %v1781_v15 = vld [vmem:[#allocation9 + $0xf8] sm:$0xff] }
 0xc88   : > { %v6207_v18 = vpack.c.bf16 %v1781_v15, %v1779_v27 }
 0xc8a   : > { %4701 = vmatpush1.bf16.msra.mxu0 %v4700_v41  ;;  %4723 = vmatprep.subr.bf16.mxu1 %v6207_v18 }
 0xc8b   : > { %4703 = vmatprep.subr.bf16.mxu0 %v4702_v51 }
 0xc8e   : > { %4705 = vmatpush1.bf16.msra.mxu0 %v4704_v5 }
 0xc8f   : > { %4707 = vmatprep.subr.bf16.mxu0 %v4706_v11 }
 0xc91   : > { %v5180_v29 = vpop.eup %5179 }
 0xc92   : > { %v1686_v32 = vadd.f32 1.0, %v5180_v29  ;;  %4709 = vmatpush1.bf16.msra.mxu0 %v4708_v35  ;;  %v1780_v29 = vld [vmem:[#allocation9 + $0xf0] sm:$0xff] }
 0xc93   : > { %4727 = vmatprep.subr.bf16.mxu0 %v6163_v44  ;;  %v6209_v31 = vpack.c.bf16 %v1780_v29, %v1778_v30 }
 0xc94   : > { %5181 = vrcp.f32 %v1686_v32 }
 0xc95   : > { %4725 = vmatpush1.bf16.msra.mxu1 %v6209_v31 }
 0xc96   : > { %4743 = vmatprep.subr.bf16.mxu1 %v6163_v44 }
 0xc98   : > { %1981 = vmatmul.mubr.f32.vlgmr.msra.gmra.mrb[10].mxu1 %v5591_v3 }
 0xc99   : > { %4745 = vmatpush1.bf16.msra.mxu1 %v6168_v53  ;;  %2188 = vmatprep.mubr.f32.mxu1 %v5591_v3 }
 0xc9a   : > { %4747 = vmatprep.subr.bf16.mxu1 %v6181_v58 }
 0xc9d   : > { %4749 = vmatpush1.bf16.msra.mxu1 %v6189_v62 }
 0xc9e   : > { %v5182_v8 = vpop.eup %5181  ;;  %4751 = vmatprep.subr.bf16.mxu1 %v6199_v22 }
 0xc9f   : > { %v1703_v25 = vmul.f32 %v5182_v8, %v1701_v45 }
 0xca1   : > { %4753 = vmatpush1.bf16.msra.mxu1 %v6202_v24  ;;  %v1704_v43 = vadd.f32 %v1703_v25, %v6077_v28 }
 0xca2   : > { %4755 = vmatprep.subr.bf16.mxu1 %v6207_v18 }
 0xca5   : > { %4757 = vmatpush1.bf16.msra.mxu1 %v6209_v31 }
 0xca6   : > { %4775 = vmatprep.subr.bf16.mxu1 %v6163_v44 }
 0xcf5   : > { %v1690_v36 = vpop.permute.xlu0 %1689 }
 0xcf6   : > { %v1692_v1 = vadd.f32 %v1690_v36, %v6071_v10  ;;  %v1719_v10 = vrot.slane %v6121_v47, 3  ;;  %v4383_v47 = vld [vmem:[%s6900_s6 + $0x2] sm:$0x3] }
 0xcf8   : > { %v4382_v32 = vmul.f32 -1.442695, %v1692_v1  ;;  %v1721_v50 = vsel %vm736_vm2, %v6053_v56, %v1719_v10  ;;  %v1731_v56 = vsel %vm736_vm2, %v6132_v26, %v1729_v57  ;;  %v1790_v26 = vrot.slane %v4383_v47, %v5952_v52  ;;  %v6287_v1 = vld [vmem:[#allocation11 + $0x1] sm:$0x1] }
 0xcfa   : > { %5183 = vpow2.f32 %v4382_v32 }
 0xd04   : > { %v5184_v37 = vpop.eup %5183 }
 0xd05   : > { %v1696_v33 = vadd.f32 1.0, %v5184_v37 }
 0xd07   : > { %5185 = vrcp.f32 %v1696_v33 }
 0xd08   : > { %5187 = vtanh.f32 %v1704_v43 }
 0xd11   : > { %v5186_v13 = vpop.eup %5185 }
 0xd12   : > { %v1706_v63 = vsub.f32 1.0, %v5186_v13  ;;  %v5188_v39 = vpop.eup %5187  ;;  %v1710_v41 = vmul.f32 %v5186_v13, %v1708_v34 }
 0xd14   : > { %v1707_v40 = vmul.f32 %v5188_v39, %v1706_v63 }
 0xd16   : > { %v1711_v46 = vadd.f32 %v1710_v41, %v1707_v40  ;;  %v1794_v40 = vrot.slane %v4383_v47, %v5981_v14 }
 0xd18   : > { %v1713_v48 = vrot.slane %v1711_v46, 7  ;;  %v1734_v6 = vsel %vm736_vm2, %v1711_v46, %v1732_v4 }
 0xd1a   : > { %v1715_v28 = vsel %vm736_vm2, %v5997_v38, %v1713_v48 }
 0xd1b   : > { %v1736_v51 = vsel %vm1735_vm4, %v1715_v28, %v1718_v49 }
 0xd1c   : > { %v1738_v55 = vsel %vm1737_vm5, %v1736_v51, %v1721_v50 }
 0xd1d   : > { %v1740_v60 = vsel %vm1739_vm6, %v1738_v55, %v1724_v54 }
 0xd1e   : > { %v1742_v5 = vsel %vm1741_vm7, %v1740_v60, %v6104_v19 }
 0xd1f   : > { %v1744_v42 = vsel %vm1743_vm8, %v1742_v5, %v1728_v61 }
 0xd20   : > { %v1746_v12 = vsel %vm1745_vm9, %v1744_v42, %v1731_v56 }
 0xd21   : > { %v1748_v0 = vsel %vm1747_vm10, %v1746_v12, %v1734_v6 }
 0xd22   : > { %4384 = vmatmul.mubr.msk.f32.vlgmr.msra.gmra.mrb[10].mxu0 %vm856_vm3, %v1748_v0 }
 0xd23   : > { %4729 = vmatpush1.bf16.msra.mxu0 %v6168_v53  ;;  %2080 = vmatprep.mubr.f32.mxu0 %v5591_v3 }
 0xd24   : > { %4731 = vmatprep.subr.bf16.mxu0 %v6181_v58 }
 0xd27   : > { %4733 = vmatpush1.bf16.msra.mxu0 %v6189_v62 }
 0xd28   : > { %4735 = vmatprep.subr.bf16.mxu0 %v6199_v22 }
 0xd2b   : > { %4737 = vmatpush1.bf16.msra.mxu0 %v6202_v24 }
 0xd2c   : > { %4739 = vmatprep.subr.bf16.mxu0 %v6207_v18 }
 0xd2f   : > { %4741 = vmatpush1.bf16.msra.mxu0 %v6209_v31 }
 0xd30   : > { %4759 = vmatprep.subr.bf16.mxu0 %v6163_v44 }
 0xd6b   : > { %v1982_v38 = vpop.f32.mrb[10].mxu1 }
 0xd6c   : > { %v1984_v19 = vpop.f32.mrb[11].mxu1 }
 0xd6d   : > { %v2005_v32 = vadd.f32 %v1984_v19, %v6287_v1 }
 0xdf5   : > { %v1866_v7 = vpop.f32.mrb[10].mxu0 }
 0xdf6   : > { %v1867_v9 = vadd.f32 %v1866_v7, %v1790_v26  ;;  %v1868_v11 = vpop.f32.mrb[11].mxu0 }
 0xdf7   : > { %v6298_v23 = vadd.f32 %v1868_v11, %v1794_v40 }
 0xdf8   : > { %1884 = vrot.lane.b32.xlu1 %v1867_v9, %s5592_s21  ;;  %v1872_v16 = vrot.slane %v1867_v9, 7  ;;  %v1875_v17 = vrot.slane %v1867_v9, 5  ;;  %v1878_v20 = vrot.slane %v1867_v9, 3  ;;  %v1881_v35 = vrot.slane %v1867_v9, 1 }
 0xdf9   : > { %v1904_v46 = vrot.slane %v6298_v23, 7  ;;  %v1907_v11 = vrot.slane %v6298_v23, 5 }
 0xdfa   : > { %v6270_v45 = vsel %vm736_vm2, %v1867_v9, %v1872_v16  ;;  %1887 = vrot.lane.b32.xlu0 %v1872_v16, %s5592_s21  ;;  %v6274_v8 = vsel %vm736_vm2, %v1867_v9, %v1875_v17  ;;  %v6277_v25 = vsel %vm736_vm2, %v1867_v9, %v1878_v20  ;;  %v6280_v27 = vsel %vm736_vm2, %v1867_v9, %v1881_v35 }
 0xdfb   : > { %v1987_v15 = vadd.f32 %v1982_v38, %v6270_v45  ;;  %v6303_v48 = vsel %vm736_vm2, %v6298_v23, %v1904_v46 }
 0xdfc   : > { %1995 = vrot.lane.b32.xlu1 %v1982_v38, %s5592_s21 }
 0xdfd   : > { %v4385_v30 = vmul.f32 -1.442695, %v1987_v15 }
 0xdfe   : > { %1891 = vrot.lane.b32.xlu0 %v1875_v17, %s5592_s21  ;;  %v6330_v17 = vsel %vm736_vm2, %v6298_v23, %v1907_v11 }
 0xdff   : > { %5189 = vpow2.f32 %v4385_v30 }
 0xe02   : > { %1895 = vrot.lane.b32.xlu0 %v1878_v20, %s5592_s21 }
 0xe06   : > { %1899 = vrot.lane.b32.xlu0 %v1881_v35, %s5592_s21 }
 0xe09   : > { %v5190_v29 = vpop.eup %5189 }
 0xe0a   : > { %v1991_v36 = vadd.f32 1.0, %v5190_v29 }
 0xe0c   : > { %5191 = vrcp.f32 %v1991_v36 }
 0xe16   : > { %v5192_v37 = vpop.eup %5191 }
 0xe17   : > { %v2006_v43 = vmul.f32 %v5192_v37, %v2005_v32 }
 0xe19   : > { %v2007_v59 = vadd.f32 %v2006_v43, %v6303_v48 }
 0xe6a   : > { %v6290_v33 = vpop.permute.xlu1 %1884 }
 0xe6c   : > { %v1888_v13 = vpop.permute.xlu0 %1887 }
 0xe6d   : > { %v6294_v63 = vsel %vm736_vm2, %v6290_v33, %v1888_v13 }
 0xe6e   : > { %v1996_v34 = vpop.permute.xlu1 %1995 }
 0xe6f   : > { %v1998_v39 = vadd.f32 %v1996_v34, %v6294_v63 }
 0xe70   : > { %v1892_v19 = vpop.permute.xlu0 %1891 }
 0xe71   : > { %v4386_v41 = vmul.f32 -1.442695, %v1998_v39  ;;  %v6324_v47 = vsel %vm736_vm2, %v6290_v33, %v1892_v19 }
 0xe73   : > { %5193 = vpow2.f32 %v4386_v41 }
 0xe7d   : > { %v5194_v10 = vpop.eup %5193 }
 0xe7e   : > { %v2002_v28 = vadd.f32 1.0, %v5194_v10 }
 0xe80   : > { %5195 = vrcp.f32 %v2002_v28 }
 0xe81   : > { %5197 = vtanh.f32 %v2007_v59 }
 0xe8a   : > { %v5196_v49 = vpop.eup %5195 }
 0xe8b   : > { %v2009_v50 = vsub.f32 1.0, %v5196_v49  ;;  %v5198_v51 = vpop.eup %5197  ;;  %v2011_v21 = vmul.f32 0.0, %v5196_v49 }
 0xe8d   : > { %v2010_v54 = vmul.f32 %v5198_v51, %v2009_v50 }
 0xe8f   : > { %v6306_v55 = vadd.f32 %v2011_v21, %v2010_v54  ;;  %v1896_v54 = vpop.permute.xlu0 %1895 }
 0xe90   : > { %v6352_v21 = vsel %vm736_vm2, %v6290_v33, %v1896_v54 }
 0xe91   : > { %4387 = vmatmul.mubr.msk.f32.vlgmr.msra.gmra.mrb[12].mxu0 %vm856_vm3, %v6306_v55  ;;  %v2116_v30 = vrot.slane %v6306_v55, 7 }
 0xe92   : > { %4761 = vmatpush1.bf16.msra.mxu0 %v6168_v53  ;;  %2296 = vmatprep.mubr.f32.mxu0 %v5591_v3 }
 0xe93   : > { %4763 = vmatprep.subr.bf16.mxu0 %v6181_v58 }
 0xe96   : > { %4765 = vmatpush1.bf16.msra.mxu0 %v6189_v62 }
 0xe97   : > { %4767 = vmatprep.subr.bf16.mxu0 %v6199_v22 }
 0xe9a   : > { %4769 = vmatpush1.bf16.msra.mxu0 %v6202_v24 }
 0xe9b   : > { %4771 = vmatprep.subr.bf16.mxu0 %v6207_v18 }
 0xe9e   : > { %4773 = vmatpush1.bf16.msra.mxu0 %v6209_v31 }
 0xe9f   : > { %4791 = vmatprep.subr.bf16.mxu0 %v6163_v44 }
 0xf64   : > { %v2082_v57 = vpop.f32.mrb[12].mxu0 }
 0xf65   : > { %v2088_v60 = vrot.slane %v2082_v57, 7  ;;  %v2084_v61 = vpop.f32.mrb[13].mxu0 }
 0xf66   : > { %v2107_v6 = vadd.f32 %v2084_v61, %v6287_v1 }
 0xf67   : > { %v2090_v4 = vadd.f32 %v2088_v60, %v6274_v8  ;;  %2097 = vrot.lane.b32.xlu1 %v2088_v60, %s5592_s21 }
 0xf68   : > { %v2109_v12 = vrot.slane %v2107_v6, 7 }
 0xf69   : > { %v4388_v5 = vmul.f32 -1.442695, %v2090_v4  ;;  %v1910_v4 = vrot.slane %v6298_v23, 3 }
 0xf6b   : > { %5199 = vpow2.f32 %v4388_v5 }
 0xf75   : > { %v5200_v56 = vpop.eup %5199 }
 0xf76   : > { %v2094_v42 = vadd.f32 1.0, %v5200_v56  ;;  %v6358_v56 = vsel %vm736_vm2, %v6298_v23, %v1910_v4 }
 0xf78   : > { %5201 = vrcp.f32 %v2094_v42 }
 0xf82   : > { %v5202_v0 = vpop.eup %5201 }
 0xf83   : > { %v2111_v38 = vmul.f32 %v5202_v0, %v2109_v12 }
 0xf85   : > { %v2112_v20 = vadd.f32 %v2111_v38, %v6330_v17 }
 0xfd9   : > { %v2098_v26 = vpop.permute.xlu1 %2097 }
 0xfda   : > { %v2100_v7 = vadd.f32 %v2098_v26, %v6324_v47 }
 0xfdc   : > { %v4389_v9 = vmul.f32 -1.442695, %v2100_v7 }
 0xfde   : > { %5203 = vpow2.f32 %v4389_v9 }
 0xfe8   : > { %v5204_v16 = vpop.eup %5203 }
 0xfe9   : > { %v2104_v35 = vadd.f32 1.0, %v5204_v16 }
 0xfeb   : > { %5205 = vrcp.f32 %v2104_v35 }
 0xfec   : > { %5207 = vtanh.f32 %v2112_v20 }
 0xff5   : > { %v5206_v15 = vpop.eup %5205 }
 0xff6   : > { %v2114_v29 = vsub.f32 1.0, %v5206_v15  ;;  %v5208_v36 = vpop.eup %5207  ;;  %v2118_v37 = vmul.f32 %v5206_v15, %v2116_v30 }
 0xff8   : > { %v2115_v32 = vmul.f32 %v5208_v36, %v2114_v29 }
 0xffa   : > { %v6334_v43 = vadd.f32 %v2118_v37, %v2115_v32 }
 0xffc   : > { %v2121_v13 = vrot.slane %v6334_v43, 1  ;;  %v2224_v0 = vrot.slane %v6334_v43, 7 }
 0xffe   : > { %4390 = vmatmul.mubr.msk.f32.vlgmr.msra.gmra.mrb[12].mxu1 %vm856_vm3, %v2121_v13 }
 0xfff   : > { %4777 = vmatpush1.bf16.msra.mxu1 %v6168_v53  ;;  %2404 = vmatprep.mubr.f32.mxu1 %v5591_v3 }
0x1000   : > { %4779 = vmatprep.subr.bf16.mxu1 %v6181_v58 }
0x1003   : > { %4781 = vmatpush1.bf16.msra.mxu1 %v6189_v62 }
0x1004   : > { %4783 = vmatprep.subr.bf16.mxu1 %v6199_v22 }
0x1007   : > { %4785 = vmatpush1.bf16.msra.mxu1 %v6202_v24 }
0x1008   : > { %4787 = vmatprep.subr.bf16.mxu1 %v6207_v18 }
0x100b   : > { %4789 = vmatpush1.bf16.msra.mxu1 %v6209_v31 }
0x100c   : > { %4807 = vmatprep.subr.bf16.mxu1 %v6163_v44 }
0x10d1   : > { %v2190_v34 = vpop.f32.mrb[12].mxu1 }
0x10d2   : > { %v2196_v39 = vrot.slane %v2190_v34, 6  ;;  %v2192_v40 = vpop.f32.mrb[13].mxu1 }
0x10d3   : > { %v2215_v28 = vadd.f32 %v2192_v40, %v6287_v1 }
0x10d4   : > { %v2198_v41 = vadd.f32 %v2196_v39, %v6277_v25  ;;  %2205 = vrot.lane.b32.xlu1 %v2196_v39, %s5592_s21  ;;  %v1900_v39 = vpop.permute.xlu0 %1899 }
0x10d5   : > { %v2217_v49 = vrot.slane %v2215_v28, 6 }
0x10d6   : > { %v4391_v46 = vmul.f32 -1.442695, %v2198_v41 }
0x10d8   : > { %5209 = vpow2.f32 %v4391_v46 }
0x10e2   : > { %v5210_v10 = vpop.eup %5209 }
0x10e3   : > { %v2202_v59 = vadd.f32 1.0, %v5210_v10  ;;  %v1913_v10 = vrot.slane %v6298_v23, 1 }
0x10e5   : > { %5211 = vrcp.f32 %v2202_v59  ;;  %v6386_v28 = vsel %vm736_vm2, %v6298_v23, %v1913_v10 }
0x10ef   : > { %v5212_v50 = vpop.eup %5211 }
0x10f0   : > { %v2219_v51 = vmul.f32 %v5212_v50, %v2217_v49 }
0x10f2   : > { %v2220_v42 = vadd.f32 %v2219_v51, %v6358_v56 }
0x1146   : > { %v2206_v57 = vpop.permute.xlu1 %2205 }
0x1147   : > { %v2208_v60 = vadd.f32 %v2206_v57, %v6352_v21 }
0x1149   : > { %v4392_v61 = vmul.f32 -1.442695, %v2208_v60 }
0x114b   : > { %5213 = vpow2.f32 %v4392_v61 }
0x1155   : > { %v5214_v5 = vpop.eup %5213 }
0x1156   : > { %v2212_v6 = vadd.f32 1.0, %v5214_v5 }
0x1158   : > { %5215 = vrcp.f32 %v2212_v6 }
0x1159   : > { %5217 = vtanh.f32 %v2220_v42 }
0x1162   : > { %v5216_v12 = vpop.eup %5215 }
0x1163   : > { %v2222_v38 = vsub.f32 1.0, %v5216_v12  ;;  %v5218_v19 = vpop.eup %5217  ;;  %v2226_v7 = vmul.f32 %v5216_v12, %v2224_v0 }
0x1165   : > { %v2223_v26 = vmul.f32 %v5218_v19, %v2222_v38 }
0x1167   : > { %v6362_v9 = vadd.f32 %v2226_v7, %v2223_v26 }
0x1169   : > { %v2229_v11 = vrot.slane %v6362_v9, 2 }
0x116b   : > { %4393 = vmatmul.mubr.msk.f32.vlgmr.msra.gmra.mrb[14].mxu0 %vm856_vm3, %v2229_v11 }
0x116c   : > { %4793 = vmatpush1.bf16.msra.mxu0 %v6168_v53  ;;  %2512 = vmatprep.mubr.f32.mxu0 %v5591_v3 }
0x116d   : > { %4795 = vmatprep.subr.bf16.mxu0 %v6181_v58 }
0x1170   : > { %4797 = vmatpush1.bf16.msra.mxu0 %v6189_v62 }
0x1171   : > { %4799 = vmatprep.subr.bf16.mxu0 %v6199_v22 }
0x1174   : > { %4801 = vmatpush1.bf16.msra.mxu0 %v6202_v24 }
0x1175   : > { %4803 = vmatprep.subr.bf16.mxu0 %v6207_v18 }
0x1178   : > { %4805 = vmatpush1.bf16.msra.mxu0 %v6209_v31 }
0x1179   : > { %4823 = vmatprep.subr.bf16.mxu0 %v6163_v44  ;;  %v6380_v44 = vsel %vm736_vm2, %v6290_v33, %v1900_v39  ;;  %v2332_v33 = vrot.slane %v6362_v9, 7 }
0x123e   : > { %v2298_v16 = vpop.f32.mrb[14].mxu0 }
0x123f   : > { %v2304_v20 = vrot.slane %v2298_v16, 5  ;;  %v2300_v35 = vpop.f32.mrb[15].mxu0 }
0x1240   : > { %v2323_v32 = vadd.f32 %v2300_v35, %v6287_v1 }
0x1241   : > { %v2306_v15 = vadd.f32 %v2304_v20, %v6280_v27  ;;  %2313 = vrot.lane.b32.xlu1 %v2304_v20, %s5592_s21 }
0x1242   : > { %v2325_v37 = vrot.slane %v2323_v32, 5 }
0x1243   : > { %v4394_v30 = vmul.f32 -1.442695, %v2306_v15 }
0x1245   : > { %5219 = vpow2.f32 %v4394_v30 }
0x124f   : > { %v5220_v29 = vpop.eup %5219 }
0x1250   : > { %v2310_v36 = vadd.f32 1.0, %v5220_v29 }
0x1252   : > { %5221 = vrcp.f32 %v2310_v36 }
0x125c   : > { %v5222_v13 = vpop.eup %5221 }
0x125d   : > { %v2327_v34 = vmul.f32 %v5222_v13, %v2325_v37 }
0x125f   : > { %v2328_v49 = vadd.f32 %v2327_v34, %v6386_v28 }
0x12b3   : > { %v2314_v40 = vpop.permute.xlu1 %2313 }
0x12b4   : > { %v2316_v41 = vadd.f32 %v2314_v40, %v6380_v44 }
0x12b6   : > { %v4395_v46 = vmul.f32 -1.442695, %v2316_v41 }
0x12b8   : > { %5223 = vpow2.f32 %v4395_v46 }
0x12c2   : > { %v5224_v59 = vpop.eup %5223 }
0x12c3   : > { %v2320_v50 = vadd.f32 1.0, %v5224_v59 }
0x12c5   : > { %5225 = vrcp.f32 %v2320_v50 }
0x12c6   : > { %5227 = vtanh.f32 %v2328_v49 }
0x12cf   : > { %v5226_v51 = vpop.eup %5225 }
0x12d0   : > { %v2330_v54 = vsub.f32 1.0, %v5226_v51  ;;  %v5228_v57 = vpop.eup %5227  ;;  %v2334_v61 = vmul.f32 %v5226_v51, %v2332_v33 }
0x12d2   : > { %v2331_v60 = vmul.f32 %v5228_v57, %v2330_v54 }
0x12d4   : > { %v6390_v4 = vadd.f32 %v2334_v61, %v2331_v60 }
0x12d6   : > { %v2337_v5 = vrot.slane %v6390_v4, 3  ;;  %v2440_v32 = vrot.slane %v6390_v4, 7 }
0x12d8   : > { %4396 = vmatmul.mubr.msk.f32.vlgmr.msra.gmra.mrb[14].mxu1 %vm856_vm3, %v2337_v5 }
0x12d9   : > { %4809 = vmatpush1.bf16.msra.mxu1 %v6168_v53  ;;  %2620 = vmatprep.mubr.f32.mxu1 %v5591_v3 }
0x12da   : > { %4811 = vmatprep.subr.bf16.mxu1 %v6181_v58 }
0x12dd   : > { %4813 = vmatpush1.bf16.msra.mxu1 %v6189_v62 }
0x12de   : > { %4815 = vmatprep.subr.bf16.mxu1 %v6199_v22 }
0x12e1   : > { %4817 = vmatpush1.bf16.msra.mxu1 %v6202_v24 }
0x12e2   : > { %4819 = vmatprep.subr.bf16.mxu1 %v6207_v18 }
0x12e5   : > { %4821 = vmatpush1.bf16.msra.mxu1 %v6209_v31 }
0x13ab   : > { %v2406_v23 = vpop.f32.mrb[14].mxu1 }
0x13ac   : > { %v2412_v42 = vrot.slane %v2406_v23, 4  ;;  %v2408_v6 = vpop.f32.mrb[15].mxu1 }
0x13ad   : > { %v2431_v26 = vadd.f32 %v2408_v6, %v6287_v1 }
0x13ae   : > { %v2414_v12 = vadd.f32 %v2412_v42, %v6270_v45  ;;  %2421 = vrot.lane.b32.xlu0 %v2412_v42, %s5592_s21 }
0x13af   : > { %v2433_v7 = vrot.slane %v2431_v26, 4 }
0x13b0   : > { %v4397_v0 = vmul.f32 -1.442695, %v2414_v12 }
0x13b2   : > { %5229 = vpow2.f32 %v4397_v0 }
0x13bc   : > { %v5230_v38 = vpop.eup %5229 }
0x13bd   : > { %v2418_v19 = vadd.f32 1.0, %v5230_v38 }
0x13bf   : > { %5231 = vrcp.f32 %v2418_v19 }
0x13c9   : > { %v5232_v11 = vpop.eup %5231 }
0x13ca   : > { %v2435_v16 = vmul.f32 %v5232_v11, %v2433_v7 }
0x13cc   : > { %v2436_v45 = vadd.f32 %v2435_v16, %v6303_v48 }
0x1420   : > { %v2422_v20 = vpop.permute.xlu0 %2421 }
0x1421   : > { %v2424_v35 = vadd.f32 %v2422_v20, %v6294_v63 }
0x1423   : > { %v4398_v15 = vmul.f32 -1.442695, %v2424_v35 }
0x1425   : > { %5233 = vpow2.f32 %v4398_v15 }
0x142f   : > { %v5234_v30 = vpop.eup %5233 }
0x1430   : > { %v2428_v29 = vadd.f32 1.0, %v5234_v30 }
0x1432   : > { %5235 = vrcp.f32 %v2428_v29 }
0x1433   : > { %5237 = vtanh.f32 %v2436_v45 }
0x143c   : > { %v5236_v36 = vpop.eup %5235 }
0x143d   : > { %v2438_v37 = vsub.f32 1.0, %v5236_v36  ;;  %v5238_v13 = vpop.eup %5237  ;;  %v2442_v39 = vmul.f32 %v5236_v36, %v2440_v32 }
0x143f   : > { %v2439_v34 = vmul.f32 %v5238_v13, %v2438_v37 }
0x1441   : > { %v6408_v40 = vadd.f32 %v2442_v39, %v2439_v34 }
0x1443   : > { %v2445_v41 = vrot.slane %v6408_v40, 4  ;;  %v6413_v63 = vsel %vm736_vm2, %v6408_v40, %v2440_v32  ;;  %v2548_v60 = vrot.slane %v6408_v40, 7 }
0x1445   : > { %4399 = vmatmul.mubr.msk.f32.vlgmr.msra.gmra.mrb[16].mxu0 %vm856_vm3, %v2445_v41 }
0x1446   : > { %4825 = vmatpush1.bf16.msra.mxu0 %v6168_v53  ;;  %2728 = vmatprep.mubr.f32.mxu0 %v5591_v3 }
0x1447   : > { %4827 = vmatprep.subr.bf16.mxu0 %v6181_v58 }
0x144a   : > { %4829 = vmatpush1.bf16.msra.mxu0 %v6189_v62 }
0x144b   : > { %4831 = vmatprep.subr.bf16.mxu0 %v6199_v22 }
0x144e   : > { %4833 = vmatpush1.bf16.msra.mxu0 %v6202_v24 }
0x144f   : > { %4835 = vmatprep.subr.bf16.mxu0 %v6207_v18 }
0x1452   : > { %4837 = vmatpush1.bf16.msra.mxu0 %v6209_v31 }
0x1518   : > { %v2514_v48 = vpop.f32.mrb[16].mxu0 }
0x1519   : > { %v2520_v46 = vrot.slane %v2514_v48, 3  ;;  %v2516_v10 = vpop.f32.mrb[17].mxu0 }
0x151a   : > { %v2539_v62 = vadd.f32 %v2516_v10, %v6287_v1 }
0x151b   : > { %v2522_v59 = vadd.f32 %v2520_v46, %v6274_v8  ;;  %2529 = vrot.lane.b32.xlu1 %v2520_v46, %s5592_s21 }
0x151c   : > { %v2541_v22 = vrot.slane %v2539_v62, 3 }
0x151d   : > { %v4400_v53 = vmul.f32 -1.442695, %v2522_v59 }
0x151f   : > { %5239 = vpow2.f32 %v4400_v53 }
0x1529   : > { %v5240_v58 = vpop.eup %5239 }
0x152a   : > { %v2526_v49 = vadd.f32 1.0, %v5240_v58  ;;  %v4409_v58 = vld [vmem:[%s6898_s4 + $0x88] sm:$0xff] }
0x152c   : > { %5241 = vrcp.f32 %v2526_v49  ;;  %v4411_v49 = vld [vmem:[%s6898_s4 + $0x98] sm:$0xff] }
0x1536   : > { %v5242_v24 = vpop.eup %5241 }
0x1537   : > { %v2543_v50 = vmul.f32 %v5242_v24, %v2541_v22  ;;  %v4838_v22 = vpack.c.bf16 %v4411_v49, %v4409_v58  ;;  %v4408_v24 = vld [vmem:[%s6898_s4 + $0x80] sm:$0xff]  ;;  %v2828_v49 = vld [vmem:[#allocation9 + $0x160] sm:$0xff] }
0x1539   : > { %v2544_v8 = vadd.f32 %v2543_v50, %v6330_v17  ;;  %4839 = vmatprep.subr.bf16.mxu1 %v4838_v22 }
0x158d   : > { %v2530_v18 = vpop.permute.xlu1 %2529 }
0x158e   : > { %v2532_v31 = vadd.f32 %v2530_v18, %v6324_v47 }
0x1590   : > { %v4401_v51 = vmul.f32 -1.442695, %v2532_v31  ;;  %v4413_v31 = vld [vmem:[%s6898_s4 + $0xa8] sm:$0xff] }
0x1592   : > { %5243 = vpow2.f32 %v4401_v51  ;;  %v4415_v51 = vld [vmem:[%s6898_s4 + $0xb8] sm:$0xff] }
0x159c   : > { %v5244_v33 = vpop.eup %5243 }
0x159d   : > { %v2536_v54 = vadd.f32 1.0, %v5244_v33  ;;  %v4412_v33 = vld [vmem:[%s6898_s4 + $0xa0] sm:$0xff] }
0x159f   : > { %5245 = vrcp.f32 %v2536_v54  ;;  %v4414_v54 = vld [vmem:[%s6898_s4 + $0xb0] sm:$0xff] }
0x15a0   : > { %5247 = vtanh.f32 %v2544_v8  ;;  %v4842_v8 = vpack.c.bf16 %v4415_v51, %v4413_v31 }
0x15a9   : > { %v5246_v57 = vpop.eup %5245 }
0x15aa   : > { %v2546_v61 = vsub.f32 1.0, %v5246_v57  ;;  %v5248_v5 = vpop.eup %5247  ;;  %v2550_v42 = vmul.f32 %v5246_v57, %v2548_v60  ;;  %v2817_v57 = vld [vmem:[#allocation9 + $0x108] sm:$0xff]  ;;  %v2819_v60 = vld [vmem:[#allocation9 + $0x118] sm:$0xff] }
0x15ac   : > { %v2547_v23 = vmul.f32 %v5248_v5, %v2546_v61  ;;  %v4844_v61 = vpack.c.bf16 %v4414_v54, %v4412_v33  ;;  %v6472_v5 = vpack.c.bf16 %v2819_v60, %v2817_v57 }
0x15ae   : > { %v6430_v6 = vadd.f32 %v2550_v42, %v2547_v23  ;;  %v2816_v23 = vld [vmem:[#allocation9 + $0x100] sm:$0xff]  ;;  %v2818_v42 = vld [vmem:[#allocation9 + $0x110] sm:$0xff]  ;;  %4855 = vmatprep.subr.bf16.mxu0 %v6472_v5 }
0x15b0   : > { %v2553_v12 = vrot.slane %v6430_v6, 5  ;;  %v2656_v37 = vrot.slane %v6430_v6, 7 }
0x15b2   : > { %4402 = vmatmul.mubr.msk.f32.vlgmr.msra.gmra.mrb[16].mxu1 %vm856_vm3, %v2553_v12  ;;  %v4417_v12 = vld [vmem:[%s6898_s4 + $0xc8] sm:$0xff] }
0x15b3   : > { %2914 = vmatprep.mubr.f32.mxu1 %v5591_v3 }
0x1685   : > { %v2622_v47 = vpop.f32.mrb[16].mxu1 }
0x1686   : > { %v2628_v17 = vrot.slane %v2622_v47, 2  ;;  %v2624_v0 = vpop.f32.mrb[17].mxu1  ;;  %v6477_v47 = vpack.c.bf16 %v2818_v42, %v2816_v23 }
0x1687   : > { %v2647_v11 = vadd.f32 %v2624_v0, %v6287_v1  ;;  %v4416_v0 = vld [vmem:[%s6898_s4 + $0xc0] sm:$0xff] }
0x1688   : > { %v2630_v38 = vadd.f32 %v2628_v17, %v6277_v25  ;;  %2637 = vrot.lane.b32.xlu0 %v2628_v17, %s5592_s21  ;;  %v4419_v17 = vld [vmem:[%s6898_s4 + $0xd8] sm:$0xff] }
0x1689   : > { %v2649_v16 = vrot.slane %v2647_v11, 2  ;;  %v2820_v11 = vld [vmem:[#allocation9 + $0x120] sm:$0xff] }
0x168a   : > { %v4403_v19 = vmul.f32 -1.442695, %v2630_v38  ;;  %v4418_v38 = vld [vmem:[%s6898_s4 + $0xd0] sm:$0xff] }
0x168c   : > { %5249 = vpow2.f32 %v4403_v19  ;;  %v4846_v19 = vpack.c.bf16 %v4419_v17, %v4417_v12  ;;  %v2778_v17 = vrot.slane %v6408_v40, 1  ;;  %v2785_v40 = vrot.slane %v6334_v43, 3 }
0x1696   : > { %v5250_v26 = vpop.eup %5249 }
0x1697   : > { %v2634_v7 = vadd.f32 1.0, %v5250_v26  ;;  %v2821_v26 = vld [vmem:[#allocation9 + $0x128] sm:$0xff] }
0x1699   : > { %5251 = vrcp.f32 %v2634_v7  ;;  %v2823_v7 = vld [vmem:[#allocation9 + $0x138] sm:$0xff] }
0x16a3   : > { %v5252_v20 = vpop.eup %5251 }
0x16a4   : > { %v2651_v35 = vmul.f32 %v5252_v20, %v2649_v16  ;;  %v6490_v16 = vpack.c.bf16 %v2823_v7, %v2821_v26  ;;  %v2822_v20 = vld [vmem:[#allocation9 + $0x130] sm:$0xff]  ;;  %v2780_v26 = vsel %vm736_vm2, %v6390_v4, %v2778_v17  ;;  %v2782_v7 = vrot.slane %v6362_v9, 5 }
0x16a6   : > { %v2652_v25 = vadd.f32 %v2651_v35, %v6358_v56  ;;  %v4421_v35 = vld [vmem:[%s6898_s4 + $0xe8] sm:$0xff] }
0x16fa   : > { %v2638_v15 = vpop.permute.xlu0 %2637 }
0x16fb   : > { %v2640_v30 = vadd.f32 %v2638_v15, %v6352_v21  ;;  %v4423_v15 = vld [vmem:[%s6898_s4 + $0xf8] sm:$0xff] }
0x16fd   : > { %v4404_v45 = vmul.f32 -1.442695, %v2640_v30  ;;  %v4848_v30 = vpack.c.bf16 %v4418_v38, %v4416_v0 }
0x16ff   : > { %5253 = vpow2.f32 %v4404_v45  ;;  %v6498_v45 = vpack.c.bf16 %v2822_v20, %v2820_v11 }
0x1709   : > { %v5254_v29 = vpop.eup %5253 }
0x170a   : > { %v2644_v36 = vadd.f32 1.0, %v5254_v29  ;;  %v4420_v29 = vld [vmem:[%s6898_s4 + $0xe0] sm:$0xff] }
0x170c   : > { %5255 = vrcp.f32 %v2644_v36  ;;  %v2825_v36 = vld [vmem:[#allocation9 + $0x148] sm:$0xff] }
0x170d   : > { %5257 = vtanh.f32 %v2652_v25  ;;  %v4422_v25 = vld [vmem:[%s6898_s4 + $0xf0] sm:$0xff] }
0x1716   : > { %v5256_v32 = vpop.eup %5255 }
0x1717   : > { %v2654_v13 = vsub.f32 1.0, %v5256_v32  ;;  %v5258_v34 = vpop.eup %5257  ;;  %v2658_v41 = vmul.f32 %v5256_v32, %v2656_v37  ;;  %v4850_v37 = vpack.c.bf16 %v4423_v15, %v4421_v35  ;;  %v2784_v35 = vsel %vm736_vm2, %v6430_v6, %v2782_v7 }
0x1718   : > { %v2788_v15 = vrot.slane %v6306_v55, 1 }
0x1719   : > { %v2655_v39 = vmul.f32 %v5258_v34, %v2654_v13  ;;  %v2827_v13 = vld [vmem:[#allocation9 + $0x158] sm:$0xff]  ;;  %v2824_v34 = vld [vmem:[#allocation9 + $0x140] sm:$0xff] }
0x171b   : > { %v6441_v48 = vadd.f32 %v2658_v41, %v2655_v39  ;;  %v2826_v39 = vld [vmem:[#allocation9 + $0x150] sm:$0xff]  ;;  %v6508_v41 = vpack.c.bf16 %v2827_v13, %v2825_v36 }
0x171d   : > { %v2661_v46 = vrot.slane %v6441_v48, 6  ;;  %v2764_v54 = vrot.slane %v6441_v48, 7  ;;  %v2772_v23 = vrot.slane %v6441_v48, 5 }
0x171f   : > { %4405 = vmatmul.mubr.msk.f32.vlgmr.msra.gmra.mrb[18].mxu0 %vm856_vm3, %v2661_v46  ;;  %v6511_v46 = vpack.c.bf16 %v2826_v39, %v2824_v34  ;;  %v2774_v0 = vsel %vm736_vm2, %v6334_v43, %v2772_v23 }
0x1720   : > { %3030 = vmatprep.mubr.f32.mxu0 %v5591_v3  ;;  %4857 = vmatpush1.bf16.msra.mxu0 %v6477_v47 }
0x1721   : > { %4859 = vmatprep.subr.bf16.mxu0 %v6490_v16 }
0x1724   : > { %4861 = vmatpush1.bf16.msra.mxu0 %v6498_v45 }
0x1725   : > { %4863 = vmatprep.subr.bf16.mxu0 %v6508_v41 }
0x1728   : > { %4865 = vmatpush1.bf16.msra.mxu0 %v6511_v46 }
0x17f2   : > { %v2730_v21 = vpop.f32.mrb[18].mxu0 }
0x17f3   : > { %v2736_v56 = vrot.slane %v2730_v21, 1  ;;  %v2732_v10 = vpop.f32.mrb[19].mxu0  ;;  %v4852_v21 = vpack.c.bf16 %v4422_v25, %v4420_v29  ;;  %v2787_v29 = vsel %vm736_vm2, %v6441_v48, %v2785_v40 }
0x17f4   : > { %v2755_v32 = vadd.f32 %v2732_v10, %v6287_v1 }
0x17f5   : > { %v2738_v59 = vadd.f32 %v2736_v56, %v6280_v27  ;;  %2745 = vrot.lane.b32.xlu1 %v2736_v56, %s5592_s21  ;;  %v4410_v27 = vld [vmem:[%s6898_s4 + $0x90] sm:$0xff] }
0x17f6   : > { %v4840_v18 = vpack.c.bf16 %v4410_v27, %v4408_v24  ;;  %v2757_v56 = vrot.slane %v2755_v32, 1 }
0x17f7   : > { %v4406_v53 = vmul.f32 -1.442695, %v2738_v59  ;;  %v2829_v59 = vld [vmem:[#allocation9 + $0x168] sm:$0xff] }
0x17f8   : > { %4841 = vmatpush1.bf16.msra.mxu1 %v4840_v18 }
0x17f9   : > { %5259 = vpow2.f32 %v4406_v53  ;;  %4843 = vmatprep.subr.bf16.mxu1 %v4842_v8  ;;  %v2831_v53 = vld [vmem:[#allocation9 + $0x178] sm:$0xff] }
0x17fa   : > { %v6516_v58 = vpack.c.bf16 %v2831_v53, %v2829_v59 }
0x17fc   : > { %4845 = vmatpush1.bf16.msra.mxu1 %v4844_v61  ;;  %4867 = vmatprep.subr.bf16.mxu0 %v6516_v58 }
0x17fd   : > { %4847 = vmatprep.subr.bf16.mxu1 %v4846_v19 }
0x1800   : > { %4849 = vmatpush1.bf16.msra.mxu1 %v4848_v30 }
0x1801   : > { %4851 = vmatprep.subr.bf16.mxu1 %v4850_v37 }
0x1803   : > { %v5260_v62 = vpop.eup %5259 }
0x1804   : > { %v2742_v50 = vadd.f32 1.0, %v5260_v62  ;;  %4853 = vmatpush1.bf16.msra.mxu1 %v4852_v21  ;;  %v2830_v62 = vld [vmem:[#allocation9 + $0x170] sm:$0xff] }
0x1805   : > { %4871 = vmatprep.subr.bf16.mxu1 %v6472_v5  ;;  %v6518_v22 = vpack.c.bf16 %v2830_v62, %v2828_v49 }
0x1806   : > { %5261 = vrcp.f32 %v2742_v50 }
0x1807   : > { %4869 = vmatpush1.bf16.msra.mxu0 %v6518_v22 }
0x1808   : > { %4887 = vmatprep.subr.bf16.mxu0 %v6472_v5 }
0x180a   : > { %3031 = vmatmul.mubr.f32.vlgmr.msra.gmra.mrb[20].mxu0 %v5591_v3 }
0x180b   : > { %4889 = vmatpush1.bf16.msra.mxu0 %v6477_v47  ;;  %3238 = vmatprep.mubr.f32.mxu0 %v5591_v3 }
0x180c   : > { %4891 = vmatprep.subr.bf16.mxu0 %v6490_v16 }
0x180f   : > { %4893 = vmatpush1.bf16.msra.mxu0 %v6498_v45 }
0x1810   : > { %v5262_v1 = vpop.eup %5261  ;;  %4895 = vmatprep.subr.bf16.mxu0 %v6508_v41 }
0x1811   : > { %v2759_v10 = vmul.f32 %v5262_v1, %v2757_v56 }
0x1813   : > { %4897 = vmatpush1.bf16.msra.mxu0 %v6511_v46  ;;  %v2760_v31 = vadd.f32 %v2759_v10, %v6386_v28 }
0x1814   : > { %4899 = vmatprep.subr.bf16.mxu0 %v6516_v58 }
0x1817   : > { %4901 = vmatpush1.bf16.msra.mxu0 %v6518_v22 }
0x1818   : > { %4919 = vmatprep.subr.bf16.mxu0 %v6472_v5 }
0x1867   : > { %v2746_v24 = vpop.permute.xlu1 %2745 }
0x1868   : > { %v2748_v27 = vadd.f32 %v2746_v24, %v6380_v44  ;;  %v2775_v44 = vrot.slane %v6430_v6, 3  ;;  %v4424_v6 = vld [vmem:[%s6900_s6 + $0x4] sm:$0x3]  ;;  %v6596_v24 = vld [vmem:[#allocation11 + $0x2] sm:$0x1] }
0x1869   : > { %v2840_v48 = vrot.slane %v4424_v6, %v5952_v52 }
0x186a   : > { %v4407_v50 = vmul.f32 -1.442695, %v2748_v27  ;;  %v2777_v38 = vsel %vm736_vm2, %v6362_v9, %v2775_v44 }
0x186c   : > { %5263 = vpow2.f32 %v4407_v50 }
0x1876   : > { %v5264_v18 = vpop.eup %5263 }
0x1877   : > { %v2752_v51 = vadd.f32 1.0, %v5264_v18 }
0x1879   : > { %5265 = vrcp.f32 %v2752_v51 }
0x187a   : > { %5267 = vtanh.f32 %v2760_v31 }
0x1883   : > { %v5266_v33 = vpop.eup %5265 }
0x1884   : > { %v2762_v8 = vsub.f32 1.0, %v5266_v33  ;;  %v5268_v57 = vpop.eup %5267  ;;  %v2766_v61 = vmul.f32 %v5266_v33, %v2764_v54 }
0x1886   : > { %v2763_v60 = vmul.f32 %v5268_v57, %v2762_v8  ;;  %v2844_v57 = vrot.slane %v4424_v6, %v5981_v14 }
0x1888   : > { %v2767_v42 = vadd.f32 %v2766_v61, %v2763_v60 }
0x188a   : > { %v2769_v12 = vrot.slane %v2767_v42, 7  ;;  %v2790_v9 = vsel %vm736_vm2, %v2767_v42, %v2788_v15 }
0x188c   : > { %v2771_v28 = vsel %vm736_vm2, %v6306_v55, %v2769_v12 }
0x188d   : > { %v2791_v19 = vsel %vm1735_vm4, %v2771_v28, %v2774_v0 }
0x188e   : > { %v2792_v11 = vsel %vm1737_vm5, %v2791_v19, %v2777_v38 }
0x188f   : > { %v2793_v20 = vsel %vm1739_vm6, %v2792_v11, %v2780_v26 }
0x1890   : > { %v2794_v30 = vsel %vm1741_vm7, %v2793_v20, %v6413_v63 }
0x1891   : > { %v2795_v4 = vsel %vm1743_vm8, %v2794_v30, %v2784_v35 }
0x1892   : > { %v2796_v25 = vsel %vm1745_vm9, %v2795_v4, %v2787_v29 }
0x1893   : > { %v2797_v43 = vsel %vm1747_vm10, %v2796_v25, %v2790_v9 }
0x1894   : > { %4425 = vmatmul.mubr.msk.f32.vlgmr.msra.gmra.mrb[18].mxu1 %vm856_vm3, %v2797_v43 }
0x1895   : > { %4873 = vmatpush1.bf16.msra.mxu1 %v6477_v47  ;;  %3130 = vmatprep.mubr.f32.mxu1 %v5591_v3 }
0x1896   : > { %4875 = vmatprep.subr.bf16.mxu1 %v6490_v16 }
0x1899   : > { %4877 = vmatpush1.bf16.msra.mxu1 %v6498_v45 }
0x189a   : > { %4879 = vmatprep.subr.bf16.mxu1 %v6508_v41 }
0x189d   : > { %4881 = vmatpush1.bf16.msra.mxu1 %v6511_v46 }
0x189e   : > { %4883 = vmatprep.subr.bf16.mxu1 %v6516_v58 }
0x18a1   : > { %4885 = vmatpush1.bf16.msra.mxu1 %v6518_v22 }
0x18a2   : > { %4903 = vmatprep.subr.bf16.mxu1 %v6472_v5 }
0x18dd   : > { %v3032_v55 = vpop.f32.mrb[20].mxu0 }
0x18de   : > { %v3034_v63 = vpop.f32.mrb[21].mxu0 }
0x18df   : > { %v3055_v27 = vadd.f32 %v3034_v63, %v6596_v24 }
0x1967   : > { %v2916_v36 = vpop.f32.mrb[18].mxu1 }
0x1968   : > { %v2917_v32 = vadd.f32 %v2916_v36, %v2840_v48  ;;  %v2918_v37 = vpop.f32.mrb[19].mxu1 }
0x1969   : > { %v6607_v61 = vadd.f32 %v2918_v37, %v2844_v57 }
0x196a   : > { %2934 = vrot.lane.b32.xlu0 %v2917_v32, %s5592_s21  ;;  %v2922_v13 = vrot.slane %v2917_v32, 7  ;;  %v2925_v34 = vrot.slane %v2917_v32, 5  ;;  %v2928_v39 = vrot.slane %v2917_v32, 3  ;;  %v2931_v21 = vrot.slane %v2917_v32, 1 }
0x196b   : > { %v2954_v23 = vrot.slane %v6607_v61, 7  ;;  %v2957_v36 = vrot.slane %v6607_v61, 5 }
0x196c   : > { %v6579_v56 = vsel %vm736_vm2, %v2917_v32, %v2922_v13  ;;  %2937 = vrot.lane.b32.xlu1 %v2922_v13, %s5592_s21  ;;  %v6583_v1 = vsel %vm736_vm2, %v2917_v32, %v2925_v34  ;;  %v6586_v10 = vsel %vm736_vm2, %v2917_v32, %v2928_v39  ;;  %v6589_v52 = vsel %vm736_vm2, %v2917_v32, %v2931_v21 }
0x196d   : > { %v3037_v59 = vadd.f32 %v3032_v55, %v6579_v56  ;;  %v6612_v44 = vsel %vm736_vm2, %v6607_v61, %v2954_v23  ;;  %v6639_v37 = vsel %vm736_vm2, %v6607_v61, %v2957_v36 }
0x196e   : > { %3045 = vrot.lane.b32.xlu0 %v3032_v55, %s5592_s21 }
0x196f   : > { %v4426_v53 = vmul.f32 -1.442695, %v3037_v59 }
0x1970   : > { %2941 = vrot.lane.b32.xlu1 %v2925_v34, %s5592_s21 }
0x1971   : > { %5269 = vpow2.f32 %v4426_v53 }
0x1974   : > { %2945 = vrot.lane.b32.xlu1 %v2928_v39, %s5592_s21 }
0x1978   : > { %2949 = vrot.lane.b32.xlu1 %v2931_v21, %s5592_s21 }
0x197b   : > { %v5270_v49 = vpop.eup %5269 }
0x197c   : > { %v3041_v62 = vadd.f32 1.0, %v5270_v49 }
0x197e   : > { %5271 = vrcp.f32 %v3041_v62 }
0x1988   : > { %v5272_v50 = vpop.eup %5271 }
0x1989   : > { %v3056_v18 = vmul.f32 %v5272_v50, %v3055_v27 }
0x198b   : > { %v3057_v12 = vadd.f32 %v3056_v18, %v6612_v44 }
0x19dc   : > { %v6599_v31 = vpop.permute.xlu0 %2934 }
0x19de   : > { %v2938_v51 = vpop.permute.xlu1 %2937 }
0x19df   : > { %v6603_v33 = vsel %vm736_vm2, %v6599_v31, %v2938_v51 }
0x19e0   : > { %v3046_v8 = vpop.permute.xlu0 %3045 }
0x19e1   : > { %v3048_v54 = vadd.f32 %v3046_v8, %v6603_v33 }
0x19e2   : > { %v2942_v43 = vpop.permute.xlu1 %2941 }
0x19e3   : > { %v4427_v60 = vmul.f32 -1.442695, %v3048_v54  ;;  %v6633_v55 = vsel %vm736_vm2, %v6599_v31, %v2942_v43 }
0x19e5   : > { %5273 = vpow2.f32 %v4427_v60 }
0x19ef   : > { %v5274_v42 = vpop.eup %5273 }
0x19f0   : > { %v3052_v17 = vadd.f32 1.0, %v5274_v42 }
0x19f2   : > { %5275 = vrcp.f32 %v3052_v17 }
0x19f3   : > { %5277 = vtanh.f32 %v3057_v12 }
0x19fc   : > { %v5276_v28 = vpop.eup %5275 }
0x19fd   : > { %v3059_v0 = vsub.f32 1.0, %v5276_v28  ;;  %v5278_v38 = vpop.eup %5277  ;;  %v3061_v19 = vmul.f32 0.0, %v5276_v28 }
0x19ff   : > { %v3060_v14 = vmul.f32 %v5278_v38, %v3059_v0  ;;  %v2946_v0 = vpop.permute.xlu1 %2945 }
0x1a00   : > { %v6661_v38 = vsel %vm736_vm2, %v6599_v31, %v2946_v0 }
0x1a01   : > { %v6615_v26 = vadd.f32 %v3061_v19, %v3060_v14 }
0x1a03   : > { %4428 = vmatmul.mubr.msk.f32.vlgmr.msra.gmra.mrb[20].mxu1 %vm856_vm3, %v6615_v26  ;;  %v3166_v21 = vrot.slane %v6615_v26, 7 }
0x1a04   : > { %4905 = vmatpush1.bf16.msra.mxu1 %v6477_v47  ;;  %3346 = vmatprep.mubr.f32.mxu1 %v5591_v3 }
0x1a05   : > { %4907 = vmatprep.subr.bf16.mxu1 %v6490_v16 }
0x1a08   : > { %4909 = vmatpush1.bf16.msra.mxu1 %v6498_v45 }
0x1a09   : > { %4911 = vmatprep.subr.bf16.mxu1 %v6508_v41 }
0x1a0c   : > { %4913 = vmatpush1.bf16.msra.mxu1 %v6511_v46 }
0x1a0d   : > { %4915 = vmatprep.subr.bf16.mxu1 %v6516_v58 }
0x1a10   : > { %4917 = vmatpush1.bf16.msra.mxu1 %v6518_v22 }
0x1a11   : > { %4935 = vmatprep.subr.bf16.mxu1 %v6472_v5 }
0x1ad6   : > { %v3132_v7 = vpop.f32.mrb[20].mxu1 }
0x1ad7   : > { %v3138_v11 = vrot.slane %v3132_v7, 7  ;;  %v3134_v40 = vpop.f32.mrb[21].mxu1 }
0x1ad8   : > { %v3157_v29 = vadd.f32 %v3134_v40, %v6596_v24 }
0x1ad9   : > { %v3140_v20 = vadd.f32 %v3138_v11, %v6583_v1  ;;  %3147 = vrot.lane.b32.xlu0 %v3138_v11, %s5592_s21  ;;  %v2960_v11 = vrot.slane %v6607_v61, 3 }
0x1ada   : > { %v3159_v4 = vrot.slane %v3157_v29, 7 }
0x1adb   : > { %v4429_v35 = vmul.f32 -1.442695, %v3140_v20  ;;  %v6667_v20 = vsel %vm736_vm2, %v6607_v61, %v2960_v11 }
0x1add   : > { %5279 = vpow2.f32 %v4429_v35 }
0x1ae7   : > { %v5280_v15 = vpop.eup %5279 }
0x1ae8   : > { %v3144_v30 = vadd.f32 1.0, %v5280_v15 }
0x1aea   : > { %5281 = vrcp.f32 %v3144_v30 }
0x1af4   : > { %v5282_v9 = vpop.eup %5281 }
0x1af5   : > { %v3161_v25 = vmul.f32 %v5282_v9, %v3159_v4 }
0x1af7   : > { %v3162_v13 = vadd.f32 %v3161_v25, %v6639_v37 }
0x1b4b   : > { %v3148_v63 = vpop.permute.xlu0 %3147 }
0x1b4c   : > { %v3150_v6 = vadd.f32 %v3148_v63, %v6633_v55 }
0x1b4e   : > { %v4430_v48 = vmul.f32 -1.442695, %v3150_v6 }
0x1b50   : > { %5283 = vpow2.f32 %v4430_v48 }
0x1b5a   : > { %v5284_v32 = vpop.eup %5283 }
0x1b5b   : > { %v3154_v34 = vadd.f32 1.0, %v5284_v32 }
0x1b5d   : > { %5285 = vrcp.f32 %v3154_v34 }
0x1b5e   : > { %5287 = vtanh.f32 %v3162_v13 }
0x1b67   : > { %v5286_v39 = vpop.eup %5285 }
0x1b68   : > { %v3164_v59 = vsub.f32 1.0, %v5286_v39  ;;  %v5288_v53 = vpop.eup %5287  ;;  %v3168_v62 = vmul.f32 %v5286_v39, %v3166_v21 }
0x1b6a   : > { %v3165_v49 = vmul.f32 %v5288_v53, %v3164_v59 }
0x1b6c   : > { %v6643_v27 = vadd.f32 %v3168_v62, %v3165_v49 }
0x1b6e   : > { %v3171_v50 = vrot.slane %v6643_v27, 1  ;;  %v3274_v29 = vrot.slane %v6643_v27, 7 }
0x1b70   : > { %4431 = vmatmul.mubr.msk.f32.vlgmr.msra.gmra.mrb[22].mxu0 %vm856_vm3, %v3171_v50  ;;  %v2950_v50 = vpop.permute.xlu1 %2949 }
0x1b71   : > { %4921 = vmatpush1.bf16.msra.mxu0 %v6477_v47  ;;  %3454 = vmatprep.mubr.f32.mxu0 %v5591_v3 }
0x1b72   : > { %4923 = vmatprep.subr.bf16.mxu0 %v6490_v16 }
0x1b75   : > { %4925 = vmatpush1.bf16.msra.mxu0 %v6498_v45 }
0x1b76   : > { %4927 = vmatprep.subr.bf16.mxu0 %v6508_v41 }
0x1b79   : > { %4929 = vmatpush1.bf16.msra.mxu0 %v6511_v46 }
0x1b7a   : > { %4931 = vmatprep.subr.bf16.mxu0 %v6516_v58 }
0x1b7d   : > { %4933 = vmatpush1.bf16.msra.mxu0 %v6518_v22 }
0x1b7e   : > { %4951 = vmatprep.subr.bf16.mxu0 %v6472_v5 }
0x1c43   : > { %v3240_v18 = vpop.f32.mrb[22].mxu0 }
0x1c44   : > { %v3246_v51 = vrot.slane %v3240_v18, 6  ;;  %v3242_v8 = vpop.f32.mrb[23].mxu0 }
0x1c45   : > { %v3265_v42 = vadd.f32 %v3242_v8, %v6596_v24 }
0x1c46   : > { %v3248_v54 = vadd.f32 %v3246_v51, %v6586_v10  ;;  %3255 = vrot.lane.b32.xlu0 %v3246_v51, %s5592_s21 }
0x1c47   : > { %v3267_v12 = vrot.slane %v3265_v42, 6 }
0x1c48   : > { %v4432_v57 = vmul.f32 -1.442695, %v3248_v54  ;;  %v2963_v54 = vrot.slane %v6607_v61, 1 }
0x1c4a   : > { %5289 = vpow2.f32 %v4432_v57 }
0x1c54   : > { %v5290_v60 = vpop.eup %5289 }
0x1c55   : > { %v3252_v23 = vadd.f32 1.0, %v5290_v60  ;;  %v6695_v60 = vsel %vm736_vm2, %v6607_v61, %v2963_v54 }
0x1c57   : > { %5291 = vrcp.f32 %v3252_v23 }
0x1c61   : > { %v5292_v17 = vpop.eup %5291 }
0x1c62   : > { %v3269_v28 = vmul.f32 %v5292_v17, %v3267_v12 }
0x1c64   : > { %v3270_v35 = vadd.f32 %v3269_v28, %v6667_v20 }
0x1cb8   : > { %v3256_v14 = vpop.permute.xlu0 %3255 }
0x1cb9   : > { %v3258_v19 = vadd.f32 %v3256_v14, %v6661_v38 }
0x1cbb   : > { %v4433_v7 = vmul.f32 -1.442695, %v3258_v19 }
0x1cbd   : > { %5293 = vpow2.f32 %v4433_v7 }
0x1cc7   : > { %v5294_v40 = vpop.eup %5293 }
0x1cc8   : > { %v3262_v15 = vadd.f32 1.0, %v5294_v40 }
0x1cca   : > { %5295 = vrcp.f32 %v3262_v15 }
0x1ccb   : > { %5297 = vtanh.f32 %v3270_v35 }
0x1cd4   : > { %v5296_v30 = vpop.eup %5295 }
0x1cd5   : > { %v3272_v4 = vsub.f32 1.0, %v5296_v30  ;;  %v5298_v9 = vpop.eup %5297  ;;  %v3276_v43 = vmul.f32 %v5296_v30, %v3274_v29 }
0x1cd7   : > { %v3273_v25 = vmul.f32 %v5298_v9, %v3272_v4 }
0x1cd9   : > { %v6671_v63 = vadd.f32 %v3276_v43, %v3273_v25 }
0x1cdb   : > { %v3279_v6 = vrot.slane %v6671_v63, 2 }
0x1cdd   : > { %4434 = vmatmul.mubr.msk.f32.vlgmr.msra.gmra.mrb[22].mxu1 %vm856_vm3, %v3279_v6 }
0x1cde   : > { %4937 = vmatpush1.bf16.msra.mxu1 %v6477_v47  ;;  %3562 = vmatprep.mubr.f32.mxu1 %v5591_v3 }
0x1cdf   : > { %4939 = vmatprep.subr.bf16.mxu1 %v6490_v16 }
0x1ce2   : > { %4941 = vmatpush1.bf16.msra.mxu1 %v6498_v45 }
0x1ce3   : > { %4943 = vmatprep.subr.bf16.mxu1 %v6508_v41 }
0x1ce6   : > { %4945 = vmatpush1.bf16.msra.mxu1 %v6511_v46 }
0x1ce7   : > { %4947 = vmatprep.subr.bf16.mxu1 %v6516_v58 }
0x1cea   : > { %4949 = vmatpush1.bf16.msra.mxu1 %v6518_v22 }
0x1ceb   : > { %4967 = vmatprep.subr.bf16.mxu1 %v6472_v5  ;;  %v6689_v5 = vsel %vm736_vm2, %v6599_v31, %v2950_v50  ;;  %v3382_v31 = vrot.slane %v6671_v63, 7 }
0x1db0   : > { %v3348_v48 = vpop.f32.mrb[22].mxu1 }
0x1db1   : > { %v3354_v36 = vrot.slane %v3348_v48, 5  ;;  %v3350_v32 = vpop.f32.mrb[23].mxu1 }
0x1db2   : > { %v3373_v59 = vadd.f32 %v3350_v32, %v6596_v24 }
0x1db3   : > { %v3356_v13 = vadd.f32 %v3354_v36, %v6589_v52  ;;  %3363 = vrot.lane.b32.xlu0 %v3354_v36, %s5592_s21 }
0x1db4   : > { %v3375_v53 = vrot.slane %v3373_v59, 5 }
0x1db5   : > { %v4435_v34 = vmul.f32 -1.442695, %v3356_v13 }
0x1db7   : > { %5299 = vpow2.f32 %v4435_v34 }
0x1dc1   : > { %v5300_v39 = vpop.eup %5299 }
0x1dc2   : > { %v3360_v21 = vadd.f32 1.0, %v5300_v39 }
0x1dc4   : > { %5301 = vrcp.f32 %v3360_v21 }
0x1dce   : > { %v5302_v49 = vpop.eup %5301 }
0x1dcf   : > { %v3377_v62 = vmul.f32 %v5302_v49, %v3375_v53 }
0x1dd1   : > { %v3378_v23 = vadd.f32 %v3377_v62, %v6695_v60 }
0x1e25   : > { %v3364_v18 = vpop.permute.xlu0 %3363 }
0x1e26   : > { %v3366_v51 = vadd.f32 %v3364_v18, %v6689_v5 }
0x1e28   : > { %v4436_v8 = vmul.f32 -1.442695, %v3366_v51 }
0x1e2a   : > { %5303 = vpow2.f32 %v4436_v8 }
0x1e34   : > { %v5304_v57 = vpop.eup %5303 }
0x1e35   : > { %v3370_v42 = vadd.f32 1.0, %v5304_v57 }
0x1e37   : > { %5305 = vrcp.f32 %v3370_v42 }
0x1e38   : > { %5307 = vtanh.f32 %v3378_v23 }
0x1e41   : > { %v5306_v12 = vpop.eup %5305 }
0x1e42   : > { %v3380_v17 = vsub.f32 1.0, %v5306_v12  ;;  %v5308_v28 = vpop.eup %5307  ;;  %v3384_v14 = vmul.f32 %v5306_v12, %v3382_v31 }
0x1e44   : > { %v3381_v0 = vmul.f32 %v5308_v28, %v3380_v17 }
0x1e46   : > { %v6699_v19 = vadd.f32 %v3384_v14, %v3381_v0 }
0x1e48   : > { %v3387_v7 = vrot.slane %v6699_v19, 3  ;;  %v3490_v39 = vrot.slane %v6699_v19, 7 }
0x1e4a   : > { %4437 = vmatmul.mubr.msk.f32.vlgmr.msra.gmra.mrb[24].mxu0 %vm856_vm3, %v3387_v7 }
0x1e4b   : > { %4953 = vmatpush1.bf16.msra.mxu0 %v6477_v47  ;;  %3670 = vmatprep.mubr.f32.mxu0 %v5591_v3 }
0x1e4c   : > { %4955 = vmatprep.subr.bf16.mxu0 %v6490_v16 }
0x1e4f   : > { %4957 = vmatpush1.bf16.msra.mxu0 %v6498_v45 }
0x1e50   : > { %4959 = vmatprep.subr.bf16.mxu0 %v6508_v41 }
0x1e53   : > { %4961 = vmatpush1.bf16.msra.mxu0 %v6511_v46 }
0x1e54   : > { %4963 = vmatprep.subr.bf16.mxu0 %v6516_v58 }
0x1e57   : > { %4965 = vmatpush1.bf16.msra.mxu0 %v6518_v22 }
0x1e58   : > { %4982 = vmatprep.subr.bf16.mxu0 %v5589_v2 }
0x1f1d   : > { %v3456_v61 = vpop.f32.mrb[24].mxu0 }
0x1f1e   : > { %v3462_v11 = vrot.slane %v3456_v61, 4  ;;  %v3458_v40 = vpop.f32.mrb[25].mxu0 }
0x1f1f   : > { %v3481_v4 = vadd.f32 %v3458_v40, %v6596_v24 }
0x1f20   : > { %v3464_v35 = vadd.f32 %v3462_v11, %v6579_v56  ;;  %3471 = vrot.lane.b32.xlu1 %v3462_v11, %s5592_s21 }
0x1f21   : > { %v3483_v9 = vrot.slane %v3481_v4, 4 }
0x1f22   : > { %v4438_v15 = vmul.f32 -1.442695, %v3464_v35 }
0x1f24   : > { %5309 = vpow2.f32 %v4438_v15 }
0x1f2e   : > { %v5310_v30 = vpop.eup %5309 }
0x1f2f   : > { %v3468_v29 = vadd.f32 1.0, %v5310_v30 }
0x1f31   : > { %5311 = vrcp.f32 %v3468_v29 }
0x1f3b   : > { %v5312_v25 = vpop.eup %5311 }
0x1f3c   : > { %v3485_v43 = vmul.f32 %v5312_v25, %v3483_v9 }
0x1f3e   : > { %v3486_v56 = vadd.f32 %v3485_v43, %v6612_v44 }
0x1f92   : > { %v3472_v6 = vpop.permute.xlu1 %3471 }
0x1f93   : > { %v3474_v48 = vadd.f32 %v3472_v6, %v6603_v33 }
0x1f95   : > { %v4439_v36 = vmul.f32 -1.442695, %v3474_v48 }
0x1f97   : > { %5313 = vpow2.f32 %v4439_v36 }
0x1fa1   : > { %v5314_v32 = vpop.eup %5313 }
0x1fa2   : > { %v3478_v13 = vadd.f32 1.0, %v5314_v32 }
0x1fa4   : > { %5315 = vrcp.f32 %v3478_v13 }
0x1fa5   : > { %5317 = vtanh.f32 %v3486_v56 }
0x1fae   : > { %v5316_v34 = vpop.eup %5315 }
0x1faf   : > { %v3488_v21 = vsub.f32 1.0, %v5316_v34  ;;  %v5318_v59 = vpop.eup %5317  ;;  %v3492_v49 = vmul.f32 %v5316_v34, %v3490_v39 }
0x1fb1   : > { %v3489_v53 = vmul.f32 %v5318_v59, %v3488_v21 }
0x1fb3   : > { %v6718_v62 = vadd.f32 %v3492_v49, %v3489_v53 }
0x1fb5   : > { %v3495_v50 = vrot.slane %v6718_v62, 4  ;;  %v6723_v33 = vsel %vm736_vm2, %v6718_v62, %v3490_v39  ;;  %v3598_v17 = vrot.slane %v6718_v62, 7 }
0x1fb7   : > { %4440 = vmatmul.mubr.msk.f32.vlgmr.msra.gmra.mrb[24].mxu1 %vm856_vm3, %v3495_v50 }
0x1fb8   : > { %4969 = vmatpush1.bf16.msra.mxu1 %v6477_v47  ;;  %3778 = vmatprep.mubr.f32.mxu1 %v5591_v3 }
0x1fb9   : > { %4971 = vmatprep.subr.bf16.mxu1 %v6490_v16 }
0x1fbc   : > { %4973 = vmatpush1.bf16.msra.mxu1 %v6498_v45 }
0x1fbd   : > { %4975 = vmatprep.subr.bf16.mxu1 %v6508_v41 }
0x1fc0   : > { %4977 = vmatpush1.bf16.msra.mxu1 %v6511_v46 }
0x1fc1   : > { %4979 = vmatprep.subr.bf16.mxu1 %v6516_v58 }
0x1fc4   : > { %4981 = vmatpush1.bf16.msra.mxu1 %v6518_v22 }
0x1fc5   : > { %4994 = vmatprep.subr.bf16.mxu1 %v5589_v2 }
0x208a   : > { %v3564_v44 = vpop.f32.mrb[24].mxu1 }
0x208b   : > { %v3570_v18 = vrot.slane %v3564_v44, 3  ;;  %v3566_v51 = vpop.f32.mrb[25].mxu1 }
0x208c   : > { %v3589_v41 = vadd.f32 %v3566_v51, %v6596_v24 }
0x208d   : > { %v3572_v47 = vadd.f32 %v3570_v18, %v6583_v1  ;;  %3579 = vrot.lane.b32.xlu0 %v3570_v18, %s5592_s21 }
0x208e   : > { %v3591_v46 = vrot.slane %v3589_v41, 3 }
0x208f   : > { %v4441_v16 = vmul.f32 -1.442695, %v3572_v47 }
0x2091   : > { %5319 = vpow2.f32 %v4441_v16  ;;  %v3848_v16 = vld [vmem:[%s6902_s8] sm:$0xff] }
0x209b   : > { %v5320_v45 = vpop.eup %5319 }
0x209c   : > { %v3576_v8 = vadd.f32 1.0, %v5320_v45  ;;  %v3849_v45 = vld [vmem:[%s6902_s8 + $0x8] sm:$0xff] }
0x209d   : > { %v4983_v41 = vpack.c.bf16 %v3849_v45, %v3848_v16  ;;  %v5593_v16 = vmov 0   ;;  %v4451_v45 = vld [vmem:[#allocation2] ss:$0 sm:$0xff] }
0x209e   : > { %5321 = vrcp.f32 %v3576_v8  ;;  %5107 = vset.pattern.permute.xlu1 %v5593_v16  ;;  %5108 = vset.pattern.permute.xlu0 %v5593_v16 }
0x20a8   : > { %v5322_v58 = vpop.eup %5321 }
0x20a9   : > { %v3593_v54 = vmul.f32 %v5322_v58, %v3591_v46  ;;  %v3850_v46 = vld [vmem:[%s6902_s8 + $0x10] sm:$0xff] }
0x20ab   : > { %v3594_v1 = vadd.f32 %v3593_v54, %v6639_v37  ;;  %v3852_v54 = vld [vmem:[%s6902_s8 + $0x20] sm:$0xff] }
0x20ff   : > { %v3580_v22 = vpop.permute.xlu0 %3579 }
0x2100   : > { %v3582_v57 = vadd.f32 %v3580_v22, %v6633_v55  ;;  %v3853_v22 = vld [vmem:[%s6902_s8 + $0x28] sm:$0xff] }
0x2102   : > { %v4442_v23 = vmul.f32 -1.442695, %v3582_v57  ;;  %v4989_v57 = vpack.c.bf16 %v3853_v22, %v3852_v54 }
0x2104   : > { %5323 = vpow2.f32 %v4442_v23 }
0x210e   : > { %v5324_v42 = vpop.eup %5323 }
0x210f   : > { %v3586_v12 = vadd.f32 1.0, %v5324_v42  ;;  %v3854_v42 = vld [vmem:[%s6902_s8 + $0x30] sm:$0xff] }
0x2111   : > { %5325 = vrcp.f32 %v3586_v12 }
0x2112   : > { %5327 = vtanh.f32 %v3594_v1  ;;  %v3855_v1 = vld [vmem:[%s6902_s8 + $0x38] sm:$0xff] }
0x2113   : > { %v4992_v12 = vpack.c.bf16 %v3855_v1, %v3854_v42 }
0x211b   : > { %v5326_v31 = vpop.eup %5325 }
0x211c   : > { %v3596_v28 = vsub.f32 1.0, %v5326_v31  ;;  %v5328_v0 = vpop.eup %5327  ;;  %v3600_v7 = vmul.f32 %v5326_v31, %v3598_v17 }
0x211e   : > { %v3597_v14 = vmul.f32 %v5328_v0, %v3596_v28 }
0x2120   : > { %v6741_v61 = vadd.f32 %v3600_v7, %v3597_v14 }
0x2122   : > { %v3603_v11 = vrot.slane %v6741_v61, 5  ;;  %v3706_v34 = vrot.slane %v6741_v61, 7 }
0x2124   : > { %4443 = vmatmul.mubr.msk.f32.vlgmr.msra.gmra.mrb[26].mxu0 %vm856_vm3, %v3603_v11 }
0x2125   : > { %4511 = vmatprep.mubr.msk.f32.mxu0 %vm5590_vm0, %v5591_v3  ;;  %4984 = vmatpush3.bf16.msra.mxu0 %v4983_v41 }
0x2126   : > { %4985 = vmatprep.subr.bf16.mxu0 %v5589_v2 }
0x21f7   : > { %v3672_v55 = vpop.f32.mrb[26].mxu0 }
0x21f8   : > { %v3678_v37 = vrot.slane %v3672_v55, 2  ;;  %v3674_v40 = vpop.f32.mrb[27].mxu0 }
0x21f9   : > { %v3697_v4 = vadd.f32 %v3674_v40, %v6596_v24 }
0x21fa   : > { %v3680_v35 = vadd.f32 %v3678_v37, %v6586_v10  ;;  %3687 = vrot.lane.b32.xlu1 %v3678_v37, %s5592_s21 }
0x21fb   : > { %v3699_v9 = vrot.slane %v3697_v4, 2 }
0x21fc   : > { %v4444_v15 = vmul.f32 -1.442695, %v3680_v35 }
0x21fe   : > { %5329 = vpow2.f32 %v4444_v15 }
0x2208   : > { %v5330_v30 = vpop.eup %5329 }
0x2209   : > { %v3684_v29 = vadd.f32 1.0, %v5330_v30 }
0x220b   : > { %5331 = vrcp.f32 %v3684_v29 }
0x2215   : > { %v5332_v25 = vpop.eup %5331 }
0x2216   : > { %v3701_v43 = vmul.f32 %v5332_v25, %v3699_v9 }
0x2218   : > { %v3702_v10 = vadd.f32 %v3701_v43, %v6667_v20  ;;  %v3828_v43 = vrot.slane %v6718_v62, 1  ;;  %v3835_v62 = vrot.slane %v6643_v27, 3 }
0x226c   : > { %v3688_v6 = vpop.permute.xlu1 %3687 }
0x226d   : > { %v3690_v48 = vadd.f32 %v3688_v6, %v6661_v38 }
0x226f   : > { %v4445_v36 = vmul.f32 -1.442695, %v3690_v48 }
0x2271   : > { %5333 = vpow2.f32 %v4445_v36 }
0x227b   : > { %v5334_v32 = vpop.eup %5333 }
0x227c   : > { %v3694_v56 = vadd.f32 1.0, %v5334_v32  ;;  %v3830_v32 = vsel %vm736_vm2, %v6699_v19, %v3828_v43  ;;  %v4061_v43 = vld [vmem:[%s6906_s12 + $0x38] sm:$0xff] }
0x227e   : > { %5335 = vrcp.f32 %v3694_v56 }
0x227f   : > { %5337 = vtanh.f32 %v3702_v10  ;;  %v3832_v10 = vrot.slane %v6671_v63, 5 }
0x2288   : > { %v5336_v13 = vpop.eup %5335 }
0x2289   : > { %v3704_v39 = vsub.f32 1.0, %v5336_v13  ;;  %v5338_v21 = vpop.eup %5337  ;;  %v3708_v53 = vmul.f32 %v5336_v13, %v3706_v34  ;;  %v3834_v34 = vsel %vm736_vm2, %v6741_v61, %v3832_v10 }
0x228b   : > { %v3705_v59 = vmul.f32 %v5338_v21, %v3704_v39  ;;  %v3838_v39 = vrot.slane %v6615_v26, 1 }
0x228d   : > { %v6753_v49 = vadd.f32 %v3708_v53, %v3705_v59 }
0x228f   : > { %v3711_v50 = vrot.slane %v6753_v49, 6  ;;  %v3814_v35 = vrot.slane %v6753_v49, 7  ;;  %v3822_v4 = vrot.slane %v6753_v49, 5  ;;  %v3837_v59 = vsel %vm736_vm2, %v6753_v49, %v3835_v62 }
0x2291   : > { %4446 = vmatmul.mubr.msk.f32.vlgmr.msra.gmra.mrb[26].mxu1 %vm856_vm3, %v3711_v50  ;;  %v3824_v6 = vsel %vm736_vm2, %v6643_v27, %v3822_v4  ;;  %v3940_v50 = vld [vmem:[%s6904_s10 + $0x18] sm:$0xff]  ;;  %v4058_v4 = vld [vmem:[%s6906_s12 + $0x20] sm:$0xff] }
0x2292   : > { %4522 = vmatprep.mubr.msk.f32.mxu1 %vm5590_vm0, %v5591_v3 }
0x2364   : > { %v3780_v38 = vpop.f32.mrb[26].mxu1 }
0x2365   : > { %v3786_v20 = vrot.slane %v3780_v38, 1  ;;  %v3782_v44 = vpop.f32.mrb[27].mxu1 }
0x2366   : > { %v3805_v23 = vadd.f32 %v3782_v44, %v6596_v24 }
0x2367   : > { %v3788_v18 = vadd.f32 %v3786_v20, %v6589_v52  ;;  %3795 = vrot.lane.b32.xlu0 %v3786_v20, %s5592_s21  ;;  %v3851_v52 = vld [vmem:[%s6902_s8 + $0x18] sm:$0xff] }
0x2368   : > { %v4986_v58 = vpack.c.bf16 %v3851_v52, %v3850_v46  ;;  %v3807_v31 = vrot.slane %v3805_v23, 1  ;;  %v4449_v20 = vld [vmem:[#allocation12] ss:$0 sm:$0xff] }
0x2369   : > { %v4447_v51 = vmul.f32 -1.442695, %v3788_v18 }
0x236a   : > { %4987 = vmatpush3.bf16.msra.mxu0 %v4986_v58 }
0x236b   : > { %5339 = vpow2.f32 %v4447_v51  ;;  %4988 = vmatprep.subr.bf16.mxu0 %v5589_v2 }
0x236e   : > { %4990 = vmatpush3.bf16.msra.mxu0 %v4989_v57 }
0x236f   : > { %4991 = vmatprep.subr.bf16.mxu0 %v5589_v2 }
0x2372   : > { %4993 = vmatpush3.bf16.msra.mxu0 %v4992_v12 }
0x2373   : > { %5012 = vmatprep.subr.bf16.mxu0 %v5589_v2 }
0x2375   : > { %v5340_v47 = vpop.eup %5339 }
0x2376   : > { %v3792_v8 = vadd.f32 1.0, %v5340_v47 }
0x2378   : > { %5341 = vrcp.f32 %v3792_v8 }
0x2382   : > { %v5342_v17 = vpop.eup %5341 }
0x2383   : > { %v3809_v28 = vmul.f32 %v5342_v17, %v3807_v31 }
0x2385   : > { %v3810_v11 = vadd.f32 %v3809_v28, %v6695_v60 }
0x23d9   : > { %v3796_v24 = vpop.permute.xlu0 %3795 }
0x23da   : > { %v3798_v0 = vadd.f32 %v3796_v24, %v6689_v5  ;;  %v3825_v5 = vrot.slane %v6741_v61, 3  ;;  %v3939_v61 = vld [vmem:[%s6904_s10 + $0x10] sm:$0xff] }
0x23db   : > { %v4998_v38 = vpack.c.bf16 %v3940_v50, %v3939_v61 }
0x23dc   : > { %v4448_v14 = vmul.f32 -1.442695, %v3798_v0  ;;  %v3827_v48 = vsel %vm736_vm2, %v6671_v63, %v3825_v5 }
0x23de   : > { %5343 = vpow2.f32 %v4448_v14 }
0x23e8   : > { %v5344_v7 = vpop.eup %5343 }
0x23e9   : > { %v3802_v55 = vadd.f32 1.0, %v5344_v7 }
0x23eb   : > { %5345 = vrcp.f32 %v3802_v55 }
0x23ec   : > { %5347 = vtanh.f32 %v3810_v11 }
0x23f5   : > { %v5346_v37 = vpop.eup %5345 }
0x23f6   : > { %v3812_v40 = vsub.f32 1.0, %v5346_v37  ;;  %v5348_v15 = vpop.eup %5347  ;;  %v3816_v29 = vmul.f32 %v5346_v37, %v3814_v35  ;;  %v4054_v37 = vld [vmem:[%s6906_s12] sm:$0xff] }
0x23f8   : > { %v3813_v30 = vmul.f32 %v5348_v15, %v3812_v40  ;;  %v4055_v40 = vld [vmem:[%s6906_s12 + $0x8] sm:$0xff]  ;;  %v4056_v15 = vld [vmem:[%s6906_s12 + $0x10] sm:$0xff] }
0x23f9   : > { %v5001_v35 = vpack.c.bf16 %v4055_v40, %v4054_v37 }
0x23fa   : > { %v3817_v9 = vadd.f32 %v3816_v29, %v3813_v30  ;;  %v4057_v30 = vld [vmem:[%s6906_s12 + $0x18] sm:$0xff] }
0x23fb   : > { %v5004_v29 = vpack.c.bf16 %v4057_v30, %v4056_v15 }
0x23fc   : > { %v3819_v25 = vrot.slane %v3817_v9, 7  ;;  %v3840_v63 = vsel %vm736_vm2, %v3817_v9, %v3838_v39  ;;  %v4059_v9 = vld [vmem:[%s6906_s12 + $0x28] sm:$0xff]  ;;  %v4141_v39 = vld [vmem:[%s6908_s14] sm:$0xff] }
0x23fd   : > { %v5007_v5 = vpack.c.bf16 %v4059_v9, %v4058_v4 }
0x23fe   : > { %v3821_v60 = vsel %vm736_vm2, %v6615_v26, %v3819_v25  ;;  %v3937_v26 = vld [vmem:[%s6904_s10] sm:$0xff]  ;;  %v4060_v25 = vld [vmem:[%s6906_s12 + $0x30] sm:$0xff] }
0x23ff   : > { %v3841_v36 = vsel %vm1735_vm4, %v3821_v60, %v3824_v6  ;;  %v5010_v60 = vpack.c.bf16 %v4061_v43, %v4060_v25 }
0x2400   : > { %v3842_v56 = vsel %vm1737_vm5, %v3841_v36, %v3827_v48 }
0x2401   : > { %v3843_v13 = vsel %vm1739_vm6, %v3842_v56, %v3830_v32 }
0x2402   : > { %v3844_v21 = vsel %vm1741_vm7, %v3843_v13, %v6723_v33  ;;  %v3938_v33 = vld [vmem:[%s6904_s10 + $0x8] sm:$0xff] }
0x2403   : > { %v3845_v19 = vsel %vm1743_vm8, %v3844_v21, %v3834_v34  ;;  %v4995_v49 = vpack.c.bf16 %v3938_v33, %v3937_v26  ;;  %v4142_v21 = vld [vmem:[%s6908_s14 + $0x8] sm:$0xff] }
0x2404   : > { %v3846_v53 = vsel %vm1745_vm9, %v3845_v19, %v3837_v59  ;;  %v5013_v59 = vpack.c.bf16 %v4142_v21, %v4141_v39  ;;  %v4143_v19 = vld [vmem:[%s6908_s14 + $0x10] sm:$0xff] }
0x2405   : > { %v6820_v27 = vsel %vm1747_vm10, %v3846_v53, %v3840_v63  ;;  %4996 = vmatpush3.bf16.msra.mxu1 %v4995_v49  ;;  %v4144_v63 = vld [vmem:[%s6908_s14 + $0x18] sm:$0xff] }
0x2406   : > { %4512 = vmatmul.mubr.msk.f32.vlgmr.msra.gmra.mrb[28].mxu0 %vm856_vm3, %v6820_v27  ;;  %4997 = vmatprep.subr.bf16.mxu1 %v5589_v2  ;;  %v5016_v53 = vpack.c.bf16 %v4144_v63, %v4143_v19 }
0x2407   : > { %4552 = vmatprep.mubr.msk.f32.mxu0 %vm5590_vm0, %v5591_v3  ;;  %5014 = vmatpush3.bf16.msra.mxu0 %v5013_v59 }
0x2408   : > { %5015 = vmatprep.subr.bf16.mxu0 %v5589_v2 }
0x2409   : > { %4999 = vmatpush3.bf16.msra.mxu1 %v4998_v38 }
0x240a   : > { %5000 = vmatprep.subr.bf16.mxu1 %v5589_v2 }
0x240b   : > { %5017 = vmatpush3.bf16.msra.mxu0 %v5016_v53 }
0x24d9   : > { %v3932_v44 = vpop.f32.mrb[28].mxu0 }
0x24da   : > { %v3933_v18 = vadd.f32 %v4449_v20, %v3932_v44  ;;  %v4513_v51 = vpop.f32.mrb[29].mxu0  ;;  %v4145_v44 = vld [vmem:[#allocation3] sm:$0x1] }
0x24dc   : > { %5349 = vtanh.f32 %v3933_v18 }
0x24e6   : > { %v5350_v47 = vpop.eup %5349 }
0x24e7   : > { %4523 = vmatmul.mubr.msk.f32.vlgmr.msra.gmra.mrb[28].mxu1 %vm736_vm2, %v5350_v47 }
0x24e8   : > { %4541 = vmatprep.mubr.msk.f32.mxu1 %vm5590_vm0, %v5591_v3  ;;  %5002 = vmatpush3.bf16.msra.mxu1 %v5001_v35 }
0x24e9   : > { %5003 = vmatprep.subr.bf16.mxu1 %v5589_v2 }
0x24ec   : > { %5005 = vmatpush3.bf16.msra.mxu1 %v5004_v29 }
0x24ed   : > { %5006 = vmatprep.subr.bf16.mxu1 %v5589_v2 }
0x24f0   : > { %5008 = vmatpush3.bf16.msra.mxu1 %v5007_v5 }
0x24f1   : > { %5009 = vmatprep.subr.bf16.mxu1 %v5589_v2 }
0x24f4   : > { %5011 = vmatpush3.bf16.msra.mxu1 %v5010_v60 }
0x25ba   : > { %v4017_v8 = vpop.f32.mrb[28].mxu1 }
0x25bb   : > { %v4018_v41 = vadd.f32 %v4451_v45, %v4017_v8  ;;  %v4524_v46 = vpop.f32.mrb[29].mxu1 }
0x25bd   : > { %v4022_v52 = vsel %vm4021_vm11, %v4018_v41, -inf }
0x25be   : > { %v4023_v58 = vrot.slane %v4022_v52, 4 }
0x25c0   : > { %v4024_v54 = vmax.f32 %v4022_v52, %v4023_v58 }
0x25c2   : > { %v4025_v22 = vrot.slane %v4024_v54, 2 }
0x25c4   : > { %v4026_v57 = vmax.f32 %v4024_v54, %v4025_v22 }
0x25c6   : > { %v4027_v23 = vrot.slane %v4026_v57, 1 }
0x25c8   : > { %v4028_v42 = vmax.f32 %v4026_v57, %v4027_v23 }
0x25ca   : > { %v4029_v1 = vsub.f32 %v4018_v41, %v4028_v42 }
0x25cc   : > { %v4030_v12 = vmul.f32 1.442695, %v4029_v1 }
0x25ce   : > { %5351 = vpow2.f32 %v4030_v12 }
0x25d8   : > { %v5352_v31 = vpop.eup %5351 }
0x25d9   : > { %v4032_v3 = vsel %vm4021_vm11, %v5352_v31, 0.0 }
0x25da   : > { %v4033_v17 = vrot.slane %v4032_v3, 4 }
0x25dc   : > { %v4034_v28 = vadd.f32 %v4033_v17, %v4032_v3 }
0x25de   : > { %v4035_v24 = vrot.slane %v4034_v28, 2 }
0x25e0   : > { %v4036_v0 = vadd.f32 %v4035_v24, %v4034_v28 }
0x25e2   : > { %v4037_v14 = vrot.slane %v4036_v0, 1 }
0x25e4   : > { %v4038_v7 = vadd.f32 %v4037_v14, %v4036_v0 }
0x25e6   : > { %5353 = vrcp.f32 %v4038_v7 }
0x25f0   : > { %v5354_v11 = vpop.eup %5353 }
0x25f1   : > { %v4040_v55 = vmul.f32 %v5354_v11, %v5352_v31 }
0x25f3   : > { %4043 = vperm.xlu1 %5107, %v4040_v55  }
0x2672   : > { %v4044_v6 = vpop.permute.xlu1 %4043 }
0x2673   : > { %v4046_v48 = vmul.f32 %v4044_v6, %v6820_v27  ;;  %v4062_v27 = vld [vmem:[#allocation14] sm:$0x1] }
0x2675   : > { %v4047_v36 = vsel %vm856_vm3, %v4046_v48, 0.0 }
0x2676   : > { %v4048_v32 = vrot.slane %v4047_v36, 4 }
0x2678   : > { %v4049_v10 = vadd.f32 %v4048_v32, %v4047_v36 }
0x267a   : > { %v4050_v56 = vrot.slane %v4049_v10, 2 }
0x267c   : > { %v4051_v62 = vadd.f32 %v4050_v56, %v4049_v10 }
0x267e   : > { %v4052_v13 = vrot.slane %v4051_v62, 1 }
0x2680   : > { %v4053_v34 = vadd.f32 %v4052_v13, %v4051_v62 }
0x2682   : > { %4542 = vmatmul.mubr.msk.f32.vlgmr.msra.gmra.mrb[30].mxu1 %vm856_vm3, %v4053_v34 }
0x2755   : > { %v4132_v26 = vpop.f32.mrb[30].mxu1 }
0x2756   : > { %v4133_v33 = vadd.f32 %v4132_v26, %v4062_v27  ;;  %v4543_v61 = vpop.f32.mrb[31].mxu1 }
0x2758   : > { %v4137_v49 = vmul.f32 0.70710677, %v4133_v33  ;;  %v4136_v38 = vmul.f32 0.5, %v4133_v33 }
0x275a   : > { %5355 = verf.f32 %v4137_v49 }
0x2764   : > { %v5356_v50 = vpop.eup %5355 }
0x2765   : > { %v4139_v2 = vadd.f32 1.0, %v5356_v50 }
0x2767   : > { %v4140_v20 = vmul.f32 %v4139_v2, %v4136_v38 }
0x2769   : > { %4553 = vmatmul.mubr.msk.f32.vlgmr.msra.gmra.mrb[30].mxu0 %vm736_vm2, %v4140_v20 }
0x283c   : > { %v4215_v18 = vpop.f32.mrb[30].mxu0 }
0x283d   : > { %v4216_v51 = vadd.f32 %v4215_v18, %v4145_v44  ;;  %v4554_v47 = vpop.f32.mrb[31].mxu0 }
0x283f   : > { %4220 = vst.msk [vmem:[%s614_s20] sm:$0x1] %vm4219_vm12, %v4216_v51 }
0x2840 PF: > { %s6940_s25 = sld [smem:[#allocation19_spill]] }
0x2846   : > { %s34_s25 = sadd.s32 1, %s6940_s25  }
0x2847   : > { %p31_p9 = scmp.ge.s32.totalorder %s34_s25, 4  }
0x2849   :  { %33 = sbr.rel (!%p31_p9) target bundleno = 9 (0x9), region = 150 }
0x2850   :  { %4238 = vsyncpa [#allocation5], 1 }
0x2851   :  { %4240 = vsyncpa [#allocation5 + $0x1], 1 }
0x2852   :  { %4241 = vsyncpa [#allocation7], 1 }
0x2853   :  { %4242 = vsyncpa [#allocation10], 1 }
0x2854   :  { %4243 = vsyncpa [#allocation13], 1 }

</bundles_post_ra>
